<compile_context>
chip_gen: v7x
topology: tpu7x:2x2x1
jax: 0.10.0
libtpu: 0.0.40
codegen_flags: <defaults>
</compile_context>

<pallas_src>
import jax
import jax.numpy as jnp
from jax.experimental import pallas as pl
from jax.experimental.pallas import tpu as pltpu

LANE = 128  # TPU lane width; each gate gets its own LANE-wide column group.


def make_kernel(n_layers, B, T, V, H, Vp):
    TB = T * B
    G = LANE       # per-gate group width (requires H <= 128)
    GW = 4 * G     # padded gate width
    n_w = 1 + 3 * (n_layers - 1)   # u_0, then (w_ih, u, b) per extra layer

    def _sigmoid(z):
        # sigmoid(z) = 0.5 * tanh(0.5 z) + 0.5  (EUP tanh + mul + add)
        return 0.5 * jnp.tanh(0.5 * z) + 0.5

    def kernel(ids_ref, table_ref, h0_ref, c0_ref, *rest):
        w_refs = rest[:n_w]
        lin_w_ref = rest[n_w]                 # (H, Vp), pad columns zero
        lin_b_ref = rest[n_w + 1]             # (1, Vp)
        out_ref, hn_ref, cn_ref = rest[n_w + 2:n_w + 5]
        pre_ref, xs_ref, sem = rest[n_w + 5:]

        # ---- Embedding: DMA-gather the TB needed rows of the pre-fused table.
        # table row v = emb[v] @ W_ih0_wide + b0_wide (computed in wrapper).
        # Only TB rows move HBM -> VMEM; the (V, 4G) table never lives in VMEM.
        for r in range(TB):
            pltpu.make_async_copy(
                table_ref.at[pl.ds(ids_ref[r], 1), :],
                pre_ref.at[pl.ds(r, 1), :],
                sem.at[r]).start()
        for r in range(TB):
            pltpu.make_async_copy(
                table_ref.at[pl.ds(ids_ref[r], 1), :],
                pre_ref.at[pl.ds(r, 1), :],
                sem.at[r]).wait()

        last_h = None
        for l in range(n_layers):
            if l == 0:
                u = w_refs[0][...]                       # (H, 4G)
            else:
                base = 1 + 3 * (l - 1)
                w_ih = w_refs[base][...]                 # (H, 4G)
                u = w_refs[base + 1][...]                # (H, 4G)
                b = w_refs[base + 2][...]                # (1, 4G)
                # Hoisted input projection for this layer: one slab matmul off
                # the recurrent dependency chain, bias folded in once.
                pre_ref[...] = jnp.dot(
                    xs_ref[:, :H], w_ih,
                    preferred_element_type=jnp.float32) + b

            h = h0_ref[l]                                # (B, G) lane-padded
            c = c0_ref[l]                                # (B, G) lane-padded

            # T <= 8: static unroll keeps the recurrence visible to the LLO
            # scheduler.  Only h[:, :H] @ u (K = H, not 128) stays serial.
            for t in range(T):
                gates = pre_ref[pl.ds(t * B, B), :] + jnp.dot(
                    h[:, :H], u, preferred_element_type=jnp.float32)   # (B, 4G)
                # Each gate owns its own 128-lane group -> vreg-aligned slices,
                # no lane relayout on the serial chain.
                i_g = _sigmoid(gates[:, 0 * G:1 * G])
                f_g = _sigmoid(gates[:, 1 * G:2 * G])
                g_g = jnp.tanh(gates[:, 2 * G:3 * G])
                o_g = _sigmoid(gates[:, 3 * G:4 * G])
                c = f_g * c + i_g * g_g                  # (B, G) whole-vreg
                h = o_g * jnp.tanh(c)                    # (B, G) whole-vreg
                # Per-step store into the layer-output slab (no list/concat;
                # bounds live ranges, hides under the next step's h@u).
                xs_ref[pl.ds(t * B, B), :] = h

            hn_ref[l] = h                                # lane-dense stores
            cn_ref[l] = c
            last_h = h

        # ---- Linear + log_softmax, last timestep only (equals PyTorch's
        #      out.view(B,-1)[:, -V:]).  Lane-dense (B, Vp) output; padded
        #      vocab lanes are masked out of the softmax, sliced off outside.
        logits = jnp.dot(last_h[:, :H], lin_w_ref[...],
                         preferred_element_type=jnp.float32) + lin_b_ref[...]
        lane = jax.lax.broadcasted_iota(jnp.int32, (B, Vp), 1)
        logits = jnp.where(lane < V, logits, jnp.float32(-1e30))
        m = jnp.max(logits, axis=-1, keepdims=True)
        z = logits - m
        lse = jnp.log(jnp.sum(jnp.exp(z), axis=-1, keepdims=True))
        out_ref[...] = z - lse

    return kernel


# ----------------------- wrapper-side weight layout --------------------------

def _widen_gate_cols(w, H, G):
    """(in_dim, 4H) -> (in_dim, 4G): gate g's H columns go to the start of its
    own G-lane group; remaining columns are zero."""
    in_dim = w.shape[0]
    out = jnp.zeros((in_dim, 4 * G), w.dtype)
    for g in range(4):
        out = out.at[:, g * G:g * G + H].set(w[:, g * H:(g + 1) * H])
    return out


def embedding_lstm_forward(x, hidden, params, *, n_layers, hidden_dim,
                           vocab_size, embedding_size):
    h0, c0 = hidden
    B, T = x.shape
    H, V, E, L = hidden_dim, vocab_size, embedding_size, n_layers
    G = LANE
    GW = 4 * G
    Vp = ((V + G - 1) // G) * G
    assert H <= G, "this kernel assumes hidden_dim <= 128"

    # Token ids in t-major row order (row = t*B + b); scalar-read from SMEM.
    ids = jnp.transpose(x.astype(jnp.int32)).reshape(T * B)

    # Pre-fused layer-0 gate table (pure weight-weight product; at train time
    # recompute once per weight update, not per forward):
    #   table[v] = emb[v] @ W_ih0_wide + b0_wide
    table = jnp.dot(params["emb"], _widen_gate_cols(params["w_ih_0"], H, G),
                    precision=jax.lax.Precision.HIGHEST) \
        + _widen_gate_cols(params["b_0"], H, G)                        # (V, 4G)

    # Lane-pad initial state to the per-gate group width (pad lanes stay 0).
    h0_pad = jnp.pad(h0, ((0, 0), (0, 0), (0, G - H)))
    c0_pad = jnp.pad(c0, ((0, 0), (0, 0), (0, G - H)))

    flat_args = [ids, table, h0_pad, c0_pad,
                 _widen_gate_cols(params["w_hh_0"], H, G)]             # u_0 (H,4G)
    for l in range(1, L):
        flat_args += [
            _widen_gate_cols(params[f"w_ih_{l}"], H, G),               # (H, 4G)
            _widen_gate_cols(params[f"w_hh_{l}"], H, G),               # (H, 4G)
            _widen_gate_cols(params[f"b_{l}"], H, G),                  # (1, 4G)
        ]
    flat_args.append(jnp.pad(params["lin_w"], ((0, 0), (0, Vp - V))))  # (H, Vp)
    flat_args.append(jnp.pad(params["lin_b"], ((0, 0), (0, Vp - V))))  # (1, Vp)

    kernel = make_kernel(L, B, T, V, H, Vp)
    vmem = pl.BlockSpec(memory_space=pltpu.MemorySpace.VMEM)
    smem = pl.BlockSpec(memory_space=pltpu.MemorySpace.SMEM)
    hbm = pl.BlockSpec(memory_space=pl.ANY)

    out, hn, cn = pl.pallas_call(
        kernel,
        out_shape=(
            jax.ShapeDtypeStruct((B, Vp), jnp.float32),     # lane-dense logprobs
            jax.ShapeDtypeStruct((L, B, G), jnp.float32),   # lane-dense h_n
            jax.ShapeDtypeStruct((L, B, G), jnp.float32),   # lane-dense c_n
        ),
        in_specs=[smem, hbm] + [vmem] * (len(flat_args) - 2),
        out_specs=(vmem, vmem, vmem),
        scratch_shapes=[
            pltpu.VMEM((T * B, GW), jnp.float32),   # per-layer gate-preact slab
            pltpu.VMEM((T * B, G), jnp.float32),    # per-layer output slab
            pltpu.SemaphoreType.DMA((T * B,)),      # one sem per gathered row
        ],
        compiler_params=pltpu.CompilerParams(
            vmem_limit_bytes=32 * 1024 * 1024),
    )(*flat_args)
    # Slice the lane padding off outside the kernel (keeps in-kernel stores dense).
    return out[:, :V], (hn[:, :, :H], cn[:, :, :H])


# ------------------------------ params / reference ---------------------------

def init_params(key, vocab_size, embedding_size, hidden_dim, n_layers):
    H, V, E, L = hidden_dim, vocab_size, embedding_size, n_layers
    keys = jax.random.split(key, 4 * L + 3)
    k = 1.0 / float(H) ** 0.5
    params = {"emb": jax.random.normal(keys[0], (V, E), jnp.float32)}
    ki = 1
    for l in range(L):
        in_dim = E if l == 0 else H
        w_ih = jax.random.uniform(keys[ki], (4 * H, in_dim), jnp.float32, -k, k); ki += 1
        w_hh = jax.random.uniform(keys[ki], (4 * H, H), jnp.float32, -k, k); ki += 1
        b_ih = jax.random.uniform(keys[ki], (4 * H,), jnp.float32, -k, k); ki += 1
        b_hh = jax.random.uniform(keys[ki], (4 * H,), jnp.float32, -k, k); ki += 1
        params[f"w_ih_{l}"] = w_ih.T                    # (in_dim, 4H), PyTorch gate order
        params[f"w_hh_{l}"] = w_hh.T                    # (H, 4H)
        params[f"b_{l}"] = (b_ih + b_hh).reshape(1, 4 * H)
    lin_w = jax.random.uniform(keys[ki], (V, H), jnp.float32, -k, k); ki += 1
    lin_b = jax.random.uniform(keys[ki], (V,), jnp.float32, -k, k)
    params["lin_w"] = lin_w.T                           # (H, V)
    params["lin_b"] = lin_b.reshape(1, V)
    return params


def reference_forward(x, hidden, params, *, n_layers, hidden_dim,
                      vocab_size, embedding_size):
    """Pure-JAX reference implementing identical PyTorch semantics."""
    h0, c0 = hidden
    B, T = x.shape
    H = hidden_dim
    inp = params["emb"][x]  # (B, T, E)
    hn, cn = [], []
    for l in range(n_layers):
        w_ih, w_hh, b = params[f"w_ih_{l}"], params[f"w_hh_{l}"], params[f"b_{l}"]
        h, c = h0[l], c0[l]
        outs = []
        for t in range(T):
            gates = inp[:, t, :] @ w_ih + h @ w_hh + b
            i = jax.nn.sigmoid(gates[:, 0:H])
            f = jax.nn.sigmoid(gates[:, H:2 * H])
            g = jnp.tanh(gates[:, 2 * H:3 * H])
            o = jax.nn.sigmoid(gates[:, 3 * H:4 * H])
            c = f * c + i * g
            h = o * jnp.tanh(c)
            outs.append(h)
        hn.append(h)
        cn.append(c)
        inp = jnp.stack(outs, axis=1)
    logits = inp[:, -1, :] @ params["lin_w"] + params["lin_b"]
    out = jax.nn.log_softmax(logits, axis=-1)
    return out, (jnp.stack(hn), jnp.stack(cn))


if __name__ == "__main__":
    VOCAB, EMBED, HIDDEN, LAYERS = 16, 32, 32, 2
    BATCH, SEQ = 2, 8

    key = jax.random.PRNGKey(0)
    kp, kx = jax.random.split(key)
    params = init_params(kp, VOCAB, EMBED, HIDDEN, LAYERS)
    x = jax.random.randint(kx, (BATCH, SEQ), 0, VOCAB, dtype=jnp.int32)
    # init_hidden(batch_size): zeros of shape (n_layers, batch, hidden_dim)
    h0 = jnp.zeros((LAYERS, BATCH, HIDDEN), jnp.float32)
    c0 = jnp.zeros((LAYERS, BATCH, HIDDEN), jnp.float32)

    out, (hn, cn) = embedding_lstm_forward(
        x, (h0, c0), params, n_layers=LAYERS, hidden_dim=HIDDEN,
        vocab_size=VOCAB, embedding_size=EMBED)
    jax.block_until_ready((out, hn, cn))

    ref_out, (ref_hn, ref_cn) = reference_forward(
        x, (h0, c0), params, n_layers=LAYERS, hidden_dim=HIDDEN,
        vocab_size=VOCAB, embedding_size=EMBED)

    assert out.shape == (BATCH, VOCAB)
    assert hn.shape == (LAYERS, BATCH, HIDDEN) and cn.shape == (LAYERS, BATCH, HIDDEN)
    assert jnp.allclose(out, ref_out, atol=1e-4, rtol=1e-4)
    assert jnp.allclose(hn, ref_hn, atol=1e-4, rtol=1e-4)
    assert jnp.allclose(cn, ref_cn, atol=1e-4, rtol=1e-4)
    print("KERNEL_OK")
</pallas_src>

<mosaic_0001>
module attributes {stable_mosaic.version = 11 : i64} {
  func.func @kernel(%arg0: memref<16xi32, #tpu.memory_space<smem>>, %arg1: memref<16x512xf32, #tpu.memory_space<any>>, %arg2: memref<2x2x128xf32, #tpu.memory_space<vmem>>, %arg3: memref<2x2x128xf32, #tpu.memory_space<vmem>>, %arg4: memref<32x512xf32, #tpu.memory_space<vmem>>, %arg5: memref<32x512xf32, #tpu.memory_space<vmem>>, %arg6: memref<32x512xf32, #tpu.memory_space<vmem>>, %arg7: memref<1x512xf32, #tpu.memory_space<vmem>>, %arg8: memref<32x128xf32, #tpu.memory_space<vmem>>, %arg9: memref<1x128xf32, #tpu.memory_space<vmem>>, %arg10: memref<2x128xf32, #tpu.memory_space<vmem>>, %arg11: memref<2x2x128xf32, #tpu.memory_space<vmem>>, %arg12: memref<2x2x128xf32, #tpu.memory_space<vmem>>, %arg13: memref<16x512xf32, #tpu.memory_space<vmem>>, %arg14: memref<16x128xf32, #tpu.memory_space<vmem>>, %arg15: memref<16x!tpu.dma_semaphore, #tpu.memory_space<semaphore_mem>>) attributes {dimension_semantics = [], scalar_prefetch = 0 : i64, scratch_operands = 3 : i64, tpu.core_type = #tpu.core_type<tc>} {
    %c0 = arith.constant 0 : index
    %0 = memref.load %arg0[%c0] : memref<16xi32, #tpu.memory_space<smem>>
    %c0_i32 = arith.constant 0 : i32
    %c0_i32_0 = arith.constant 0 : i32
    %1 = tpu.memref_slice %arg1[%0, %c0_i32_0] : memref<16x512xf32, #tpu.memory_space<any>> -> memref<1x512xf32, #tpu.memory_space<any>>
    %c0_i32_1 = arith.constant 0 : i32
    %c0_i32_2 = arith.constant 0 : i32
    %2 = tpu.memref_slice %arg13[%c0_i32_1, %c0_i32_2] : memref<16x512xf32, #tpu.memory_space<vmem>> -> memref<1x512xf32, #tpu.memory_space<vmem>>
    %3 = tpu.memref_slice %arg15[%c0_i32] : memref<16x!tpu.dma_semaphore, #tpu.memory_space<semaphore_mem>> -> memref<1x!tpu.dma_semaphore, #tpu.memory_space<semaphore_mem>>
    %4 = tpu.memref_squeeze %3 : memref<1x!tpu.dma_semaphore, #tpu.memory_space<semaphore_mem>> -> memref<!tpu.dma_semaphore, #tpu.memory_space<semaphore_mem>>
    tpu.enqueue_dma source(%1 : memref<1x512xf32, #tpu.memory_space<any>>) target(%2 : memref<1x512xf32, #tpu.memory_space<vmem>>) target_semaphore(%4 : memref<!tpu.dma_semaphore, #tpu.memory_space<semaphore_mem>>)
    %c1 = arith.constant 1 : index
    %5 = memref.load %arg0[%c1] : memref<16xi32, #tpu.memory_space<smem>>
    %c1_i32 = arith.constant 1 : i32
    %c0_i32_3 = arith.constant 0 : i32
    %6 = tpu.memref_slice %arg1[%5, %c0_i32_3] : memref<16x512xf32, #tpu.memory_space<any>> -> memref<1x512xf32, #tpu.memory_space<any>>
    %c1_i32_4 = arith.constant 1 : i32
    %c0_i32_5 = arith.constant 0 : i32
    %7 = tpu.memref_slice %arg13[%c1_i32_4, %c0_i32_5] : memref<16x512xf32, #tpu.memory_space<vmem>> -> memref<1x512xf32, #tpu.memory_space<vmem>>
    %8 = tpu.memref_slice %arg15[%c1_i32] : memref<16x!tpu.dma_semaphore, #tpu.memory_space<semaphore_mem>> -> memref<1x!tpu.dma_semaphore, #tpu.memory_space<semaphore_mem>>
    %9 = tpu.memref_squeeze %8 : memref<1x!tpu.dma_semaphore, #tpu.memory_space<semaphore_mem>> -> memref<!tpu.dma_semaphore, #tpu.memory_space<semaphore_mem>>
    tpu.enqueue_dma source(%6 : memref<1x512xf32, #tpu.memory_space<any>>) target(%7 : memref<1x512xf32, #tpu.memory_space<vmem>>) target_semaphore(%9 : memref<!tpu.dma_semaphore, #tpu.memory_space<semaphore_mem>>)
    %c2 = arith.constant 2 : index
    %10 = memref.load %arg0[%c2] : memref<16xi32, #tpu.memory_space<smem>>
    %c2_i32 = arith.constant 2 : i32
    %c0_i32_6 = arith.constant 0 : i32
    %11 = tpu.memref_slice %arg1[%10, %c0_i32_6] : memref<16x512xf32, #tpu.memory_space<any>> -> memref<1x512xf32, #tpu.memory_space<any>>
    %c2_i32_7 = arith.constant 2 : i32
    %c0_i32_8 = arith.constant 0 : i32
    %12 = tpu.memref_slice %arg13[%c2_i32_7, %c0_i32_8] : memref<16x512xf32, #tpu.memory_space<vmem>> -> memref<1x512xf32, #tpu.memory_space<vmem>>
    %13 = tpu.memref_slice %arg15[%c2_i32] : memref<16x!tpu.dma_semaphore, #tpu.memory_space<semaphore_mem>> -> memref<1x!tpu.dma_semaphore, #tpu.memory_space<semaphore_mem>>
    %14 = tpu.memref_squeeze %13 : memref<1x!tpu.dma_semaphore, #tpu.memory_space<semaphore_mem>> -> memref<!tpu.dma_semaphore, #tpu.memory_space<semaphore_mem>>
    tpu.enqueue_dma source(%11 : memref<1x512xf32, #tpu.memory_space<any>>) target(%12 : memref<1x512xf32, #tpu.memory_space<vmem>>) target_semaphore(%14 : memref<!tpu.dma_semaphore, #tpu.memory_space<semaphore_mem>>)
    %c3 = arith.constant 3 : index
    %15 = memref.load %arg0[%c3] : memref<16xi32, #tpu.memory_space<smem>>
    %c3_i32 = arith.constant 3 : i32
    %c0_i32_9 = arith.constant 0 : i32
    %16 = tpu.memref_slice %arg1[%15, %c0_i32_9] : memref<16x512xf32, #tpu.memory_space<any>> -> memref<1x512xf32, #tpu.memory_space<any>>
    %c3_i32_10 = arith.constant 3 : i32
    %c0_i32_11 = arith.constant 0 : i32
    %17 = tpu.memref_slice %arg13[%c3_i32_10, %c0_i32_11] : memref<16x512xf32, #tpu.memory_space<vmem>> -> memref<1x512xf32, #tpu.memory_space<vmem>>
    %18 = tpu.memref_slice %arg15[%c3_i32] : memref<16x!tpu.dma_semaphore, #tpu.memory_space<semaphore_mem>> -> memref<1x!tpu.dma_semaphore, #tpu.memory_space<semaphore_mem>>
    %19 = tpu.memref_squeeze %18 : memref<1x!tpu.dma_semaphore, #tpu.memory_space<semaphore_mem>> -> memref<!tpu.dma_semaphore, #tpu.memory_space<semaphore_mem>>
    tpu.enqueue_dma source(%16 : memref<1x512xf32, #tpu.memory_space<any>>) target(%17 : memref<1x512xf32, #tpu.memory_space<vmem>>) target_semaphore(%19 : memref<!tpu.dma_semaphore, #tpu.memory_space<semaphore_mem>>)
    %c4 = arith.constant 4 : index
    %20 = memref.load %arg0[%c4] : memref<16xi32, #tpu.memory_space<smem>>
    %c4_i32 = arith.constant 4 : i32
    %c0_i32_12 = arith.constant 0 : i32
    %21 = tpu.memref_slice %arg1[%20, %c0_i32_12] : memref<16x512xf32, #tpu.memory_space<any>> -> memref<1x512xf32, #tpu.memory_space<any>>
    %c4_i32_13 = arith.constant 4 : i32
    %c0_i32_14 = arith.constant 0 : i32
    %22 = tpu.memref_slice %arg13[%c4_i32_13, %c0_i32_14] : memref<16x512xf32, #tpu.memory_space<vmem>> -> memref<1x512xf32, #tpu.memory_space<vmem>>
    %23 = tpu.memref_slice %arg15[%c4_i32] : memref<16x!tpu.dma_semaphore, #tpu.memory_space<semaphore_mem>> -> memref<1x!tpu.dma_semaphore, #tpu.memory_space<semaphore_mem>>
    %24 = tpu.memref_squeeze %23 : memref<1x!tpu.dma_semaphore, #tpu.memory_space<semaphore_mem>> -> memref<!tpu.dma_semaphore, #tpu.memory_space<semaphore_mem>>
    tpu.enqueue_dma source(%21 : memref<1x512xf32, #tpu.memory_space<any>>) target(%22 : memref<1x512xf32, #tpu.memory_space<vmem>>) target_semaphore(%24 : memref<!tpu.dma_semaphore, #tpu.memory_space<semaphore_mem>>)
    %c5 = arith.constant 5 : index
    %25 = memref.load %arg0[%c5] : memref<16xi32, #tpu.memory_space<smem>>
    %c5_i32 = arith.constant 5 : i32
    %c0_i32_15 = arith.constant 0 : i32
    %26 = tpu.memref_slice %arg1[%25, %c0_i32_15] : memref<16x512xf32, #tpu.memory_space<any>> -> memref<1x512xf32, #tpu.memory_space<any>>
    %c5_i32_16 = arith.constant 5 : i32
    %c0_i32_17 = arith.constant 0 : i32
    %27 = tpu.memref_slice %arg13[%c5_i32_16, %c0_i32_17] : memref<16x512xf32, #tpu.memory_space<vmem>> -> memref<1x512xf32, #tpu.memory_space<vmem>>
    %28 = tpu.memref_slice %arg15[%c5_i32] : memref<16x!tpu.dma_semaphore, #tpu.memory_space<semaphore_mem>> -> memref<1x!tpu.dma_semaphore, #tpu.memory_space<semaphore_mem>>
    %29 = tpu.memref_squeeze %28 : memref<1x!tpu.dma_semaphore, #tpu.memory_space<semaphore_mem>> -> memref<!tpu.dma_semaphore, #tpu.memory_space<semaphore_mem>>
    tpu.enqueue_dma source(%26 : memref<1x512xf32, #tpu.memory_space<any>>) target(%27 : memref<1x512xf32, #tpu.memory_space<vmem>>) target_semaphore(%29 : memref<!tpu.dma_semaphore, #tpu.memory_space<semaphore_mem>>)
    %c6 = arith.constant 6 : index
    %30 = memref.load %arg0[%c6] : memref<16xi32, #tpu.memory_space<smem>>
    %c6_i32 = arith.constant 6 : i32
    %c0_i32_18 = arith.constant 0 : i32
    %31 = tpu.memref_slice %arg1[%30, %c0_i32_18] : memref<16x512xf32, #tpu.memory_space<any>> -> memref<1x512xf32, #tpu.memory_space<any>>
    %c6_i32_19 = arith.constant 6 : i32
    %c0_i32_20 = arith.constant 0 : i32
    %32 = tpu.memref_slice %arg13[%c6_i32_19, %c0_i32_20] : memref<16x512xf32, #tpu.memory_space<vmem>> -> memref<1x512xf32, #tpu.memory_space<vmem>>
    %33 = tpu.memref_slice %arg15[%c6_i32] : memref<16x!tpu.dma_semaphore, #tpu.memory_space<semaphore_mem>> -> memref<1x!tpu.dma_semaphore, #tpu.memory_space<semaphore_mem>>
    %34 = tpu.memref_squeeze %33 : memref<1x!tpu.dma_semaphore, #tpu.memory_space<semaphore_mem>> -> memref<!tpu.dma_semaphore, #tpu.memory_space<semaphore_mem>>
    tpu.enqueue_dma source(%31 : memref<1x512xf32, #tpu.memory_space<any>>) target(%32 : memref<1x512xf32, #tpu.memory_space<vmem>>) target_semaphore(%34 : memref<!tpu.dma_semaphore, #tpu.memory_space<semaphore_mem>>)
    %c7 = arith.constant 7 : index
    %35 = memref.load %arg0[%c7] : memref<16xi32, #tpu.memory_space<smem>>
    %c7_i32 = arith.constant 7 : i32
    %c0_i32_21 = arith.constant 0 : i32
    %36 = tpu.memref_slice %arg1[%35, %c0_i32_21] : memref<16x512xf32, #tpu.memory_space<any>> -> memref<1x512xf32, #tpu.memory_space<any>>
    %c7_i32_22 = arith.constant 7 : i32
    %c0_i32_23 = arith.constant 0 : i32
    %37 = tpu.memref_slice %arg13[%c7_i32_22, %c0_i32_23] : memref<16x512xf32, #tpu.memory_space<vmem>> -> memref<1x512xf32, #tpu.memory_space<vmem>>
    %38 = tpu.memref_slice %arg15[%c7_i32] : memref<16x!tpu.dma_semaphore, #tpu.memory_space<semaphore_mem>> -> memref<1x!tpu.dma_semaphore, #tpu.memory_space<semaphore_mem>>
    %39 = tpu.memref_squeeze %38 : memref<1x!tpu.dma_semaphore, #tpu.memory_space<semaphore_mem>> -> memref<!tpu.dma_semaphore, #tpu.memory_space<semaphore_mem>>
    tpu.enqueue_dma source(%36 : memref<1x512xf32, #tpu.memory_space<any>>) target(%37 : memref<1x512xf32, #tpu.memory_space<vmem>>) target_semaphore(%39 : memref<!tpu.dma_semaphore, #tpu.memory_space<semaphore_mem>>)
    %c8 = arith.constant 8 : index
    %40 = memref.load %arg0[%c8] : memref<16xi32, #tpu.memory_space<smem>>
    %c8_i32 = arith.constant 8 : i32
    %c0_i32_24 = arith.constant 0 : i32
    %41 = tpu.memref_slice %arg1[%40, %c0_i32_24] : memref<16x512xf32, #tpu.memory_space<any>> -> memref<1x512xf32, #tpu.memory_space<any>>
    %c8_i32_25 = arith.constant 8 : i32
    %c0_i32_26 = arith.constant 0 : i32
    %42 = tpu.memref_slice %arg13[%c8_i32_25, %c0_i32_26] : memref<16x512xf32, #tpu.memory_space<vmem>> -> memref<1x512xf32, #tpu.memory_space<vmem>>
    %43 = tpu.memref_slice %arg15[%c8_i32] : memref<16x!tpu.dma_semaphore, #tpu.memory_space<semaphore_mem>> -> memref<1x!tpu.dma_semaphore, #tpu.memory_space<semaphore_mem>>
    %44 = tpu.memref_squeeze %43 : memref<1x!tpu.dma_semaphore, #tpu.memory_space<semaphore_mem>> -> memref<!tpu.dma_semaphore, #tpu.memory_space<semaphore_mem>>
    tpu.enqueue_dma source(%41 : memref<1x512xf32, #tpu.memory_space<any>>) target(%42 : memref<1x512xf32, #tpu.memory_space<vmem>>) target_semaphore(%44 : memref<!tpu.dma_semaphore, #tpu.memory_space<semaphore_mem>>)
    %c9 = arith.constant 9 : index
    %45 = memref.load %arg0[%c9] : memref<16xi32, #tpu.memory_space<smem>>
    %c9_i32 = arith.constant 9 : i32
    %c0_i32_27 = arith.constant 0 : i32
    %46 = tpu.memref_slice %arg1[%45, %c0_i32_27] : memref<16x512xf32, #tpu.memory_space<any>> -> memref<1x512xf32, #tpu.memory_space<any>>
    %c9_i32_28 = arith.constant 9 : i32
    %c0_i32_29 = arith.constant 0 : i32
    %47 = tpu.memref_slice %arg13[%c9_i32_28, %c0_i32_29] : memref<16x512xf32, #tpu.memory_space<vmem>> -> memref<1x512xf32, #tpu.memory_space<vmem>>
    %48 = tpu.memref_slice %arg15[%c9_i32] : memref<16x!tpu.dma_semaphore, #tpu.memory_space<semaphore_mem>> -> memref<1x!tpu.dma_semaphore, #tpu.memory_space<semaphore_mem>>
    %49 = tpu.memref_squeeze %48 : memref<1x!tpu.dma_semaphore, #tpu.memory_space<semaphore_mem>> -> memref<!tpu.dma_semaphore, #tpu.memory_space<semaphore_mem>>
    tpu.enqueue_dma source(%46 : memref<1x512xf32, #tpu.memory_space<any>>) target(%47 : memref<1x512xf32, #tpu.memory_space<vmem>>) target_semaphore(%49 : memref<!tpu.dma_semaphore, #tpu.memory_space<semaphore_mem>>)
    %c10 = arith.constant 10 : index
    %50 = memref.load %arg0[%c10] : memref<16xi32, #tpu.memory_space<smem>>
    %c10_i32 = arith.constant 10 : i32
    %c0_i32_30 = arith.constant 0 : i32
    %51 = tpu.memref_slice %arg1[%50, %c0_i32_30] : memref<16x512xf32, #tpu.memory_space<any>> -> memref<1x512xf32, #tpu.memory_space<any>>
    %c10_i32_31 = arith.constant 10 : i32
    %c0_i32_32 = arith.constant 0 : i32
    %52 = tpu.memref_slice %arg13[%c10_i32_31, %c0_i32_32] : memref<16x512xf32, #tpu.memory_space<vmem>> -> memref<1x512xf32, #tpu.memory_space<vmem>>
    %53 = tpu.memref_slice %arg15[%c10_i32] : memref<16x!tpu.dma_semaphore, #tpu.memory_space<semaphore_mem>> -> memref<1x!tpu.dma_semaphore, #tpu.memory_space<semaphore_mem>>
    %54 = tpu.memref_squeeze %53 : memref<1x!tpu.dma_semaphore, #tpu.memory_space<semaphore_mem>> -> memref<!tpu.dma_semaphore, #tpu.memory_space<semaphore_mem>>
    tpu.enqueue_dma source(%51 : memref<1x512xf32, #tpu.memory_space<any>>) target(%52 : memref<1x512xf32, #tpu.memory_space<vmem>>) target_semaphore(%54 : memref<!tpu.dma_semaphore, #tpu.memory_space<semaphore_mem>>)
    %c11 = arith.constant 11 : index
    %55 = memref.load %arg0[%c11] : memref<16xi32, #tpu.memory_space<smem>>
    %c11_i32 = arith.constant 11 : i32
    %c0_i32_33 = arith.constant 0 : i32
    %56 = tpu.memref_slice %arg1[%55, %c0_i32_33] : memref<16x512xf32, #tpu.memory_space<any>> -> memref<1x512xf32, #tpu.memory_space<any>>
    %c11_i32_34 = arith.constant 11 : i32
    %c0_i32_35 = arith.constant 0 : i32
    %57 = tpu.memref_slice %arg13[%c11_i32_34, %c0_i32_35] : memref<16x512xf32, #tpu.memory_space<vmem>> -> memref<1x512xf32, #tpu.memory_space<vmem>>
    %58 = tpu.memref_slice %arg15[%c11_i32] : memref<16x!tpu.dma_semaphore, #tpu.memory_space<semaphore_mem>> -> memref<1x!tpu.dma_semaphore, #tpu.memory_space<semaphore_mem>>
    %59 = tpu.memref_squeeze %58 : memref<1x!tpu.dma_semaphore, #tpu.memory_space<semaphore_mem>> -> memref<!tpu.dma_semaphore, #tpu.memory_space<semaphore_mem>>
    tpu.enqueue_dma source(%56 : memref<1x512xf32, #tpu.memory_space<any>>) target(%57 : memref<1x512xf32, #tpu.memory_space<vmem>>) target_semaphore(%59 : memref<!tpu.dma_semaphore, #tpu.memory_space<semaphore_mem>>)
    %c12 = arith.constant 12 : index
    %60 = memref.load %arg0[%c12] : memref<16xi32, #tpu.memory_space<smem>>
    %c12_i32 = arith.constant 12 : i32
    %c0_i32_36 = arith.constant 0 : i32
    %61 = tpu.memref_slice %arg1[%60, %c0_i32_36] : memref<16x512xf32, #tpu.memory_space<any>> -> memref<1x512xf32, #tpu.memory_space<any>>
    %c12_i32_37 = arith.constant 12 : i32
    %c0_i32_38 = arith.constant 0 : i32
    %62 = tpu.memref_slice %arg13[%c12_i32_37, %c0_i32_38] : memref<16x512xf32, #tpu.memory_space<vmem>> -> memref<1x512xf32, #tpu.memory_space<vmem>>
    %63 = tpu.memref_slice %arg15[%c12_i32] : memref<16x!tpu.dma_semaphore, #tpu.memory_space<semaphore_mem>> -> memref<1x!tpu.dma_semaphore, #tpu.memory_space<semaphore_mem>>
    %64 = tpu.memref_squeeze %63 : memref<1x!tpu.dma_semaphore, #tpu.memory_space<semaphore_mem>> -> memref<!tpu.dma_semaphore, #tpu.memory_space<semaphore_mem>>
    tpu.enqueue_dma source(%61 : memref<1x512xf32, #tpu.memory_space<any>>) target(%62 : memref<1x512xf32, #tpu.memory_space<vmem>>) target_semaphore(%64 : memref<!tpu.dma_semaphore, #tpu.memory_space<semaphore_mem>>)
    %c13 = arith.constant 13 : index
    %65 = memref.load %arg0[%c13] : memref<16xi32, #tpu.memory_space<smem>>
    %c13_i32 = arith.constant 13 : i32
    %c0_i32_39 = arith.constant 0 : i32
    %66 = tpu.memref_slice %arg1[%65, %c0_i32_39] : memref<16x512xf32, #tpu.memory_space<any>> -> memref<1x512xf32, #tpu.memory_space<any>>
    %c13_i32_40 = arith.constant 13 : i32
    %c0_i32_41 = arith.constant 0 : i32
    %67 = tpu.memref_slice %arg13[%c13_i32_40, %c0_i32_41] : memref<16x512xf32, #tpu.memory_space<vmem>> -> memref<1x512xf32, #tpu.memory_space<vmem>>
    %68 = tpu.memref_slice %arg15[%c13_i32] : memref<16x!tpu.dma_semaphore, #tpu.memory_space<semaphore_mem>> -> memref<1x!tpu.dma_semaphore, #tpu.memory_space<semaphore_mem>>
    %69 = tpu.memref_squeeze %68 : memref<1x!tpu.dma_semaphore, #tpu.memory_space<semaphore_mem>> -> memref<!tpu.dma_semaphore, #tpu.memory_space<semaphore_mem>>
    tpu.enqueue_dma source(%66 : memref<1x512xf32, #tpu.memory_space<any>>) target(%67 : memref<1x512xf32, #tpu.memory_space<vmem>>) target_semaphore(%69 : memref<!tpu.dma_semaphore, #tpu.memory_space<semaphore_mem>>)
    %c14 = arith.constant 14 : index
    %70 = memref.load %arg0[%c14] : memref<16xi32, #tpu.memory_space<smem>>
    %c14_i32 = arith.constant 14 : i32
    %c0_i32_42 = arith.constant 0 : i32
    %71 = tpu.memref_slice %arg1[%70, %c0_i32_42] : memref<16x512xf32, #tpu.memory_space<any>> -> memref<1x512xf32, #tpu.memory_space<any>>
    %c14_i32_43 = arith.constant 14 : i32
    %c0_i32_44 = arith.constant 0 : i32
    %72 = tpu.memref_slice %arg13[%c14_i32_43, %c0_i32_44] : memref<16x512xf32, #tpu.memory_space<vmem>> -> memref<1x512xf32, #tpu.memory_space<vmem>>
    %73 = tpu.memref_slice %arg15[%c14_i32] : memref<16x!tpu.dma_semaphore, #tpu.memory_space<semaphore_mem>> -> memref<1x!tpu.dma_semaphore, #tpu.memory_space<semaphore_mem>>
    %74 = tpu.memref_squeeze %73 : memref<1x!tpu.dma_semaphore, #tpu.memory_space<semaphore_mem>> -> memref<!tpu.dma_semaphore, #tpu.memory_space<semaphore_mem>>
    tpu.enqueue_dma source(%71 : memref<1x512xf32, #tpu.memory_space<any>>) target(%72 : memref<1x512xf32, #tpu.memory_space<vmem>>) target_semaphore(%74 : memref<!tpu.dma_semaphore, #tpu.memory_space<semaphore_mem>>)
    %c15 = arith.constant 15 : index
    %75 = memref.load %arg0[%c15] : memref<16xi32, #tpu.memory_space<smem>>
    %c15_i32 = arith.constant 15 : i32
    %c0_i32_45 = arith.constant 0 : i32
    %76 = tpu.memref_slice %arg1[%75, %c0_i32_45] : memref<16x512xf32, #tpu.memory_space<any>> -> memref<1x512xf32, #tpu.memory_space<any>>
    %c15_i32_46 = arith.constant 15 : i32
    %c0_i32_47 = arith.constant 0 : i32
    %77 = tpu.memref_slice %arg13[%c15_i32_46, %c0_i32_47] : memref<16x512xf32, #tpu.memory_space<vmem>> -> memref<1x512xf32, #tpu.memory_space<vmem>>
    %78 = tpu.memref_slice %arg15[%c15_i32] : memref<16x!tpu.dma_semaphore, #tpu.memory_space<semaphore_mem>> -> memref<1x!tpu.dma_semaphore, #tpu.memory_space<semaphore_mem>>
    %79 = tpu.memref_squeeze %78 : memref<1x!tpu.dma_semaphore, #tpu.memory_space<semaphore_mem>> -> memref<!tpu.dma_semaphore, #tpu.memory_space<semaphore_mem>>
    tpu.enqueue_dma source(%76 : memref<1x512xf32, #tpu.memory_space<any>>) target(%77 : memref<1x512xf32, #tpu.memory_space<vmem>>) target_semaphore(%79 : memref<!tpu.dma_semaphore, #tpu.memory_space<semaphore_mem>>)
    %c0_48 = arith.constant 0 : index
    %80 = memref.load %arg0[%c0_48] : memref<16xi32, #tpu.memory_space<smem>>
    %c0_i32_49 = arith.constant 0 : i32
    %c0_i32_50 = arith.constant 0 : i32
    %81 = tpu.memref_slice %arg1[%80, %c0_i32_50] : memref<16x512xf32, #tpu.memory_space<any>> -> memref<1x512xf32, #tpu.memory_space<any>>
    %c0_i32_51 = arith.constant 0 : i32
    %c0_i32_52 = arith.constant 0 : i32
    %82 = tpu.memref_slice %arg13[%c0_i32_51, %c0_i32_52] : memref<16x512xf32, #tpu.memory_space<vmem>> -> memref<1x512xf32, #tpu.memory_space<vmem>>
    %83 = tpu.memref_slice %arg15[%c0_i32_49] : memref<16x!tpu.dma_semaphore, #tpu.memory_space<semaphore_mem>> -> memref<1x!tpu.dma_semaphore, #tpu.memory_space<semaphore_mem>>
    %84 = tpu.memref_squeeze %83 : memref<1x!tpu.dma_semaphore, #tpu.memory_space<semaphore_mem>> -> memref<!tpu.dma_semaphore, #tpu.memory_space<semaphore_mem>>
    tpu.wait_dma2 semaphore(%84 : memref<!tpu.dma_semaphore, #tpu.memory_space<semaphore_mem>>) src(%81 : memref<1x512xf32, #tpu.memory_space<any>>) dst(%82 : memref<1x512xf32, #tpu.memory_space<vmem>>)
    %c1_53 = arith.constant 1 : index
    %85 = memref.load %arg0[%c1_53] : memref<16xi32, #tpu.memory_space<smem>>
    %c1_i32_54 = arith.constant 1 : i32
    %c0_i32_55 = arith.constant 0 : i32
    %86 = tpu.memref_slice %arg1[%85, %c0_i32_55] : memref<16x512xf32, #tpu.memory_space<any>> -> memref<1x512xf32, #tpu.memory_space<any>>
    %c1_i32_56 = arith.constant 1 : i32
    %c0_i32_57 = arith.constant 0 : i32
    %87 = tpu.memref_slice %arg13[%c1_i32_56, %c0_i32_57] : memref<16x512xf32, #tpu.memory_space<vmem>> -> memref<1x512xf32, #tpu.memory_space<vmem>>
    %88 = tpu.memref_slice %arg15[%c1_i32_54] : memref<16x!tpu.dma_semaphore, #tpu.memory_space<semaphore_mem>> -> memref<1x!tpu.dma_semaphore, #tpu.memory_space<semaphore_mem>>
    %89 = tpu.memref_squeeze %88 : memref<1x!tpu.dma_semaphore, #tpu.memory_space<semaphore_mem>> -> memref<!tpu.dma_semaphore, #tpu.memory_space<semaphore_mem>>
    tpu.wait_dma2 semaphore(%89 : memref<!tpu.dma_semaphore, #tpu.memory_space<semaphore_mem>>) src(%86 : memref<1x512xf32, #tpu.memory_space<any>>) dst(%87 : memref<1x512xf32, #tpu.memory_space<vmem>>)
    %c2_58 = arith.constant 2 : index
    %90 = memref.load %arg0[%c2_58] : memref<16xi32, #tpu.memory_space<smem>>
    %c2_i32_59 = arith.constant 2 : i32
    %c0_i32_60 = arith.constant 0 : i32
    %91 = tpu.memref_slice %arg1[%90, %c0_i32_60] : memref<16x512xf32, #tpu.memory_space<any>> -> memref<1x512xf32, #tpu.memory_space<any>>
    %c2_i32_61 = arith.constant 2 : i32
    %c0_i32_62 = arith.constant 0 : i32
    %92 = tpu.memref_slice %arg13[%c2_i32_61, %c0_i32_62] : memref<16x512xf32, #tpu.memory_space<vmem>> -> memref<1x512xf32, #tpu.memory_space<vmem>>
    %93 = tpu.memref_slice %arg15[%c2_i32_59] : memref<16x!tpu.dma_semaphore, #tpu.memory_space<semaphore_mem>> -> memref<1x!tpu.dma_semaphore, #tpu.memory_space<semaphore_mem>>
    %94 = tpu.memref_squeeze %93 : memref<1x!tpu.dma_semaphore, #tpu.memory_space<semaphore_mem>> -> memref<!tpu.dma_semaphore, #tpu.memory_space<semaphore_mem>>
    tpu.wait_dma2 semaphore(%94 : memref<!tpu.dma_semaphore, #tpu.memory_space<semaphore_mem>>) src(%91 : memref<1x512xf32, #tpu.memory_space<any>>) dst(%92 : memref<1x512xf32, #tpu.memory_space<vmem>>)
    %c3_63 = arith.constant 3 : index
    %95 = memref.load %arg0[%c3_63] : memref<16xi32, #tpu.memory_space<smem>>
    %c3_i32_64 = arith.constant 3 : i32
    %c0_i32_65 = arith.constant 0 : i32
    %96 = tpu.memref_slice %arg1[%95, %c0_i32_65] : memref<16x512xf32, #tpu.memory_space<any>> -> memref<1x512xf32, #tpu.memory_space<any>>
    %c3_i32_66 = arith.constant 3 : i32
    %c0_i32_67 = arith.constant 0 : i32
    %97 = tpu.memref_slice %arg13[%c3_i32_66, %c0_i32_67] : memref<16x512xf32, #tpu.memory_space<vmem>> -> memref<1x512xf32, #tpu.memory_space<vmem>>
    %98 = tpu.memref_slice %arg15[%c3_i32_64] : memref<16x!tpu.dma_semaphore, #tpu.memory_space<semaphore_mem>> -> memref<1x!tpu.dma_semaphore, #tpu.memory_space<semaphore_mem>>
    %99 = tpu.memref_squeeze %98 : memref<1x!tpu.dma_semaphore, #tpu.memory_space<semaphore_mem>> -> memref<!tpu.dma_semaphore, #tpu.memory_space<semaphore_mem>>
    tpu.wait_dma2 semaphore(%99 : memref<!tpu.dma_semaphore, #tpu.memory_space<semaphore_mem>>) src(%96 : memref<1x512xf32, #tpu.memory_space<any>>) dst(%97 : memref<1x512xf32, #tpu.memory_space<vmem>>)
    %c4_68 = arith.constant 4 : index
    %100 = memref.load %arg0[%c4_68] : memref<16xi32, #tpu.memory_space<smem>>
    %c4_i32_69 = arith.constant 4 : i32
    %c0_i32_70 = arith.constant 0 : i32
    %101 = tpu.memref_slice %arg1[%100, %c0_i32_70] : memref<16x512xf32, #tpu.memory_space<any>> -> memref<1x512xf32, #tpu.memory_space<any>>
    %c4_i32_71 = arith.constant 4 : i32
    %c0_i32_72 = arith.constant 0 : i32
    %102 = tpu.memref_slice %arg13[%c4_i32_71, %c0_i32_72] : memref<16x512xf32, #tpu.memory_space<vmem>> -> memref<1x512xf32, #tpu.memory_space<vmem>>
    %103 = tpu.memref_slice %arg15[%c4_i32_69] : memref<16x!tpu.dma_semaphore, #tpu.memory_space<semaphore_mem>> -> memref<1x!tpu.dma_semaphore, #tpu.memory_space<semaphore_mem>>
    %104 = tpu.memref_squeeze %103 : memref<1x!tpu.dma_semaphore, #tpu.memory_space<semaphore_mem>> -> memref<!tpu.dma_semaphore, #tpu.memory_space<semaphore_mem>>
    tpu.wait_dma2 semaphore(%104 : memref<!tpu.dma_semaphore, #tpu.memory_space<semaphore_mem>>) src(%101 : memref<1x512xf32, #tpu.memory_space<any>>) dst(%102 : memref<1x512xf32, #tpu.memory_space<vmem>>)
    %c5_73 = arith.constant 5 : index
    %105 = memref.load %arg0[%c5_73] : memref<16xi32, #tpu.memory_space<smem>>
    %c5_i32_74 = arith.constant 5 : i32
    %c0_i32_75 = arith.constant 0 : i32
    %106 = tpu.memref_slice %arg1[%105, %c0_i32_75] : memref<16x512xf32, #tpu.memory_space<any>> -> memref<1x512xf32, #tpu.memory_space<any>>
    %c5_i32_76 = arith.constant 5 : i32
    %c0_i32_77 = arith.constant 0 : i32
    %107 = tpu.memref_slice %arg13[%c5_i32_76, %c0_i32_77] : memref<16x512xf32, #tpu.memory_space<vmem>> -> memref<1x512xf32, #tpu.memory_space<vmem>>
    %108 = tpu.memref_slice %arg15[%c5_i32_74] : memref<16x!tpu.dma_semaphore, #tpu.memory_space<semaphore_mem>> -> memref<1x!tpu.dma_semaphore, #tpu.memory_space<semaphore_mem>>
    %109 = tpu.memref_squeeze %108 : memref<1x!tpu.dma_semaphore, #tpu.memory_space<semaphore_mem>> -> memref<!tpu.dma_semaphore, #tpu.memory_space<semaphore_mem>>
    tpu.wait_dma2 semaphore(%109 : memref<!tpu.dma_semaphore, #tpu.memory_space<semaphore_mem>>) src(%106 : memref<1x512xf32, #tpu.memory_space<any>>) dst(%107 : memref<1x512xf32, #tpu.memory_space<vmem>>)
    %c6_78 = arith.constant 6 : index
    %110 = memref.load %arg0[%c6_78] : memref<16xi32, #tpu.memory_space<smem>>
    %c6_i32_79 = arith.constant 6 : i32
    %c0_i32_80 = arith.constant 0 : i32
    %111 = tpu.memref_slice %arg1[%110, %c0_i32_80] : memref<16x512xf32, #tpu.memory_space<any>> -> memref<1x512xf32, #tpu.memory_space<any>>
    %c6_i32_81 = arith.constant 6 : i32
    %c0_i32_82 = arith.constant 0 : i32
    %112 = tpu.memref_slice %arg13[%c6_i32_81, %c0_i32_82] : memref<16x512xf32, #tpu.memory_space<vmem>> -> memref<1x512xf32, #tpu.memory_space<vmem>>
    %113 = tpu.memref_slice %arg15[%c6_i32_79] : memref<16x!tpu.dma_semaphore, #tpu.memory_space<semaphore_mem>> -> memref<1x!tpu.dma_semaphore, #tpu.memory_space<semaphore_mem>>
    %114 = tpu.memref_squeeze %113 : memref<1x!tpu.dma_semaphore, #tpu.memory_space<semaphore_mem>> -> memref<!tpu.dma_semaphore, #tpu.memory_space<semaphore_mem>>
    tpu.wait_dma2 semaphore(%114 : memref<!tpu.dma_semaphore, #tpu.memory_space<semaphore_mem>>) src(%111 : memref<1x512xf32, #tpu.memory_space<any>>) dst(%112 : memref<1x512xf32, #tpu.memory_space<vmem>>)
    %c7_83 = arith.constant 7 : index
    %115 = memref.load %arg0[%c7_83] : memref<16xi32, #tpu.memory_space<smem>>
    %c7_i32_84 = arith.constant 7 : i32
    %c0_i32_85 = arith.constant 0 : i32
    %116 = tpu.memref_slice %arg1[%115, %c0_i32_85] : memref<16x512xf32, #tpu.memory_space<any>> -> memref<1x512xf32, #tpu.memory_space<any>>
    %c7_i32_86 = arith.constant 7 : i32
    %c0_i32_87 = arith.constant 0 : i32
    %117 = tpu.memref_slice %arg13[%c7_i32_86, %c0_i32_87] : memref<16x512xf32, #tpu.memory_space<vmem>> -> memref<1x512xf32, #tpu.memory_space<vmem>>
    %118 = tpu.memref_slice %arg15[%c7_i32_84] : memref<16x!tpu.dma_semaphore, #tpu.memory_space<semaphore_mem>> -> memref<1x!tpu.dma_semaphore, #tpu.memory_space<semaphore_mem>>
    %119 = tpu.memref_squeeze %118 : memref<1x!tpu.dma_semaphore, #tpu.memory_space<semaphore_mem>> -> memref<!tpu.dma_semaphore, #tpu.memory_space<semaphore_mem>>
    tpu.wait_dma2 semaphore(%119 : memref<!tpu.dma_semaphore, #tpu.memory_space<semaphore_mem>>) src(%116 : memref<1x512xf32, #tpu.memory_space<any>>) dst(%117 : memref<1x512xf32, #tpu.memory_space<vmem>>)
    %c8_88 = arith.constant 8 : index
    %120 = memref.load %arg0[%c8_88] : memref<16xi32, #tpu.memory_space<smem>>
    %c8_i32_89 = arith.constant 8 : i32
    %c0_i32_90 = arith.constant 0 : i32
    %121 = tpu.memref_slice %arg1[%120, %c0_i32_90] : memref<16x512xf32, #tpu.memory_space<any>> -> memref<1x512xf32, #tpu.memory_space<any>>
    %c8_i32_91 = arith.constant 8 : i32
    %c0_i32_92 = arith.constant 0 : i32
    %122 = tpu.memref_slice %arg13[%c8_i32_91, %c0_i32_92] : memref<16x512xf32, #tpu.memory_space<vmem>> -> memref<1x512xf32, #tpu.memory_space<vmem>>
    %123 = tpu.memref_slice %arg15[%c8_i32_89] : memref<16x!tpu.dma_semaphore, #tpu.memory_space<semaphore_mem>> -> memref<1x!tpu.dma_semaphore, #tpu.memory_space<semaphore_mem>>
    %124 = tpu.memref_squeeze %123 : memref<1x!tpu.dma_semaphore, #tpu.memory_space<semaphore_mem>> -> memref<!tpu.dma_semaphore, #tpu.memory_space<semaphore_mem>>
    tpu.wait_dma2 semaphore(%124 : memref<!tpu.dma_semaphore, #tpu.memory_space<semaphore_mem>>) src(%121 : memref<1x512xf32, #tpu.memory_space<any>>) dst(%122 : memref<1x512xf32, #tpu.memory_space<vmem>>)
    %c9_93 = arith.constant 9 : index
    %125 = memref.load %arg0[%c9_93] : memref<16xi32, #tpu.memory_space<smem>>
    %c9_i32_94 = arith.constant 9 : i32
    %c0_i32_95 = arith.constant 0 : i32
    %126 = tpu.memref_slice %arg1[%125, %c0_i32_95] : memref<16x512xf32, #tpu.memory_space<any>> -> memref<1x512xf32, #tpu.memory_space<any>>
    %c9_i32_96 = arith.constant 9 : i32
    %c0_i32_97 = arith.constant 0 : i32
    %127 = tpu.memref_slice %arg13[%c9_i32_96, %c0_i32_97] : memref<16x512xf32, #tpu.memory_space<vmem>> -> memref<1x512xf32, #tpu.memory_space<vmem>>
    %128 = tpu.memref_slice %arg15[%c9_i32_94] : memref<16x!tpu.dma_semaphore, #tpu.memory_space<semaphore_mem>> -> memref<1x!tpu.dma_semaphore, #tpu.memory_space<semaphore_mem>>
    %129 = tpu.memref_squeeze %128 : memref<1x!tpu.dma_semaphore, #tpu.memory_space<semaphore_mem>> -> memref<!tpu.dma_semaphore, #tpu.memory_space<semaphore_mem>>
    tpu.wait_dma2 semaphore(%129 : memref<!tpu.dma_semaphore, #tpu.memory_space<semaphore_mem>>) src(%126 : memref<1x512xf32, #tpu.memory_space<any>>) dst(%127 : memref<1x512xf32, #tpu.memory_space<vmem>>)
    %c10_98 = arith.constant 10 : index
    %130 = memref.load %arg0[%c10_98] : memref<16xi32, #tpu.memory_space<smem>>
    %c10_i32_99 = arith.constant 10 : i32
    %c0_i32_100 = arith.constant 0 : i32
    %131 = tpu.memref_slice %arg1[%130, %c0_i32_100] : memref<16x512xf32, #tpu.memory_space<any>> -> memref<1x512xf32, #tpu.memory_space<any>>
    %c10_i32_101 = arith.constant 10 : i32
    %c0_i32_102 = arith.constant 0 : i32
    %132 = tpu.memref_slice %arg13[%c10_i32_101, %c0_i32_102] : memref<16x512xf32, #tpu.memory_space<vmem>> -> memref<1x512xf32, #tpu.memory_space<vmem>>
    %133 = tpu.memref_slice %arg15[%c10_i32_99] : memref<16x!tpu.dma_semaphore, #tpu.memory_space<semaphore_mem>> -> memref<1x!tpu.dma_semaphore, #tpu.memory_space<semaphore_mem>>
    %134 = tpu.memref_squeeze %133 : memref<1x!tpu.dma_semaphore, #tpu.memory_space<semaphore_mem>> -> memref<!tpu.dma_semaphore, #tpu.memory_space<semaphore_mem>>
    tpu.wait_dma2 semaphore(%134 : memref<!tpu.dma_semaphore, #tpu.memory_space<semaphore_mem>>) src(%131 : memref<1x512xf32, #tpu.memory_space<any>>) dst(%132 : memref<1x512xf32, #tpu.memory_space<vmem>>)
    %c11_103 = arith.constant 11 : index
    %135 = memref.load %arg0[%c11_103] : memref<16xi32, #tpu.memory_space<smem>>
    %c11_i32_104 = arith.constant 11 : i32
    %c0_i32_105 = arith.constant 0 : i32
    %136 = tpu.memref_slice %arg1[%135, %c0_i32_105] : memref<16x512xf32, #tpu.memory_space<any>> -> memref<1x512xf32, #tpu.memory_space<any>>
    %c11_i32_106 = arith.constant 11 : i32
    %c0_i32_107 = arith.constant 0 : i32
    %137 = tpu.memref_slice %arg13[%c11_i32_106, %c0_i32_107] : memref<16x512xf32, #tpu.memory_space<vmem>> -> memref<1x512xf32, #tpu.memory_space<vmem>>
    %138 = tpu.memref_slice %arg15[%c11_i32_104] : memref<16x!tpu.dma_semaphore, #tpu.memory_space<semaphore_mem>> -> memref<1x!tpu.dma_semaphore, #tpu.memory_space<semaphore_mem>>
    %139 = tpu.memref_squeeze %138 : memref<1x!tpu.dma_semaphore, #tpu.memory_space<semaphore_mem>> -> memref<!tpu.dma_semaphore, #tpu.memory_space<semaphore_mem>>
    tpu.wait_dma2 semaphore(%139 : memref<!tpu.dma_semaphore, #tpu.memory_space<semaphore_mem>>) src(%136 : memref<1x512xf32, #tpu.memory_space<any>>) dst(%137 : memref<1x512xf32, #tpu.memory_space<vmem>>)
    %c12_108 = arith.constant 12 : index
    %140 = memref.load %arg0[%c12_108] : memref<16xi32, #tpu.memory_space<smem>>
    %c12_i32_109 = arith.constant 12 : i32
    %c0_i32_110 = arith.constant 0 : i32
    %141 = tpu.memref_slice %arg1[%140, %c0_i32_110] : memref<16x512xf32, #tpu.memory_space<any>> -> memref<1x512xf32, #tpu.memory_space<any>>
    %c12_i32_111 = arith.constant 12 : i32
    %c0_i32_112 = arith.constant 0 : i32
    %142 = tpu.memref_slice %arg13[%c12_i32_111, %c0_i32_112] : memref<16x512xf32, #tpu.memory_space<vmem>> -> memref<1x512xf32, #tpu.memory_space<vmem>>
    %143 = tpu.memref_slice %arg15[%c12_i32_109] : memref<16x!tpu.dma_semaphore, #tpu.memory_space<semaphore_mem>> -> memref<1x!tpu.dma_semaphore, #tpu.memory_space<semaphore_mem>>
    %144 = tpu.memref_squeeze %143 : memref<1x!tpu.dma_semaphore, #tpu.memory_space<semaphore_mem>> -> memref<!tpu.dma_semaphore, #tpu.memory_space<semaphore_mem>>
    tpu.wait_dma2 semaphore(%144 : memref<!tpu.dma_semaphore, #tpu.memory_space<semaphore_mem>>) src(%141 : memref<1x512xf32, #tpu.memory_space<any>>) dst(%142 : memref<1x512xf32, #tpu.memory_space<vmem>>)
    %c13_113 = arith.constant 13 : index
    %145 = memref.load %arg0[%c13_113] : memref<16xi32, #tpu.memory_space<smem>>
    %c13_i32_114 = arith.constant 13 : i32
    %c0_i32_115 = arith.constant 0 : i32
    %146 = tpu.memref_slice %arg1[%145, %c0_i32_115] : memref<16x512xf32, #tpu.memory_space<any>> -> memref<1x512xf32, #tpu.memory_space<any>>
    %c13_i32_116 = arith.constant 13 : i32
    %c0_i32_117 = arith.constant 0 : i32
    %147 = tpu.memref_slice %arg13[%c13_i32_116, %c0_i32_117] : memref<16x512xf32, #tpu.memory_space<vmem>> -> memref<1x512xf32, #tpu.memory_space<vmem>>
    %148 = tpu.memref_slice %arg15[%c13_i32_114] : memref<16x!tpu.dma_semaphore, #tpu.memory_space<semaphore_mem>> -> memref<1x!tpu.dma_semaphore, #tpu.memory_space<semaphore_mem>>
    %149 = tpu.memref_squeeze %148 : memref<1x!tpu.dma_semaphore, #tpu.memory_space<semaphore_mem>> -> memref<!tpu.dma_semaphore, #tpu.memory_space<semaphore_mem>>
    tpu.wait_dma2 semaphore(%149 : memref<!tpu.dma_semaphore, #tpu.memory_space<semaphore_mem>>) src(%146 : memref<1x512xf32, #tpu.memory_space<any>>) dst(%147 : memref<1x512xf32, #tpu.memory_space<vmem>>)
    %c14_118 = arith.constant 14 : index
    %150 = memref.load %arg0[%c14_118] : memref<16xi32, #tpu.memory_space<smem>>
    %c14_i32_119 = arith.constant 14 : i32
    %c0_i32_120 = arith.constant 0 : i32
    %151 = tpu.memref_slice %arg1[%150, %c0_i32_120] : memref<16x512xf32, #tpu.memory_space<any>> -> memref<1x512xf32, #tpu.memory_space<any>>
    %c14_i32_121 = arith.constant 14 : i32
    %c0_i32_122 = arith.constant 0 : i32
    %152 = tpu.memref_slice %arg13[%c14_i32_121, %c0_i32_122] : memref<16x512xf32, #tpu.memory_space<vmem>> -> memref<1x512xf32, #tpu.memory_space<vmem>>
    %153 = tpu.memref_slice %arg15[%c14_i32_119] : memref<16x!tpu.dma_semaphore, #tpu.memory_space<semaphore_mem>> -> memref<1x!tpu.dma_semaphore, #tpu.memory_space<semaphore_mem>>
    %154 = tpu.memref_squeeze %153 : memref<1x!tpu.dma_semaphore, #tpu.memory_space<semaphore_mem>> -> memref<!tpu.dma_semaphore, #tpu.memory_space<semaphore_mem>>
    tpu.wait_dma2 semaphore(%154 : memref<!tpu.dma_semaphore, #tpu.memory_space<semaphore_mem>>) src(%151 : memref<1x512xf32, #tpu.memory_space<any>>) dst(%152 : memref<1x512xf32, #tpu.memory_space<vmem>>)
    %c15_123 = arith.constant 15 : index
    %155 = memref.load %arg0[%c15_123] : memref<16xi32, #tpu.memory_space<smem>>
    %c15_i32_124 = arith.constant 15 : i32
    %c0_i32_125 = arith.constant 0 : i32
    %156 = tpu.memref_slice %arg1[%155, %c0_i32_125] : memref<16x512xf32, #tpu.memory_space<any>> -> memref<1x512xf32, #tpu.memory_space<any>>
    %c15_i32_126 = arith.constant 15 : i32
    %c0_i32_127 = arith.constant 0 : i32
    %157 = tpu.memref_slice %arg13[%c15_i32_126, %c0_i32_127] : memref<16x512xf32, #tpu.memory_space<vmem>> -> memref<1x512xf32, #tpu.memory_space<vmem>>
    %158 = tpu.memref_slice %arg15[%c15_i32_124] : memref<16x!tpu.dma_semaphore, #tpu.memory_space<semaphore_mem>> -> memref<1x!tpu.dma_semaphore, #tpu.memory_space<semaphore_mem>>
    %159 = tpu.memref_squeeze %158 : memref<1x!tpu.dma_semaphore, #tpu.memory_space<semaphore_mem>> -> memref<!tpu.dma_semaphore, #tpu.memory_space<semaphore_mem>>
    tpu.wait_dma2 semaphore(%159 : memref<!tpu.dma_semaphore, #tpu.memory_space<semaphore_mem>>) src(%156 : memref<1x512xf32, #tpu.memory_space<any>>) dst(%157 : memref<1x512xf32, #tpu.memory_space<vmem>>)
    %c0_128 = arith.constant 0 : index
    %c0_129 = arith.constant 0 : index
    %160 = vector.load %arg4[%c0_128, %c0_129] : memref<32x512xf32, #tpu.memory_space<vmem>>, vector<32x512xf32>
    %c0_130 = arith.constant 0 : index
    %c0_131 = arith.constant 0 : index
    %c0_132 = arith.constant 0 : index
    %161 = vector.load %arg2[%c0_130, %c0_131, %c0_132] : memref<2x2x128xf32, #tpu.memory_space<vmem>>, vector<1x2x128xf32>
    %162 = vector.shape_cast %161 : vector<1x2x128xf32> to vector<2x128xf32>
    %c0_133 = arith.constant 0 : index
    %c0_134 = arith.constant 0 : index
    %c0_135 = arith.constant 0 : index
    %163 = vector.load %arg3[%c0_133, %c0_134, %c0_135] : memref<2x2x128xf32, #tpu.memory_space<vmem>>, vector<1x2x128xf32>
    %164 = vector.shape_cast %163 : vector<1x2x128xf32> to vector<2x128xf32>
    %c0_136 = arith.constant 0 : index
    %c0_137 = arith.constant 0 : index
    %165 = vector.load %arg13[%c0_136, %c0_137] : memref<16x512xf32, #tpu.memory_space<vmem>>, vector<2x512xf32>
    %166 = vector.extract_strided_slice %162 {offsets = [0, 0], sizes = [2, 32], strides = [1, 1]} : vector<2x128xf32> to vector<2x32xf32>
    %cst = arith.constant dense<0.000000e+00> : vector<2x512xf32>
    %167 = tpu.matmul %166, %160, %cst {dimension_numbers = #tpu.dot_dimension_numbers<[1], [0], [0], [1], [0, 0, 1, 1], [], []>} : vector<2x32xf32>, vector<32x512xf32>, vector<2x512xf32> -> vector<2x512xf32>
    %168 = arith.addf %165, %167 : vector<2x512xf32>
    %169 = vector.extract_strided_slice %168 {offsets = [0, 0], sizes = [2, 128], strides = [1, 1]} : vector<2x512xf32> to vector<2x128xf32>
    %cst_138 = arith.constant 5.000000e-01 : f32
    %170 = vector.broadcast %cst_138 : f32 to vector<2x128xf32>
    %171 = arith.mulf %170, %169 : vector<2x128xf32>
    %172 = math.tanh %171 : vector<2x128xf32>
    %cst_139 = arith.constant 5.000000e-01 : f32
    %173 = vector.broadcast %cst_139 : f32 to vector<2x128xf32>
    %174 = arith.mulf %173, %172 : vector<2x128xf32>
    %cst_140 = arith.constant 5.000000e-01 : f32
    %175 = vector.broadcast %cst_140 : f32 to vector<2x128xf32>
    %176 = arith.addf %174, %175 : vector<2x128xf32>
    %177 = vector.extract_strided_slice %168 {offsets = [0, 128], sizes = [2, 128], strides = [1, 1]} : vector<2x512xf32> to vector<2x128xf32>
    %cst_141 = arith.constant 5.000000e-01 : f32
    %178 = vector.broadcast %cst_141 : f32 to vector<2x128xf32>
    %179 = arith.mulf %178, %177 : vector<2x128xf32>
    %180 = math.tanh %179 : vector<2x128xf32>
    %cst_142 = arith.constant 5.000000e-01 : f32
    %181 = vector.broadcast %cst_142 : f32 to vector<2x128xf32>
    %182 = arith.mulf %181, %180 : vector<2x128xf32>
    %cst_143 = arith.constant 5.000000e-01 : f32
    %183 = vector.broadcast %cst_143 : f32 to vector<2x128xf32>
    %184 = arith.addf %182, %183 : vector<2x128xf32>
    %185 = vector.extract_strided_slice %168 {offsets = [0, 256], sizes = [2, 128], strides = [1, 1]} : vector<2x512xf32> to vector<2x128xf32>
    %186 = math.tanh %185 : vector<2x128xf32>
    %187 = vector.extract_strided_slice %168 {offsets = [0, 384], sizes = [2, 128], strides = [1, 1]} : vector<2x512xf32> to vector<2x128xf32>
    %cst_144 = arith.constant 5.000000e-01 : f32
    %188 = vector.broadcast %cst_144 : f32 to vector<2x128xf32>
    %189 = arith.mulf %188, %187 : vector<2x128xf32>
    %190 = math.tanh %189 : vector<2x128xf32>
    %cst_145 = arith.constant 5.000000e-01 : f32
    %191 = vector.broadcast %cst_145 : f32 to vector<2x128xf32>
    %192 = arith.mulf %191, %190 : vector<2x128xf32>
    %cst_146 = arith.constant 5.000000e-01 : f32
    %193 = vector.broadcast %cst_146 : f32 to vector<2x128xf32>
    %194 = arith.addf %192, %193 : vector<2x128xf32>
    %195 = arith.mulf %184, %164 : vector<2x128xf32>
    %196 = arith.mulf %176, %186 : vector<2x128xf32>
    %197 = arith.addf %195, %196 : vector<2x128xf32>
    %198 = math.tanh %197 : vector<2x128xf32>
    %199 = arith.mulf %194, %198 : vector<2x128xf32>
    %c0_147 = arith.constant 0 : index
    %c0_148 = arith.constant 0 : index
    %200 = vector.load %arg14[%c0_147, %c0_148] : memref<16x128xf32, #tpu.memory_space<vmem>>, vector<2x128xf32>
    tpu.vector_store %arg14[%c0_147, %c0_148], %199 {strides = array<i32>} : memref<16x128xf32, #tpu.memory_space<vmem>>, vector<2x128xf32>,
    %c2_149 = arith.constant 2 : index
    %c0_150 = arith.constant 0 : index
    %201 = vector.load %arg13[%c2_149, %c0_150] : memref<16x512xf32, #tpu.memory_space<vmem>>, vector<2x512xf32>
    %202 = vector.extract_strided_slice %199 {offsets = [0, 0], sizes = [2, 32], strides = [1, 1]} : vector<2x128xf32> to vector<2x32xf32>
    %cst_151 = arith.constant dense<0.000000e+00> : vector<2x512xf32>
    %203 = tpu.matmul %202, %160, %cst_151 {dimension_numbers = #tpu.dot_dimension_numbers<[1], [0], [0], [1], [0, 0, 1, 1], [], []>} : vector<2x32xf32>, vector<32x512xf32>, vector<2x512xf32> -> vector<2x512xf32>
    %204 = arith.addf %201, %203 : vector<2x512xf32>
    %205 = vector.extract_strided_slice %204 {offsets = [0, 0], sizes = [2, 128], strides = [1, 1]} : vector<2x512xf32> to vector<2x128xf32>
    %cst_152 = arith.constant 5.000000e-01 : f32
    %206 = vector.broadcast %cst_152 : f32 to vector<2x128xf32>
    %207 = arith.mulf %206, %205 : vector<2x128xf32>
    %208 = math.tanh %207 : vector<2x128xf32>
    %cst_153 = arith.constant 5.000000e-01 : f32
    %209 = vector.broadcast %cst_153 : f32 to vector<2x128xf32>
    %210 = arith.mulf %209, %208 : vector<2x128xf32>
    %cst_154 = arith.constant 5.000000e-01 : f32
    %211 = vector.broadcast %cst_154 : f32 to vector<2x128xf32>
    %212 = arith.addf %210, %211 : vector<2x128xf32>
    %213 = vector.extract_strided_slice %204 {offsets = [0, 128], sizes = [2, 128], strides = [1, 1]} : vector<2x512xf32> to vector<2x128xf32>
    %cst_155 = arith.constant 5.000000e-01 : f32
    %214 = vector.broadcast %cst_155 : f32 to vector<2x128xf32>
    %215 = arith.mulf %214, %213 : vector<2x128xf32>
    %216 = math.tanh %215 : vector<2x128xf32>
    %cst_156 = arith.constant 5.000000e-01 : f32
    %217 = vector.broadcast %cst_156 : f32 to vector<2x128xf32>
    %218 = arith.mulf %217, %216 : vector<2x128xf32>
    %cst_157 = arith.constant 5.000000e-01 : f32
    %219 = vector.broadcast %cst_157 : f32 to vector<2x128xf32>
    %220 = arith.addf %218, %219 : vector<2x128xf32>
    %221 = vector.extract_strided_slice %204 {offsets = [0, 256], sizes = [2, 128], strides = [1, 1]} : vector<2x512xf32> to vector<2x128xf32>
    %222 = math.tanh %221 : vector<2x128xf32>
    %223 = vector.extract_strided_slice %204 {offsets = [0, 384], sizes = [2, 128], strides = [1, 1]} : vector<2x512xf32> to vector<2x128xf32>
    %cst_158 = arith.constant 5.000000e-01 : f32
    %224 = vector.broadcast %cst_158 : f32 to vector<2x128xf32>
    %225 = arith.mulf %224, %223 : vector<2x128xf32>
    %226 = math.tanh %225 : vector<2x128xf32>
    %cst_159 = arith.constant 5.000000e-01 : f32
    %227 = vector.broadcast %cst_159 : f32 to vector<2x128xf32>
    %228 = arith.mulf %227, %226 : vector<2x128xf32>
    %cst_160 = arith.constant 5.000000e-01 : f32
    %229 = vector.broadcast %cst_160 : f32 to vector<2x128xf32>
    %230 = arith.addf %228, %229 : vector<2x128xf32>
    %231 = arith.mulf %220, %197 : vector<2x128xf32>
    %232 = arith.mulf %212, %222 : vector<2x128xf32>
    %233 = arith.addf %231, %232 : vector<2x128xf32>
    %234 = math.tanh %233 : vector<2x128xf32>
    %235 = arith.mulf %230, %234 : vector<2x128xf32>
    %c2_161 = arith.constant 2 : index
    %c0_162 = arith.constant 0 : index
    %236 = vector.load %arg14[%c2_161, %c0_162] : memref<16x128xf32, #tpu.memory_space<vmem>>, vector<2x128xf32>
    tpu.vector_store %arg14[%c2_161, %c0_162], %235 {strides = array<i32>} : memref<16x128xf32, #tpu.memory_space<vmem>>, vector<2x128xf32>,
    %c4_163 = arith.constant 4 : index
    %c0_164 = arith.constant 0 : index
    %237 = vector.load %arg13[%c4_163, %c0_164] : memref<16x512xf32, #tpu.memory_space<vmem>>, vector<2x512xf32>
    %238 = vector.extract_strided_slice %235 {offsets = [0, 0], sizes = [2, 32], strides = [1, 1]} : vector<2x128xf32> to vector<2x32xf32>
    %cst_165 = arith.constant dense<0.000000e+00> : vector<2x512xf32>
    %239 = tpu.matmul %238, %160, %cst_165 {dimension_numbers = #tpu.dot_dimension_numbers<[1], [0], [0], [1], [0, 0, 1, 1], [], []>} : vector<2x32xf32>, vector<32x512xf32>, vector<2x512xf32> -> vector<2x512xf32>
    %240 = arith.addf %237, %239 : vector<2x512xf32>
    %241 = vector.extract_strided_slice %240 {offsets = [0, 0], sizes = [2, 128], strides = [1, 1]} : vector<2x512xf32> to vector<2x128xf32>
    %cst_166 = arith.constant 5.000000e-01 : f32
    %242 = vector.broadcast %cst_166 : f32 to vector<2x128xf32>
    %243 = arith.mulf %242, %241 : vector<2x128xf32>
    %244 = math.tanh %243 : vector<2x128xf32>
    %cst_167 = arith.constant 5.000000e-01 : f32
    %245 = vector.broadcast %cst_167 : f32 to vector<2x128xf32>
    %246 = arith.mulf %245, %244 : vector<2x128xf32>
    %cst_168 = arith.constant 5.000000e-01 : f32
    %247 = vector.broadcast %cst_168 : f32 to vector<2x128xf32>
    %248 = arith.addf %246, %247 : vector<2x128xf32>
    %249 = vector.extract_strided_slice %240 {offsets = [0, 128], sizes = [2, 128], strides = [1, 1]} : vector<2x512xf32> to vector<2x128xf32>
    %cst_169 = arith.constant 5.000000e-01 : f32
    %250 = vector.broadcast %cst_169 : f32 to vector<2x128xf32>
    %251 = arith.mulf %250, %249 : vector<2x128xf32>
    %252 = math.tanh %251 : vector<2x128xf32>
    %cst_170 = arith.constant 5.000000e-01 : f32
    %253 = vector.broadcast %cst_170 : f32 to vector<2x128xf32>
    %254 = arith.mulf %253, %252 : vector<2x128xf32>
    %cst_171 = arith.constant 5.000000e-01 : f32
    %255 = vector.broadcast %cst_171 : f32 to vector<2x128xf32>
    %256 = arith.addf %254, %255 : vector<2x128xf32>
    %257 = vector.extract_strided_slice %240 {offsets = [0, 256], sizes = [2, 128], strides = [1, 1]} : vector<2x512xf32> to vector<2x128xf32>
    %258 = math.tanh %257 : vector<2x128xf32>
    %259 = vector.extract_strided_slice %240 {offsets = [0, 384], sizes = [2, 128], strides = [1, 1]} : vector<2x512xf32> to vector<2x128xf32>
    %cst_172 = arith.constant 5.000000e-01 : f32
    %260 = vector.broadcast %cst_172 : f32 to vector<2x128xf32>
    %261 = arith.mulf %260, %259 : vector<2x128xf32>
    %262 = math.tanh %261 : vector<2x128xf32>
    %cst_173 = arith.constant 5.000000e-01 : f32
    %263 = vector.broadcast %cst_173 : f32 to vector<2x128xf32>
    %264 = arith.mulf %263, %262 : vector<2x128xf32>
    %cst_174 = arith.constant 5.000000e-01 : f32
    %265 = vector.broadcast %cst_174 : f32 to vector<2x128xf32>
    %266 = arith.addf %264, %265 : vector<2x128xf32>
    %267 = arith.mulf %256, %233 : vector<2x128xf32>
    %268 = arith.mulf %248, %258 : vector<2x128xf32>
    %269 = arith.addf %267, %268 : vector<2x128xf32>
    %270 = math.tanh %269 : vector<2x128xf32>
    %271 = arith.mulf %266, %270 : vector<2x128xf32>
    %c4_175 = arith.constant 4 : index
    %c0_176 = arith.constant 0 : index
    %272 = vector.load %arg14[%c4_175, %c0_176] : memref<16x128xf32, #tpu.memory_space<vmem>>, vector<2x128xf32>
    tpu.vector_store %arg14[%c4_175, %c0_176], %271 {strides = array<i32>} : memref<16x128xf32, #tpu.memory_space<vmem>>, vector<2x128xf32>,
    %c6_177 = arith.constant 6 : index
    %c0_178 = arith.constant 0 : index
    %273 = vector.load %arg13[%c6_177, %c0_178] : memref<16x512xf32, #tpu.memory_space<vmem>>, vector<2x512xf32>
    %274 = vector.extract_strided_slice %271 {offsets = [0, 0], sizes = [2, 32], strides = [1, 1]} : vector<2x128xf32> to vector<2x32xf32>
    %cst_179 = arith.constant dense<0.000000e+00> : vector<2x512xf32>
    %275 = tpu.matmul %274, %160, %cst_179 {dimension_numbers = #tpu.dot_dimension_numbers<[1], [0], [0], [1], [0, 0, 1, 1], [], []>} : vector<2x32xf32>, vector<32x512xf32>, vector<2x512xf32> -> vector<2x512xf32>
    %276 = arith.addf %273, %275 : vector<2x512xf32>
    %277 = vector.extract_strided_slice %276 {offsets = [0, 0], sizes = [2, 128], strides = [1, 1]} : vector<2x512xf32> to vector<2x128xf32>
    %cst_180 = arith.constant 5.000000e-01 : f32
    %278 = vector.broadcast %cst_180 : f32 to vector<2x128xf32>
    %279 = arith.mulf %278, %277 : vector<2x128xf32>
    %280 = math.tanh %279 : vector<2x128xf32>
    %cst_181 = arith.constant 5.000000e-01 : f32
    %281 = vector.broadcast %cst_181 : f32 to vector<2x128xf32>
    %282 = arith.mulf %281, %280 : vector<2x128xf32>
    %cst_182 = arith.constant 5.000000e-01 : f32
    %283 = vector.broadcast %cst_182 : f32 to vector<2x128xf32>
    %284 = arith.addf %282, %283 : vector<2x128xf32>
    %285 = vector.extract_strided_slice %276 {offsets = [0, 128], sizes = [2, 128], strides = [1, 1]} : vector<2x512xf32> to vector<2x128xf32>
    %cst_183 = arith.constant 5.000000e-01 : f32
    %286 = vector.broadcast %cst_183 : f32 to vector<2x128xf32>
    %287 = arith.mulf %286, %285 : vector<2x128xf32>
    %288 = math.tanh %287 : vector<2x128xf32>
    %cst_184 = arith.constant 5.000000e-01 : f32
    %289 = vector.broadcast %cst_184 : f32 to vector<2x128xf32>
    %290 = arith.mulf %289, %288 : vector<2x128xf32>
    %cst_185 = arith.constant 5.000000e-01 : f32
    %291 = vector.broadcast %cst_185 : f32 to vector<2x128xf32>
    %292 = arith.addf %290, %291 : vector<2x128xf32>
    %293 = vector.extract_strided_slice %276 {offsets = [0, 256], sizes = [2, 128], strides = [1, 1]} : vector<2x512xf32> to vector<2x128xf32>
    %294 = math.tanh %293 : vector<2x128xf32>
    %295 = vector.extract_strided_slice %276 {offsets = [0, 384], sizes = [2, 128], strides = [1, 1]} : vector<2x512xf32> to vector<2x128xf32>
    %cst_186 = arith.constant 5.000000e-01 : f32
    %296 = vector.broadcast %cst_186 : f32 to vector<2x128xf32>
    %297 = arith.mulf %296, %295 : vector<2x128xf32>
    %298 = math.tanh %297 : vector<2x128xf32>
    %cst_187 = arith.constant 5.000000e-01 : f32
    %299 = vector.broadcast %cst_187 : f32 to vector<2x128xf32>
    %300 = arith.mulf %299, %298 : vector<2x128xf32>
    %cst_188 = arith.constant 5.000000e-01 : f32
    %301 = vector.broadcast %cst_188 : f32 to vector<2x128xf32>
    %302 = arith.addf %300, %301 : vector<2x128xf32>
    %303 = arith.mulf %292, %269 : vector<2x128xf32>
    %304 = arith.mulf %284, %294 : vector<2x128xf32>
    %305 = arith.addf %303, %304 : vector<2x128xf32>
    %306 = math.tanh %305 : vector<2x128xf32>
    %307 = arith.mulf %302, %306 : vector<2x128xf32>
    %c6_189 = arith.constant 6 : index
    %c0_190 = arith.constant 0 : index
    %308 = vector.load %arg14[%c6_189, %c0_190] : memref<16x128xf32, #tpu.memory_space<vmem>>, vector<2x128xf32>
    tpu.vector_store %arg14[%c6_189, %c0_190], %307 {strides = array<i32>} : memref<16x128xf32, #tpu.memory_space<vmem>>, vector<2x128xf32>,
    %c8_191 = arith.constant 8 : index
    %c0_192 = arith.constant 0 : index
    %309 = vector.load %arg13[%c8_191, %c0_192] : memref<16x512xf32, #tpu.memory_space<vmem>>, vector<2x512xf32>
    %310 = vector.extract_strided_slice %307 {offsets = [0, 0], sizes = [2, 32], strides = [1, 1]} : vector<2x128xf32> to vector<2x32xf32>
    %cst_193 = arith.constant dense<0.000000e+00> : vector<2x512xf32>
    %311 = tpu.matmul %310, %160, %cst_193 {dimension_numbers = #tpu.dot_dimension_numbers<[1], [0], [0], [1], [0, 0, 1, 1], [], []>} : vector<2x32xf32>, vector<32x512xf32>, vector<2x512xf32> -> vector<2x512xf32>
    %312 = arith.addf %309, %311 : vector<2x512xf32>
    %313 = vector.extract_strided_slice %312 {offsets = [0, 0], sizes = [2, 128], strides = [1, 1]} : vector<2x512xf32> to vector<2x128xf32>
    %cst_194 = arith.constant 5.000000e-01 : f32
    %314 = vector.broadcast %cst_194 : f32 to vector<2x128xf32>
    %315 = arith.mulf %314, %313 : vector<2x128xf32>
    %316 = math.tanh %315 : vector<2x128xf32>
    %cst_195 = arith.constant 5.000000e-01 : f32
    %317 = vector.broadcast %cst_195 : f32 to vector<2x128xf32>
    %318 = arith.mulf %317, %316 : vector<2x128xf32>
    %cst_196 = arith.constant 5.000000e-01 : f32
    %319 = vector.broadcast %cst_196 : f32 to vector<2x128xf32>
    %320 = arith.addf %318, %319 : vector<2x128xf32>
    %321 = vector.extract_strided_slice %312 {offsets = [0, 128], sizes = [2, 128], strides = [1, 1]} : vector<2x512xf32> to vector<2x128xf32>
    %cst_197 = arith.constant 5.000000e-01 : f32
    %322 = vector.broadcast %cst_197 : f32 to vector<2x128xf32>
    %323 = arith.mulf %322, %321 : vector<2x128xf32>
    %324 = math.tanh %323 : vector<2x128xf32>
    %cst_198 = arith.constant 5.000000e-01 : f32
    %325 = vector.broadcast %cst_198 : f32 to vector<2x128xf32>
    %326 = arith.mulf %325, %324 : vector<2x128xf32>
    %cst_199 = arith.constant 5.000000e-01 : f32
    %327 = vector.broadcast %cst_199 : f32 to vector<2x128xf32>
    %328 = arith.addf %326, %327 : vector<2x128xf32>
    %329 = vector.extract_strided_slice %312 {offsets = [0, 256], sizes = [2, 128], strides = [1, 1]} : vector<2x512xf32> to vector<2x128xf32>
    %330 = math.tanh %329 : vector<2x128xf32>
    %331 = vector.extract_strided_slice %312 {offsets = [0, 384], sizes = [2, 128], strides = [1, 1]} : vector<2x512xf32> to vector<2x128xf32>
    %cst_200 = arith.constant 5.000000e-01 : f32
    %332 = vector.broadcast %cst_200 : f32 to vector<2x128xf32>
    %333 = arith.mulf %332, %331 : vector<2x128xf32>
    %334 = math.tanh %333 : vector<2x128xf32>
    %cst_201 = arith.constant 5.000000e-01 : f32
    %335 = vector.broadcast %cst_201 : f32 to vector<2x128xf32>
    %336 = arith.mulf %335, %334 : vector<2x128xf32>
    %cst_202 = arith.constant 5.000000e-01 : f32
    %337 = vector.broadcast %cst_202 : f32 to vector<2x128xf32>
    %338 = arith.addf %336, %337 : vector<2x128xf32>
    %339 = arith.mulf %328, %305 : vector<2x128xf32>
    %340 = arith.mulf %320, %330 : vector<2x128xf32>
    %341 = arith.addf %339, %340 : vector<2x128xf32>
    %342 = math.tanh %341 : vector<2x128xf32>
    %343 = arith.mulf %338, %342 : vector<2x128xf32>
    %c8_203 = arith.constant 8 : index
    %c0_204 = arith.constant 0 : index
    %344 = vector.load %arg14[%c8_203, %c0_204] : memref<16x128xf32, #tpu.memory_space<vmem>>, vector<2x128xf32>
    tpu.vector_store %arg14[%c8_203, %c0_204], %343 {strides = array<i32>} : memref<16x128xf32, #tpu.memory_space<vmem>>, vector<2x128xf32>,
    %c10_205 = arith.constant 10 : index
    %c0_206 = arith.constant 0 : index
    %345 = vector.load %arg13[%c10_205, %c0_206] : memref<16x512xf32, #tpu.memory_space<vmem>>, vector<2x512xf32>
    %346 = vector.extract_strided_slice %343 {offsets = [0, 0], sizes = [2, 32], strides = [1, 1]} : vector<2x128xf32> to vector<2x32xf32>
    %cst_207 = arith.constant dense<0.000000e+00> : vector<2x512xf32>
    %347 = tpu.matmul %346, %160, %cst_207 {dimension_numbers = #tpu.dot_dimension_numbers<[1], [0], [0], [1], [0, 0, 1, 1], [], []>} : vector<2x32xf32>, vector<32x512xf32>, vector<2x512xf32> -> vector<2x512xf32>
    %348 = arith.addf %345, %347 : vector<2x512xf32>
    %349 = vector.extract_strided_slice %348 {offsets = [0, 0], sizes = [2, 128], strides = [1, 1]} : vector<2x512xf32> to vector<2x128xf32>
    %cst_208 = arith.constant 5.000000e-01 : f32
    %350 = vector.broadcast %cst_208 : f32 to vector<2x128xf32>
    %351 = arith.mulf %350, %349 : vector<2x128xf32>
    %352 = math.tanh %351 : vector<2x128xf32>
    %cst_209 = arith.constant 5.000000e-01 : f32
    %353 = vector.broadcast %cst_209 : f32 to vector<2x128xf32>
    %354 = arith.mulf %353, %352 : vector<2x128xf32>
    %cst_210 = arith.constant 5.000000e-01 : f32
    %355 = vector.broadcast %cst_210 : f32 to vector<2x128xf32>
    %356 = arith.addf %354, %355 : vector<2x128xf32>
    %357 = vector.extract_strided_slice %348 {offsets = [0, 128], sizes = [2, 128], strides = [1, 1]} : vector<2x512xf32> to vector<2x128xf32>
    %cst_211 = arith.constant 5.000000e-01 : f32
    %358 = vector.broadcast %cst_211 : f32 to vector<2x128xf32>
    %359 = arith.mulf %358, %357 : vector<2x128xf32>
    %360 = math.tanh %359 : vector<2x128xf32>
    %cst_212 = arith.constant 5.000000e-01 : f32
    %361 = vector.broadcast %cst_212 : f32 to vector<2x128xf32>
    %362 = arith.mulf %361, %360 : vector<2x128xf32>
    %cst_213 = arith.constant 5.000000e-01 : f32
    %363 = vector.broadcast %cst_213 : f32 to vector<2x128xf32>
    %364 = arith.addf %362, %363 : vector<2x128xf32>
    %365 = vector.extract_strided_slice %348 {offsets = [0, 256], sizes = [2, 128], strides = [1, 1]} : vector<2x512xf32> to vector<2x128xf32>
    %366 = math.tanh %365 : vector<2x128xf32>
    %367 = vector.extract_strided_slice %348 {offsets = [0, 384], sizes = [2, 128], strides = [1, 1]} : vector<2x512xf32> to vector<2x128xf32>
    %cst_214 = arith.constant 5.000000e-01 : f32
    %368 = vector.broadcast %cst_214 : f32 to vector<2x128xf32>
    %369 = arith.mulf %368, %367 : vector<2x128xf32>
    %370 = math.tanh %369 : vector<2x128xf32>
    %cst_215 = arith.constant 5.000000e-01 : f32
    %371 = vector.broadcast %cst_215 : f32 to vector<2x128xf32>
    %372 = arith.mulf %371, %370 : vector<2x128xf32>
    %cst_216 = arith.constant 5.000000e-01 : f32
    %373 = vector.broadcast %cst_216 : f32 to vector<2x128xf32>
    %374 = arith.addf %372, %373 : vector<2x128xf32>
    %375 = arith.mulf %364, %341 : vector<2x128xf32>
    %376 = arith.mulf %356, %366 : vector<2x128xf32>
    %377 = arith.addf %375, %376 : vector<2x128xf32>
    %378 = math.tanh %377 : vector<2x128xf32>
    %379 = arith.mulf %374, %378 : vector<2x128xf32>
    %c10_217 = arith.constant 10 : index
    %c0_218 = arith.constant 0 : index
    %380 = vector.load %arg14[%c10_217, %c0_218] : memref<16x128xf32, #tpu.memory_space<vmem>>, vector<2x128xf32>
    tpu.vector_store %arg14[%c10_217, %c0_218], %379 {strides = array<i32>} : memref<16x128xf32, #tpu.memory_space<vmem>>, vector<2x128xf32>,
    %c12_219 = arith.constant 12 : index
    %c0_220 = arith.constant 0 : index
    %381 = vector.load %arg13[%c12_219, %c0_220] : memref<16x512xf32, #tpu.memory_space<vmem>>, vector<2x512xf32>
    %382 = vector.extract_strided_slice %379 {offsets = [0, 0], sizes = [2, 32], strides = [1, 1]} : vector<2x128xf32> to vector<2x32xf32>
    %cst_221 = arith.constant dense<0.000000e+00> : vector<2x512xf32>
    %383 = tpu.matmul %382, %160, %cst_221 {dimension_numbers = #tpu.dot_dimension_numbers<[1], [0], [0], [1], [0, 0, 1, 1], [], []>} : vector<2x32xf32>, vector<32x512xf32>, vector<2x512xf32> -> vector<2x512xf32>
    %384 = arith.addf %381, %383 : vector<2x512xf32>
    %385 = vector.extract_strided_slice %384 {offsets = [0, 0], sizes = [2, 128], strides = [1, 1]} : vector<2x512xf32> to vector<2x128xf32>
    %cst_222 = arith.constant 5.000000e-01 : f32
    %386 = vector.broadcast %cst_222 : f32 to vector<2x128xf32>
    %387 = arith.mulf %386, %385 : vector<2x128xf32>
    %388 = math.tanh %387 : vector<2x128xf32>
    %cst_223 = arith.constant 5.000000e-01 : f32
    %389 = vector.broadcast %cst_223 : f32 to vector<2x128xf32>
    %390 = arith.mulf %389, %388 : vector<2x128xf32>
    %cst_224 = arith.constant 5.000000e-01 : f32
    %391 = vector.broadcast %cst_224 : f32 to vector<2x128xf32>
    %392 = arith.addf %390, %391 : vector<2x128xf32>
    %393 = vector.extract_strided_slice %384 {offsets = [0, 128], sizes = [2, 128], strides = [1, 1]} : vector<2x512xf32> to vector<2x128xf32>
    %cst_225 = arith.constant 5.000000e-01 : f32
    %394 = vector.broadcast %cst_225 : f32 to vector<2x128xf32>
    %395 = arith.mulf %394, %393 : vector<2x128xf32>
    %396 = math.tanh %395 : vector<2x128xf32>
    %cst_226 = arith.constant 5.000000e-01 : f32
    %397 = vector.broadcast %cst_226 : f32 to vector<2x128xf32>
    %398 = arith.mulf %397, %396 : vector<2x128xf32>
    %cst_227 = arith.constant 5.000000e-01 : f32
    %399 = vector.broadcast %cst_227 : f32 to vector<2x128xf32>
    %400 = arith.addf %398, %399 : vector<2x128xf32>
    %401 = vector.extract_strided_slice %384 {offsets = [0, 256], sizes = [2, 128], strides = [1, 1]} : vector<2x512xf32> to vector<2x128xf32>
    %402 = math.tanh %401 : vector<2x128xf32>
    %403 = vector.extract_strided_slice %384 {offsets = [0, 384], sizes = [2, 128], strides = [1, 1]} : vector<2x512xf32> to vector<2x128xf32>
    %cst_228 = arith.constant 5.000000e-01 : f32
    %404 = vector.broadcast %cst_228 : f32 to vector<2x128xf32>
    %405 = arith.mulf %404, %403 : vector<2x128xf32>
    %406 = math.tanh %405 : vector<2x128xf32>
    %cst_229 = arith.constant 5.000000e-01 : f32
    %407 = vector.broadcast %cst_229 : f32 to vector<2x128xf32>
    %408 = arith.mulf %407, %406 : vector<2x128xf32>
    %cst_230 = arith.constant 5.000000e-01 : f32
    %409 = vector.broadcast %cst_230 : f32 to vector<2x128xf32>
    %410 = arith.addf %408, %409 : vector<2x128xf32>
    %411 = arith.mulf %400, %377 : vector<2x128xf32>
    %412 = arith.mulf %392, %402 : vector<2x128xf32>
    %413 = arith.addf %411, %412 : vector<2x128xf32>
    %414 = math.tanh %413 : vector<2x128xf32>
    %415 = arith.mulf %410, %414 : vector<2x128xf32>
    %c12_231 = arith.constant 12 : index
    %c0_232 = arith.constant 0 : index
    %416 = vector.load %arg14[%c12_231, %c0_232] : memref<16x128xf32, #tpu.memory_space<vmem>>, vector<2x128xf32>
    tpu.vector_store %arg14[%c12_231, %c0_232], %415 {strides = array<i32>} : memref<16x128xf32, #tpu.memory_space<vmem>>, vector<2x128xf32>,
    %c14_233 = arith.constant 14 : index
    %c0_234 = arith.constant 0 : index
    %417 = vector.load %arg13[%c14_233, %c0_234] : memref<16x512xf32, #tpu.memory_space<vmem>>, vector<2x512xf32>
    %418 = vector.extract_strided_slice %415 {offsets = [0, 0], sizes = [2, 32], strides = [1, 1]} : vector<2x128xf32> to vector<2x32xf32>
    %cst_235 = arith.constant dense<0.000000e+00> : vector<2x512xf32>
    %419 = tpu.matmul %418, %160, %cst_235 {dimension_numbers = #tpu.dot_dimension_numbers<[1], [0], [0], [1], [0, 0, 1, 1], [], []>} : vector<2x32xf32>, vector<32x512xf32>, vector<2x512xf32> -> vector<2x512xf32>
    %420 = arith.addf %417, %419 : vector<2x512xf32>
    %421 = vector.extract_strided_slice %420 {offsets = [0, 0], sizes = [2, 128], strides = [1, 1]} : vector<2x512xf32> to vector<2x128xf32>
    %cst_236 = arith.constant 5.000000e-01 : f32
    %422 = vector.broadcast %cst_236 : f32 to vector<2x128xf32>
    %423 = arith.mulf %422, %421 : vector<2x128xf32>
    %424 = math.tanh %423 : vector<2x128xf32>
    %cst_237 = arith.constant 5.000000e-01 : f32
    %425 = vector.broadcast %cst_237 : f32 to vector<2x128xf32>
    %426 = arith.mulf %425, %424 : vector<2x128xf32>
    %cst_238 = arith.constant 5.000000e-01 : f32
    %427 = vector.broadcast %cst_238 : f32 to vector<2x128xf32>
    %428 = arith.addf %426, %427 : vector<2x128xf32>
    %429 = vector.extract_strided_slice %420 {offsets = [0, 128], sizes = [2, 128], strides = [1, 1]} : vector<2x512xf32> to vector<2x128xf32>
    %cst_239 = arith.constant 5.000000e-01 : f32
    %430 = vector.broadcast %cst_239 : f32 to vector<2x128xf32>
    %431 = arith.mulf %430, %429 : vector<2x128xf32>
    %432 = math.tanh %431 : vector<2x128xf32>
    %cst_240 = arith.constant 5.000000e-01 : f32
    %433 = vector.broadcast %cst_240 : f32 to vector<2x128xf32>
    %434 = arith.mulf %433, %432 : vector<2x128xf32>
    %cst_241 = arith.constant 5.000000e-01 : f32
    %435 = vector.broadcast %cst_241 : f32 to vector<2x128xf32>
    %436 = arith.addf %434, %435 : vector<2x128xf32>
    %437 = vector.extract_strided_slice %420 {offsets = [0, 256], sizes = [2, 128], strides = [1, 1]} : vector<2x512xf32> to vector<2x128xf32>
    %438 = math.tanh %437 : vector<2x128xf32>
    %439 = vector.extract_strided_slice %420 {offsets = [0, 384], sizes = [2, 128], strides = [1, 1]} : vector<2x512xf32> to vector<2x128xf32>
    %cst_242 = arith.constant 5.000000e-01 : f32
    %440 = vector.broadcast %cst_242 : f32 to vector<2x128xf32>
    %441 = arith.mulf %440, %439 : vector<2x128xf32>
    %442 = math.tanh %441 : vector<2x128xf32>
    %cst_243 = arith.constant 5.000000e-01 : f32
    %443 = vector.broadcast %cst_243 : f32 to vector<2x128xf32>
    %444 = arith.mulf %443, %442 : vector<2x128xf32>
    %cst_244 = arith.constant 5.000000e-01 : f32
    %445 = vector.broadcast %cst_244 : f32 to vector<2x128xf32>
    %446 = arith.addf %444, %445 : vector<2x128xf32>
    %447 = arith.mulf %436, %413 : vector<2x128xf32>
    %448 = arith.mulf %428, %438 : vector<2x128xf32>
    %449 = arith.addf %447, %448 : vector<2x128xf32>
    %450 = math.tanh %449 : vector<2x128xf32>
    %451 = arith.mulf %446, %450 : vector<2x128xf32>
    %c14_245 = arith.constant 14 : index
    %c0_246 = arith.constant 0 : index
    %452 = vector.load %arg14[%c14_245, %c0_246] : memref<16x128xf32, #tpu.memory_space<vmem>>, vector<2x128xf32>
    tpu.vector_store %arg14[%c14_245, %c0_246], %451 {strides = array<i32>} : memref<16x128xf32, #tpu.memory_space<vmem>>, vector<2x128xf32>,
    %c0_247 = arith.constant 0 : index
    %c0_248 = arith.constant 0 : index
    %c0_249 = arith.constant 0 : index
    %453 = vector.load %arg11[%c0_247, %c0_248, %c0_249] : memref<2x2x128xf32, #tpu.memory_space<vmem>>, vector<1x2x128xf32>
    %454 = vector.shape_cast %453 : vector<1x2x128xf32> to vector<2x128xf32>
    %455 = vector.shape_cast %451 : vector<2x128xf32> to vector<1x2x128xf32>
    tpu.vector_store %arg11[%c0_247, %c0_248, %c0_249], %455 {strides = array<i32>} : memref<2x2x128xf32, #tpu.memory_space<vmem>>, vector<1x2x128xf32>,
    %c0_250 = arith.constant 0 : index
    %c0_251 = arith.constant 0 : index
    %c0_252 = arith.constant 0 : index
    %456 = vector.load %arg12[%c0_250, %c0_251, %c0_252] : memref<2x2x128xf32, #tpu.memory_space<vmem>>, vector<1x2x128xf32>
    %457 = vector.shape_cast %456 : vector<1x2x128xf32> to vector<2x128xf32>
    %458 = vector.shape_cast %449 : vector<2x128xf32> to vector<1x2x128xf32>
    tpu.vector_store %arg12[%c0_250, %c0_251, %c0_252], %458 {strides = array<i32>} : memref<2x2x128xf32, #tpu.memory_space<vmem>>, vector<1x2x128xf32>,
    %c0_253 = arith.constant 0 : index
    %c0_254 = arith.constant 0 : index
    %459 = vector.load %arg5[%c0_253, %c0_254] : memref<32x512xf32, #tpu.memory_space<vmem>>, vector<32x512xf32>
    %c0_255 = arith.constant 0 : index
    %c0_256 = arith.constant 0 : index
    %460 = vector.load %arg6[%c0_255, %c0_256] : memref<32x512xf32, #tpu.memory_space<vmem>>, vector<32x512xf32>
    %c0_257 = arith.constant 0 : index
    %c0_258 = arith.constant 0 : index
    %461 = vector.load %arg7[%c0_257, %c0_258] : memref<1x512xf32, #tpu.memory_space<vmem>>, vector<1x512xf32>
    %c0_259 = arith.constant 0 : index
    %c0_260 = arith.constant 0 : index
    %462 = vector.load %arg14[%c0_259, %c0_260] : memref<16x128xf32, #tpu.memory_space<vmem>>, vector<16x32xf32>
    %cst_261 = arith.constant dense<0.000000e+00> : vector<16x512xf32>
    %463 = tpu.matmul %462, %459, %cst_261 {dimension_numbers = #tpu.dot_dimension_numbers<[1], [0], [0], [1], [0, 0, 1, 1], [], []>} : vector<16x32xf32>, vector<32x512xf32>, vector<16x512xf32> -> vector<16x512xf32>
    %464 = vector.broadcast %461 : vector<1x512xf32> to vector<16x512xf32>
    %465 = arith.addf %463, %464 : vector<16x512xf32>
    %c0_262 = arith.constant 0 : index
    %c0_263 = arith.constant 0 : index
    %466 = vector.load %arg13[%c0_262, %c0_263] : memref<16x512xf32, #tpu.memory_space<vmem>>, vector<16x512xf32>
    tpu.vector_store %arg13[%c0_262, %c0_263], %465 {strides = array<i32>} : memref<16x512xf32, #tpu.memory_space<vmem>>, vector<16x512xf32>,
    %c1_264 = arith.constant 1 : index
    %c0_265 = arith.constant 0 : index
    %c0_266 = arith.constant 0 : index
    %467 = vector.load %arg2[%c1_264, %c0_265, %c0_266] : memref<2x2x128xf32, #tpu.memory_space<vmem>>, vector<1x2x128xf32>
    %468 = vector.shape_cast %467 : vector<1x2x128xf32> to vector<2x128xf32>
    %c1_267 = arith.constant 1 : index
    %c0_268 = arith.constant 0 : index
    %c0_269 = arith.constant 0 : index
    %469 = vector.load %arg3[%c1_267, %c0_268, %c0_269] : memref<2x2x128xf32, #tpu.memory_space<vmem>>, vector<1x2x128xf32>
    %470 = vector.shape_cast %469 : vector<1x2x128xf32> to vector<2x128xf32>
    %c0_270 = arith.constant 0 : index
    %c0_271 = arith.constant 0 : index
    %471 = vector.load %arg13[%c0_270, %c0_271] : memref<16x512xf32, #tpu.memory_space<vmem>>, vector<2x512xf32>
    %472 = vector.extract_strided_slice %468 {offsets = [0, 0], sizes = [2, 32], strides = [1, 1]} : vector<2x128xf32> to vector<2x32xf32>
    %cst_272 = arith.constant dense<0.000000e+00> : vector<2x512xf32>
    %473 = tpu.matmul %472, %460, %cst_272 {dimension_numbers = #tpu.dot_dimension_numbers<[1], [0], [0], [1], [0, 0, 1, 1], [], []>} : vector<2x32xf32>, vector<32x512xf32>, vector<2x512xf32> -> vector<2x512xf32>
    %474 = arith.addf %471, %473 : vector<2x512xf32>
    %475 = vector.extract_strided_slice %474 {offsets = [0, 0], sizes = [2, 128], strides = [1, 1]} : vector<2x512xf32> to vector<2x128xf32>
    %cst_273 = arith.constant 5.000000e-01 : f32
    %476 = vector.broadcast %cst_273 : f32 to vector<2x128xf32>
    %477 = arith.mulf %476, %475 : vector<2x128xf32>
    %478 = math.tanh %477 : vector<2x128xf32>
    %cst_274 = arith.constant 5.000000e-01 : f32
    %479 = vector.broadcast %cst_274 : f32 to vector<2x128xf32>
    %480 = arith.mulf %479, %478 : vector<2x128xf32>
    %cst_275 = arith.constant 5.000000e-01 : f32
    %481 = vector.broadcast %cst_275 : f32 to vector<2x128xf32>
    %482 = arith.addf %480, %481 : vector<2x128xf32>
    %483 = vector.extract_strided_slice %474 {offsets = [0, 128], sizes = [2, 128], strides = [1, 1]} : vector<2x512xf32> to vector<2x128xf32>
    %cst_276 = arith.constant 5.000000e-01 : f32
    %484 = vector.broadcast %cst_276 : f32 to vector<2x128xf32>
    %485 = arith.mulf %484, %483 : vector<2x128xf32>
    %486 = math.tanh %485 : vector<2x128xf32>
    %cst_277 = arith.constant 5.000000e-01 : f32
    %487 = vector.broadcast %cst_277 : f32 to vector<2x128xf32>
    %488 = arith.mulf %487, %486 : vector<2x128xf32>
    %cst_278 = arith.constant 5.000000e-01 : f32
    %489 = vector.broadcast %cst_278 : f32 to vector<2x128xf32>
    %490 = arith.addf %488, %489 : vector<2x128xf32>
    %491 = vector.extract_strided_slice %474 {offsets = [0, 256], sizes = [2, 128], strides = [1, 1]} : vector<2x512xf32> to vector<2x128xf32>
    %492 = math.tanh %491 : vector<2x128xf32>
    %493 = vector.extract_strided_slice %474 {offsets = [0, 384], sizes = [2, 128], strides = [1, 1]} : vector<2x512xf32> to vector<2x128xf32>
    %cst_279 = arith.constant 5.000000e-01 : f32
    %494 = vector.broadcast %cst_279 : f32 to vector<2x128xf32>
    %495 = arith.mulf %494, %493 : vector<2x128xf32>
    %496 = math.tanh %495 : vector<2x128xf32>
    %cst_280 = arith.constant 5.000000e-01 : f32
    %497 = vector.broadcast %cst_280 : f32 to vector<2x128xf32>
    %498 = arith.mulf %497, %496 : vector<2x128xf32>
    %cst_281 = arith.constant 5.000000e-01 : f32
    %499 = vector.broadcast %cst_281 : f32 to vector<2x128xf32>
    %500 = arith.addf %498, %499 : vector<2x128xf32>
    %501 = arith.mulf %490, %470 : vector<2x128xf32>
    %502 = arith.mulf %482, %492 : vector<2x128xf32>
    %503 = arith.addf %501, %502 : vector<2x128xf32>
    %504 = math.tanh %503 : vector<2x128xf32>
    %505 = arith.mulf %500, %504 : vector<2x128xf32>
    %c0_282 = arith.constant 0 : index
    %c0_283 = arith.constant 0 : index
    %506 = vector.load %arg14[%c0_282, %c0_283] : memref<16x128xf32, #tpu.memory_space<vmem>>, vector<2x128xf32>
    tpu.vector_store %arg14[%c0_282, %c0_283], %505 {strides = array<i32>} : memref<16x128xf32, #tpu.memory_space<vmem>>, vector<2x128xf32>,
    %c2_284 = arith.constant 2 : index
    %c0_285 = arith.constant 0 : index
    %507 = vector.load %arg13[%c2_284, %c0_285] : memref<16x512xf32, #tpu.memory_space<vmem>>, vector<2x512xf32>
    %508 = vector.extract_strided_slice %505 {offsets = [0, 0], sizes = [2, 32], strides = [1, 1]} : vector<2x128xf32> to vector<2x32xf32>
    %cst_286 = arith.constant dense<0.000000e+00> : vector<2x512xf32>
    %509 = tpu.matmul %508, %460, %cst_286 {dimension_numbers = #tpu.dot_dimension_numbers<[1], [0], [0], [1], [0, 0, 1, 1], [], []>} : vector<2x32xf32>, vector<32x512xf32>, vector<2x512xf32> -> vector<2x512xf32>
    %510 = arith.addf %507, %509 : vector<2x512xf32>
    %511 = vector.extract_strided_slice %510 {offsets = [0, 0], sizes = [2, 128], strides = [1, 1]} : vector<2x512xf32> to vector<2x128xf32>
    %cst_287 = arith.constant 5.000000e-01 : f32
    %512 = vector.broadcast %cst_287 : f32 to vector<2x128xf32>
    %513 = arith.mulf %512, %511 : vector<2x128xf32>
    %514 = math.tanh %513 : vector<2x128xf32>
    %cst_288 = arith.constant 5.000000e-01 : f32
    %515 = vector.broadcast %cst_288 : f32 to vector<2x128xf32>
    %516 = arith.mulf %515, %514 : vector<2x128xf32>
    %cst_289 = arith.constant 5.000000e-01 : f32
    %517 = vector.broadcast %cst_289 : f32 to vector<2x128xf32>
    %518 = arith.addf %516, %517 : vector<2x128xf32>
    %519 = vector.extract_strided_slice %510 {offsets = [0, 128], sizes = [2, 128], strides = [1, 1]} : vector<2x512xf32> to vector<2x128xf32>
    %cst_290 = arith.constant 5.000000e-01 : f32
    %520 = vector.broadcast %cst_290 : f32 to vector<2x128xf32>
    %521 = arith.mulf %520, %519 : vector<2x128xf32>
    %522 = math.tanh %521 : vector<2x128xf32>
    %cst_291 = arith.constant 5.000000e-01 : f32
    %523 = vector.broadcast %cst_291 : f32 to vector<2x128xf32>
    %524 = arith.mulf %523, %522 : vector<2x128xf32>
    %cst_292 = arith.constant 5.000000e-01 : f32
    %525 = vector.broadcast %cst_292 : f32 to vector<2x128xf32>
    %526 = arith.addf %524, %525 : vector<2x128xf32>
    %527 = vector.extract_strided_slice %510 {offsets = [0, 256], sizes = [2, 128], strides = [1, 1]} : vector<2x512xf32> to vector<2x128xf32>
    %528 = math.tanh %527 : vector<2x128xf32>
    %529 = vector.extract_strided_slice %510 {offsets = [0, 384], sizes = [2, 128], strides = [1, 1]} : vector<2x512xf32> to vector<2x128xf32>
    %cst_293 = arith.constant 5.000000e-01 : f32
    %530 = vector.broadcast %cst_293 : f32 to vector<2x128xf32>
    %531 = arith.mulf %530, %529 : vector<2x128xf32>
    %532 = math.tanh %531 : vector<2x128xf32>
    %cst_294 = arith.constant 5.000000e-01 : f32
    %533 = vector.broadcast %cst_294 : f32 to vector<2x128xf32>
    %534 = arith.mulf %533, %532 : vector<2x128xf32>
    %cst_295 = arith.constant 5.000000e-01 : f32
    %535 = vector.broadcast %cst_295 : f32 to vector<2x128xf32>
    %536 = arith.addf %534, %535 : vector<2x128xf32>
    %537 = arith.mulf %526, %503 : vector<2x128xf32>
    %538 = arith.mulf %518, %528 : vector<2x128xf32>
    %539 = arith.addf %537, %538 : vector<2x128xf32>
    %540 = math.tanh %539 : vector<2x128xf32>
    %541 = arith.mulf %536, %540 : vector<2x128xf32>
    %c2_296 = arith.constant 2 : index
    %c0_297 = arith.constant 0 : index
    %542 = vector.load %arg14[%c2_296, %c0_297] : memref<16x128xf32, #tpu.memory_space<vmem>>, vector<2x128xf32>
    tpu.vector_store %arg14[%c2_296, %c0_297], %541 {strides = array<i32>} : memref<16x128xf32, #tpu.memory_space<vmem>>, vector<2x128xf32>,
    %c4_298 = arith.constant 4 : index
    %c0_299 = arith.constant 0 : index
    %543 = vector.load %arg13[%c4_298, %c0_299] : memref<16x512xf32, #tpu.memory_space<vmem>>, vector<2x512xf32>
    %544 = vector.extract_strided_slice %541 {offsets = [0, 0], sizes = [2, 32], strides = [1, 1]} : vector<2x128xf32> to vector<2x32xf32>
    %cst_300 = arith.constant dense<0.000000e+00> : vector<2x512xf32>
    %545 = tpu.matmul %544, %460, %cst_300 {dimension_numbers = #tpu.dot_dimension_numbers<[1], [0], [0], [1], [0, 0, 1, 1], [], []>} : vector<2x32xf32>, vector<32x512xf32>, vector<2x512xf32> -> vector<2x512xf32>
    %546 = arith.addf %543, %545 : vector<2x512xf32>
    %547 = vector.extract_strided_slice %546 {offsets = [0, 0], sizes = [2, 128], strides = [1, 1]} : vector<2x512xf32> to vector<2x128xf32>
    %cst_301 = arith.constant 5.000000e-01 : f32
    %548 = vector.broadcast %cst_301 : f32 to vector<2x128xf32>
    %549 = arith.mulf %548, %547 : vector<2x128xf32>
    %550 = math.tanh %549 : vector<2x128xf32>
    %cst_302 = arith.constant 5.000000e-01 : f32
    %551 = vector.broadcast %cst_302 : f32 to vector<2x128xf32>
    %552 = arith.mulf %551, %550 : vector<2x128xf32>
    %cst_303 = arith.constant 5.000000e-01 : f32
    %553 = vector.broadcast %cst_303 : f32 to vector<2x128xf32>
    %554 = arith.addf %552, %553 : vector<2x128xf32>
    %555 = vector.extract_strided_slice %546 {offsets = [0, 128], sizes = [2, 128], strides = [1, 1]} : vector<2x512xf32> to vector<2x128xf32>
    %cst_304 = arith.constant 5.000000e-01 : f32
    %556 = vector.broadcast %cst_304 : f32 to vector<2x128xf32>
    %557 = arith.mulf %556, %555 : vector<2x128xf32>
    %558 = math.tanh %557 : vector<2x128xf32>
    %cst_305 = arith.constant 5.000000e-01 : f32
    %559 = vector.broadcast %cst_305 : f32 to vector<2x128xf32>
    %560 = arith.mulf %559, %558 : vector<2x128xf32>
    %cst_306 = arith.constant 5.000000e-01 : f32
    %561 = vector.broadcast %cst_306 : f32 to vector<2x128xf32>
    %562 = arith.addf %560, %561 : vector<2x128xf32>
    %563 = vector.extract_strided_slice %546 {offsets = [0, 256], sizes = [2, 128], strides = [1, 1]} : vector<2x512xf32> to vector<2x128xf32>
    %564 = math.tanh %563 : vector<2x128xf32>
    %565 = vector.extract_strided_slice %546 {offsets = [0, 384], sizes = [2, 128], strides = [1, 1]} : vector<2x512xf32> to vector<2x128xf32>
    %cst_307 = arith.constant 5.000000e-01 : f32
    %566 = vector.broadcast %cst_307 : f32 to vector<2x128xf32>
    %567 = arith.mulf %566, %565 : vector<2x128xf32>
    %568 = math.tanh %567 : vector<2x128xf32>
    %cst_308 = arith.constant 5.000000e-01 : f32
    %569 = vector.broadcast %cst_308 : f32 to vector<2x128xf32>
    %570 = arith.mulf %569, %568 : vector<2x128xf32>
    %cst_309 = arith.constant 5.000000e-01 : f32
    %571 = vector.broadcast %cst_309 : f32 to vector<2x128xf32>
    %572 = arith.addf %570, %571 : vector<2x128xf32>
    %573 = arith.mulf %562, %539 : vector<2x128xf32>
    %574 = arith.mulf %554, %564 : vector<2x128xf32>
    %575 = arith.addf %573, %574 : vector<2x128xf32>
    %576 = math.tanh %575 : vector<2x128xf32>
    %577 = arith.mulf %572, %576 : vector<2x128xf32>
    %c4_310 = arith.constant 4 : index
    %c0_311 = arith.constant 0 : index
    %578 = vector.load %arg14[%c4_310, %c0_311] : memref<16x128xf32, #tpu.memory_space<vmem>>, vector<2x128xf32>
    tpu.vector_store %arg14[%c4_310, %c0_311], %577 {strides = array<i32>} : memref<16x128xf32, #tpu.memory_space<vmem>>, vector<2x128xf32>,
    %c6_312 = arith.constant 6 : index
    %c0_313 = arith.constant 0 : index
    %579 = vector.load %arg13[%c6_312, %c0_313] : memref<16x512xf32, #tpu.memory_space<vmem>>, vector<2x512xf32>
    %580 = vector.extract_strided_slice %577 {offsets = [0, 0], sizes = [2, 32], strides = [1, 1]} : vector<2x128xf32> to vector<2x32xf32>
    %cst_314 = arith.constant dense<0.000000e+00> : vector<2x512xf32>
    %581 = tpu.matmul %580, %460, %cst_314 {dimension_numbers = #tpu.dot_dimension_numbers<[1], [0], [0], [1], [0, 0, 1, 1], [], []>} : vector<2x32xf32>, vector<32x512xf32>, vector<2x512xf32> -> vector<2x512xf32>
    %582 = arith.addf %579, %581 : vector<2x512xf32>
    %583 = vector.extract_strided_slice %582 {offsets = [0, 0], sizes = [2, 128], strides = [1, 1]} : vector<2x512xf32> to vector<2x128xf32>
    %cst_315 = arith.constant 5.000000e-01 : f32
    %584 = vector.broadcast %cst_315 : f32 to vector<2x128xf32>
    %585 = arith.mulf %584, %583 : vector<2x128xf32>
    %586 = math.tanh %585 : vector<2x128xf32>
    %cst_316 = arith.constant 5.000000e-01 : f32
    %587 = vector.broadcast %cst_316 : f32 to vector<2x128xf32>
    %588 = arith.mulf %587, %586 : vector<2x128xf32>
    %cst_317 = arith.constant 5.000000e-01 : f32
    %589 = vector.broadcast %cst_317 : f32 to vector<2x128xf32>
    %590 = arith.addf %588, %589 : vector<2x128xf32>
    %591 = vector.extract_strided_slice %582 {offsets = [0, 128], sizes = [2, 128], strides = [1, 1]} : vector<2x512xf32> to vector<2x128xf32>
    %cst_318 = arith.constant 5.000000e-01 : f32
    %592 = vector.broadcast %cst_318 : f32 to vector<2x128xf32>
    %593 = arith.mulf %592, %591 : vector<2x128xf32>
    %594 = math.tanh %593 : vector<2x128xf32>
    %cst_319 = arith.constant 5.000000e-01 : f32
    %595 = vector.broadcast %cst_319 : f32 to vector<2x128xf32>
    %596 = arith.mulf %595, %594 : vector<2x128xf32>
    %cst_320 = arith.constant 5.000000e-01 : f32
    %597 = vector.broadcast %cst_320 : f32 to vector<2x128xf32>
    %598 = arith.addf %596, %597 : vector<2x128xf32>
    %599 = vector.extract_strided_slice %582 {offsets = [0, 256], sizes = [2, 128], strides = [1, 1]} : vector<2x512xf32> to vector<2x128xf32>
    %600 = math.tanh %599 : vector<2x128xf32>
    %601 = vector.extract_strided_slice %582 {offsets = [0, 384], sizes = [2, 128], strides = [1, 1]} : vector<2x512xf32> to vector<2x128xf32>
    %cst_321 = arith.constant 5.000000e-01 : f32
    %602 = vector.broadcast %cst_321 : f32 to vector<2x128xf32>
    %603 = arith.mulf %602, %601 : vector<2x128xf32>
    %604 = math.tanh %603 : vector<2x128xf32>
    %cst_322 = arith.constant 5.000000e-01 : f32
    %605 = vector.broadcast %cst_322 : f32 to vector<2x128xf32>
    %606 = arith.mulf %605, %604 : vector<2x128xf32>
    %cst_323 = arith.constant 5.000000e-01 : f32
    %607 = vector.broadcast %cst_323 : f32 to vector<2x128xf32>
    %608 = arith.addf %606, %607 : vector<2x128xf32>
    %609 = arith.mulf %598, %575 : vector<2x128xf32>
    %610 = arith.mulf %590, %600 : vector<2x128xf32>
    %611 = arith.addf %609, %610 : vector<2x128xf32>
    %612 = math.tanh %611 : vector<2x128xf32>
    %613 = arith.mulf %608, %612 : vector<2x128xf32>
    %c6_324 = arith.constant 6 : index
    %c0_325 = arith.constant 0 : index
    %614 = vector.load %arg14[%c6_324, %c0_325] : memref<16x128xf32, #tpu.memory_space<vmem>>, vector<2x128xf32>
    tpu.vector_store %arg14[%c6_324, %c0_325], %613 {strides = array<i32>} : memref<16x128xf32, #tpu.memory_space<vmem>>, vector<2x128xf32>,
    %c8_326 = arith.constant 8 : index
    %c0_327 = arith.constant 0 : index
    %615 = vector.load %arg13[%c8_326, %c0_327] : memref<16x512xf32, #tpu.memory_space<vmem>>, vector<2x512xf32>
    %616 = vector.extract_strided_slice %613 {offsets = [0, 0], sizes = [2, 32], strides = [1, 1]} : vector<2x128xf32> to vector<2x32xf32>
    %cst_328 = arith.constant dense<0.000000e+00> : vector<2x512xf32>
    %617 = tpu.matmul %616, %460, %cst_328 {dimension_numbers = #tpu.dot_dimension_numbers<[1], [0], [0], [1], [0, 0, 1, 1], [], []>} : vector<2x32xf32>, vector<32x512xf32>, vector<2x512xf32> -> vector<2x512xf32>
    %618 = arith.addf %615, %617 : vector<2x512xf32>
    %619 = vector.extract_strided_slice %618 {offsets = [0, 0], sizes = [2, 128], strides = [1, 1]} : vector<2x512xf32> to vector<2x128xf32>
    %cst_329 = arith.constant 5.000000e-01 : f32
    %620 = vector.broadcast %cst_329 : f32 to vector<2x128xf32>
    %621 = arith.mulf %620, %619 : vector<2x128xf32>
    %622 = math.tanh %621 : vector<2x128xf32>
    %cst_330 = arith.constant 5.000000e-01 : f32
    %623 = vector.broadcast %cst_330 : f32 to vector<2x128xf32>
    %624 = arith.mulf %623, %622 : vector<2x128xf32>
    %cst_331 = arith.constant 5.000000e-01 : f32
    %625 = vector.broadcast %cst_331 : f32 to vector<2x128xf32>
    %626 = arith.addf %624, %625 : vector<2x128xf32>
    %627 = vector.extract_strided_slice %618 {offsets = [0, 128], sizes = [2, 128], strides = [1, 1]} : vector<2x512xf32> to vector<2x128xf32>
    %cst_332 = arith.constant 5.000000e-01 : f32
    %628 = vector.broadcast %cst_332 : f32 to vector<2x128xf32>
    %629 = arith.mulf %628, %627 : vector<2x128xf32>
    %630 = math.tanh %629 : vector<2x128xf32>
    %cst_333 = arith.constant 5.000000e-01 : f32
    %631 = vector.broadcast %cst_333 : f32 to vector<2x128xf32>
    %632 = arith.mulf %631, %630 : vector<2x128xf32>
    %cst_334 = arith.constant 5.000000e-01 : f32
    %633 = vector.broadcast %cst_334 : f32 to vector<2x128xf32>
    %634 = arith.addf %632, %633 : vector<2x128xf32>
    %635 = vector.extract_strided_slice %618 {offsets = [0, 256], sizes = [2, 128], strides = [1, 1]} : vector<2x512xf32> to vector<2x128xf32>
    %636 = math.tanh %635 : vector<2x128xf32>
    %637 = vector.extract_strided_slice %618 {offsets = [0, 384], sizes = [2, 128], strides = [1, 1]} : vector<2x512xf32> to vector<2x128xf32>
    %cst_335 = arith.constant 5.000000e-01 : f32
    %638 = vector.broadcast %cst_335 : f32 to vector<2x128xf32>
    %639 = arith.mulf %638, %637 : vector<2x128xf32>
    %640 = math.tanh %639 : vector<2x128xf32>
    %cst_336 = arith.constant 5.000000e-01 : f32
    %641 = vector.broadcast %cst_336 : f32 to vector<2x128xf32>
    %642 = arith.mulf %641, %640 : vector<2x128xf32>
    %cst_337 = arith.constant 5.000000e-01 : f32
    %643 = vector.broadcast %cst_337 : f32 to vector<2x128xf32>
    %644 = arith.addf %642, %643 : vector<2x128xf32>
    %645 = arith.mulf %634, %611 : vector<2x128xf32>
    %646 = arith.mulf %626, %636 : vector<2x128xf32>
    %647 = arith.addf %645, %646 : vector<2x128xf32>
    %648 = math.tanh %647 : vector<2x128xf32>
    %649 = arith.mulf %644, %648 : vector<2x128xf32>
    %c8_338 = arith.constant 8 : index
    %c0_339 = arith.constant 0 : index
    %650 = vector.load %arg14[%c8_338, %c0_339] : memref<16x128xf32, #tpu.memory_space<vmem>>, vector<2x128xf32>
    tpu.vector_store %arg14[%c8_338, %c0_339], %649 {strides = array<i32>} : memref<16x128xf32, #tpu.memory_space<vmem>>, vector<2x128xf32>,
    %c10_340 = arith.constant 10 : index
    %c0_341 = arith.constant 0 : index
    %651 = vector.load %arg13[%c10_340, %c0_341] : memref<16x512xf32, #tpu.memory_space<vmem>>, vector<2x512xf32>
    %652 = vector.extract_strided_slice %649 {offsets = [0, 0], sizes = [2, 32], strides = [1, 1]} : vector<2x128xf32> to vector<2x32xf32>
    %cst_342 = arith.constant dense<0.000000e+00> : vector<2x512xf32>
    %653 = tpu.matmul %652, %460, %cst_342 {dimension_numbers = #tpu.dot_dimension_numbers<[1], [0], [0], [1], [0, 0, 1, 1], [], []>} : vector<2x32xf32>, vector<32x512xf32>, vector<2x512xf32> -> vector<2x512xf32>
    %654 = arith.addf %651, %653 : vector<2x512xf32>
    %655 = vector.extract_strided_slice %654 {offsets = [0, 0], sizes = [2, 128], strides = [1, 1]} : vector<2x512xf32> to vector<2x128xf32>
    %cst_343 = arith.constant 5.000000e-01 : f32
    %656 = vector.broadcast %cst_343 : f32 to vector<2x128xf32>
    %657 = arith.mulf %656, %655 : vector<2x128xf32>
    %658 = math.tanh %657 : vector<2x128xf32>
    %cst_344 = arith.constant 5.000000e-01 : f32
    %659 = vector.broadcast %cst_344 : f32 to vector<2x128xf32>
    %660 = arith.mulf %659, %658 : vector<2x128xf32>
    %cst_345 = arith.constant 5.000000e-01 : f32
    %661 = vector.broadcast %cst_345 : f32 to vector<2x128xf32>
    %662 = arith.addf %660, %661 : vector<2x128xf32>
    %663 = vector.extract_strided_slice %654 {offsets = [0, 128], sizes = [2, 128], strides = [1, 1]} : vector<2x512xf32> to vector<2x128xf32>
    %cst_346 = arith.constant 5.000000e-01 : f32
    %664 = vector.broadcast %cst_346 : f32 to vector<2x128xf32>
    %665 = arith.mulf %664, %663 : vector<2x128xf32>
    %666 = math.tanh %665 : vector<2x128xf32>
    %cst_347 = arith.constant 5.000000e-01 : f32
    %667 = vector.broadcast %cst_347 : f32 to vector<2x128xf32>
    %668 = arith.mulf %667, %666 : vector<2x128xf32>
    %cst_348 = arith.constant 5.000000e-01 : f32
    %669 = vector.broadcast %cst_348 : f32 to vector<2x128xf32>
    %670 = arith.addf %668, %669 : vector<2x128xf32>
    %671 = vector.extract_strided_slice %654 {offsets = [0, 256], sizes = [2, 128], strides = [1, 1]} : vector<2x512xf32> to vector<2x128xf32>
    %672 = math.tanh %671 : vector<2x128xf32>
    %673 = vector.extract_strided_slice %654 {offsets = [0, 384], sizes = [2, 128], strides = [1, 1]} : vector<2x512xf32> to vector<2x128xf32>
    %cst_349 = arith.constant 5.000000e-01 : f32
    %674 = vector.broadcast %cst_349 : f32 to vector<2x128xf32>
    %675 = arith.mulf %674, %673 : vector<2x128xf32>
    %676 = math.tanh %675 : vector<2x128xf32>
    %cst_350 = arith.constant 5.000000e-01 : f32
    %677 = vector.broadcast %cst_350 : f32 to vector<2x128xf32>
    %678 = arith.mulf %677, %676 : vector<2x128xf32>
    %cst_351 = arith.constant 5.000000e-01 : f32
    %679 = vector.broadcast %cst_351 : f32 to vector<2x128xf32>
    %680 = arith.addf %678, %679 : vector<2x128xf32>
    %681 = arith.mulf %670, %647 : vector<2x128xf32>
    %682 = arith.mulf %662, %672 : vector<2x128xf32>
    %683 = arith.addf %681, %682 : vector<2x128xf32>
    %684 = math.tanh %683 : vector<2x128xf32>
    %685 = arith.mulf %680, %684 : vector<2x128xf32>
    %c10_352 = arith.constant 10 : index
    %c0_353 = arith.constant 0 : index
    %686 = vector.load %arg14[%c10_352, %c0_353] : memref<16x128xf32, #tpu.memory_space<vmem>>, vector<2x128xf32>
    tpu.vector_store %arg14[%c10_352, %c0_353], %685 {strides = array<i32>} : memref<16x128xf32, #tpu.memory_space<vmem>>, vector<2x128xf32>,
    %c12_354 = arith.constant 12 : index
    %c0_355 = arith.constant 0 : index
    %687 = vector.load %arg13[%c12_354, %c0_355] : memref<16x512xf32, #tpu.memory_space<vmem>>, vector<2x512xf32>
    %688 = vector.extract_strided_slice %685 {offsets = [0, 0], sizes = [2, 32], strides = [1, 1]} : vector<2x128xf32> to vector<2x32xf32>
    %cst_356 = arith.constant dense<0.000000e+00> : vector<2x512xf32>
    %689 = tpu.matmul %688, %460, %cst_356 {dimension_numbers = #tpu.dot_dimension_numbers<[1], [0], [0], [1], [0, 0, 1, 1], [], []>} : vector<2x32xf32>, vector<32x512xf32>, vector<2x512xf32> -> vector<2x512xf32>
    %690 = arith.addf %687, %689 : vector<2x512xf32>
    %691 = vector.extract_strided_slice %690 {offsets = [0, 0], sizes = [2, 128], strides = [1, 1]} : vector<2x512xf32> to vector<2x128xf32>
    %cst_357 = arith.constant 5.000000e-01 : f32
    %692 = vector.broadcast %cst_357 : f32 to vector<2x128xf32>
    %693 = arith.mulf %692, %691 : vector<2x128xf32>
    %694 = math.tanh %693 : vector<2x128xf32>
    %cst_358 = arith.constant 5.000000e-01 : f32
    %695 = vector.broadcast %cst_358 : f32 to vector<2x128xf32>
    %696 = arith.mulf %695, %694 : vector<2x128xf32>
    %cst_359 = arith.constant 5.000000e-01 : f32
    %697 = vector.broadcast %cst_359 : f32 to vector<2x128xf32>
    %698 = arith.addf %696, %697 : vector<2x128xf32>
    %699 = vector.extract_strided_slice %690 {offsets = [0, 128], sizes = [2, 128], strides = [1, 1]} : vector<2x512xf32> to vector<2x128xf32>
    %cst_360 = arith.constant 5.000000e-01 : f32
    %700 = vector.broadcast %cst_360 : f32 to vector<2x128xf32>
    %701 = arith.mulf %700, %699 : vector<2x128xf32>
    %702 = math.tanh %701 : vector<2x128xf32>
    %cst_361 = arith.constant 5.000000e-01 : f32
    %703 = vector.broadcast %cst_361 : f32 to vector<2x128xf32>
    %704 = arith.mulf %703, %702 : vector<2x128xf32>
    %cst_362 = arith.constant 5.000000e-01 : f32
    %705 = vector.broadcast %cst_362 : f32 to vector<2x128xf32>
    %706 = arith.addf %704, %705 : vector<2x128xf32>
    %707 = vector.extract_strided_slice %690 {offsets = [0, 256], sizes = [2, 128], strides = [1, 1]} : vector<2x512xf32> to vector<2x128xf32>
    %708 = math.tanh %707 : vector<2x128xf32>
    %709 = vector.extract_strided_slice %690 {offsets = [0, 384], sizes = [2, 128], strides = [1, 1]} : vector<2x512xf32> to vector<2x128xf32>
    %cst_363 = arith.constant 5.000000e-01 : f32
    %710 = vector.broadcast %cst_363 : f32 to vector<2x128xf32>
    %711 = arith.mulf %710, %709 : vector<2x128xf32>
    %712 = math.tanh %711 : vector<2x128xf32>
    %cst_364 = arith.constant 5.000000e-01 : f32
    %713 = vector.broadcast %cst_364 : f32 to vector<2x128xf32>
    %714 = arith.mulf %713, %712 : vector<2x128xf32>
    %cst_365 = arith.constant 5.000000e-01 : f32
    %715 = vector.broadcast %cst_365 : f32 to vector<2x128xf32>
    %716 = arith.addf %714, %715 : vector<2x128xf32>
    %717 = arith.mulf %706, %683 : vector<2x128xf32>
    %718 = arith.mulf %698, %708 : vector<2x128xf32>
    %719 = arith.addf %717, %718 : vector<2x128xf32>
    %720 = math.tanh %719 : vector<2x128xf32>
    %721 = arith.mulf %716, %720 : vector<2x128xf32>
    %c12_366 = arith.constant 12 : index
    %c0_367 = arith.constant 0 : index
    %722 = vector.load %arg14[%c12_366, %c0_367] : memref<16x128xf32, #tpu.memory_space<vmem>>, vector<2x128xf32>
    tpu.vector_store %arg14[%c12_366, %c0_367], %721 {strides = array<i32>} : memref<16x128xf32, #tpu.memory_space<vmem>>, vector<2x128xf32>,
    %c14_368 = arith.constant 14 : index
    %c0_369 = arith.constant 0 : index
    %723 = vector.load %arg13[%c14_368, %c0_369] : memref<16x512xf32, #tpu.memory_space<vmem>>, vector<2x512xf32>
    %724 = vector.extract_strided_slice %721 {offsets = [0, 0], sizes = [2, 32], strides = [1, 1]} : vector<2x128xf32> to vector<2x32xf32>
    %cst_370 = arith.constant dense<0.000000e+00> : vector<2x512xf32>
    %725 = tpu.matmul %724, %460, %cst_370 {dimension_numbers = #tpu.dot_dimension_numbers<[1], [0], [0], [1], [0, 0, 1, 1], [], []>} : vector<2x32xf32>, vector<32x512xf32>, vector<2x512xf32> -> vector<2x512xf32>
    %726 = arith.addf %723, %725 : vector<2x512xf32>
    %727 = vector.extract_strided_slice %726 {offsets = [0, 0], sizes = [2, 128], strides = [1, 1]} : vector<2x512xf32> to vector<2x128xf32>
    %cst_371 = arith.constant 5.000000e-01 : f32
    %728 = vector.broadcast %cst_371 : f32 to vector<2x128xf32>
    %729 = arith.mulf %728, %727 : vector<2x128xf32>
    %730 = math.tanh %729 : vector<2x128xf32>
    %cst_372 = arith.constant 5.000000e-01 : f32
    %731 = vector.broadcast %cst_372 : f32 to vector<2x128xf32>
    %732 = arith.mulf %731, %730 : vector<2x128xf32>
    %cst_373 = arith.constant 5.000000e-01 : f32
    %733 = vector.broadcast %cst_373 : f32 to vector<2x128xf32>
    %734 = arith.addf %732, %733 : vector<2x128xf32>
    %735 = vector.extract_strided_slice %726 {offsets = [0, 128], sizes = [2, 128], strides = [1, 1]} : vector<2x512xf32> to vector<2x128xf32>
    %cst_374 = arith.constant 5.000000e-01 : f32
    %736 = vector.broadcast %cst_374 : f32 to vector<2x128xf32>
    %737 = arith.mulf %736, %735 : vector<2x128xf32>
    %738 = math.tanh %737 : vector<2x128xf32>
    %cst_375 = arith.constant 5.000000e-01 : f32
    %739 = vector.broadcast %cst_375 : f32 to vector<2x128xf32>
    %740 = arith.mulf %739, %738 : vector<2x128xf32>
    %cst_376 = arith.constant 5.000000e-01 : f32
    %741 = vector.broadcast %cst_376 : f32 to vector<2x128xf32>
    %742 = arith.addf %740, %741 : vector<2x128xf32>
    %743 = vector.extract_strided_slice %726 {offsets = [0, 256], sizes = [2, 128], strides = [1, 1]} : vector<2x512xf32> to vector<2x128xf32>
    %744 = math.tanh %743 : vector<2x128xf32>
    %745 = vector.extract_strided_slice %726 {offsets = [0, 384], sizes = [2, 128], strides = [1, 1]} : vector<2x512xf32> to vector<2x128xf32>
    %cst_377 = arith.constant 5.000000e-01 : f32
    %746 = vector.broadcast %cst_377 : f32 to vector<2x128xf32>
    %747 = arith.mulf %746, %745 : vector<2x128xf32>
    %748 = math.tanh %747 : vector<2x128xf32>
    %cst_378 = arith.constant 5.000000e-01 : f32
    %749 = vector.broadcast %cst_378 : f32 to vector<2x128xf32>
    %750 = arith.mulf %749, %748 : vector<2x128xf32>
    %cst_379 = arith.constant 5.000000e-01 : f32
    %751 = vector.broadcast %cst_379 : f32 to vector<2x128xf32>
    %752 = arith.addf %750, %751 : vector<2x128xf32>
    %753 = arith.mulf %742, %719 : vector<2x128xf32>
    %754 = arith.mulf %734, %744 : vector<2x128xf32>
    %755 = arith.addf %753, %754 : vector<2x128xf32>
    %756 = math.tanh %755 : vector<2x128xf32>
    %757 = arith.mulf %752, %756 : vector<2x128xf32>
    %c14_380 = arith.constant 14 : index
    %c0_381 = arith.constant 0 : index
    %758 = vector.load %arg14[%c14_380, %c0_381] : memref<16x128xf32, #tpu.memory_space<vmem>>, vector<2x128xf32>
    tpu.vector_store %arg14[%c14_380, %c0_381], %757 {strides = array<i32>} : memref<16x128xf32, #tpu.memory_space<vmem>>, vector<2x128xf32>,
    %c1_382 = arith.constant 1 : index
    %c0_383 = arith.constant 0 : index
    %c0_384 = arith.constant 0 : index
    %759 = vector.load %arg11[%c1_382, %c0_383, %c0_384] : memref<2x2x128xf32, #tpu.memory_space<vmem>>, vector<1x2x128xf32>
    %760 = vector.shape_cast %759 : vector<1x2x128xf32> to vector<2x128xf32>
    %761 = vector.shape_cast %757 : vector<2x128xf32> to vector<1x2x128xf32>
    tpu.vector_store %arg11[%c1_382, %c0_383, %c0_384], %761 {strides = array<i32>} : memref<2x2x128xf32, #tpu.memory_space<vmem>>, vector<1x2x128xf32>,
    %c1_385 = arith.constant 1 : index
    %c0_386 = arith.constant 0 : index
    %c0_387 = arith.constant 0 : index
    %762 = vector.load %arg12[%c1_385, %c0_386, %c0_387] : memref<2x2x128xf32, #tpu.memory_space<vmem>>, vector<1x2x128xf32>
    %763 = vector.shape_cast %762 : vector<1x2x128xf32> to vector<2x128xf32>
    %764 = vector.shape_cast %755 : vector<2x128xf32> to vector<1x2x128xf32>
    tpu.vector_store %arg12[%c1_385, %c0_386, %c0_387], %764 {strides = array<i32>} : memref<2x2x128xf32, #tpu.memory_space<vmem>>, vector<1x2x128xf32>,
    %765 = vector.extract_strided_slice %757 {offsets = [0, 0], sizes = [2, 32], strides = [1, 1]} : vector<2x128xf32> to vector<2x32xf32>
    %c0_388 = arith.constant 0 : index
    %c0_389 = arith.constant 0 : index
    %766 = vector.load %arg8[%c0_388, %c0_389] : memref<32x128xf32, #tpu.memory_space<vmem>>, vector<32x128xf32>
    %cst_390 = arith.constant dense<0.000000e+00> : vector<2x128xf32>
    %767 = tpu.matmul %765, %766, %cst_390 {dimension_numbers = #tpu.dot_dimension_numbers<[1], [0], [0], [1], [0, 0, 1, 1], [], []>} : vector<2x32xf32>, vector<32x128xf32>, vector<2x128xf32> -> vector<2x128xf32>
    %c0_391 = arith.constant 0 : index
    %c0_392 = arith.constant 0 : index
    %768 = vector.load %arg9[%c0_391, %c0_392] : memref<1x128xf32, #tpu.memory_space<vmem>>, vector<1x128xf32>
    %769 = vector.broadcast %768 : vector<1x128xf32> to vector<2x128xf32>
    %770 = arith.addf %767, %769 : vector<2x128xf32>
    %771 = tpu.iota {dimensions = array<i32: 1>} : vector<2x128xi32>
    %c16_i32 = arith.constant 16 : i32
    %772 = vector.broadcast %c16_i32 : i32 to vector<2x128xi32>
    %773 = arith.cmpi slt, %771, %772 : vector<2x128xi32>
    %cst_393 = arith.constant -1.000000e+30 : f32
    %774 = vector.broadcast %cst_393 : f32 to vector<2x128xf32>
    %775 = arith.select %773, %770, %774 : vector<2x128xi1>, vector<2x128xf32>
    %cst_394 = arith.constant dense<0xFF800000> : vector<2xf32>
    %776 = vector.multi_reduction <maximumf>, %775, %cst_394 [1] : vector<2x128xf32> to vector<2xf32>
    %777 = vector.shape_cast %776 : vector<2xf32> to vector<2x1xf32>
    %778 = vector.broadcast %777 : vector<2x1xf32> to vector<2x128xf32>
    %779 = arith.subf %775, %778 : vector<2x128xf32>
    %780 = math.exp %779 : vector<2x128xf32>
    %cst_395 = arith.constant dense<0.000000e+00> : vector<2xf32>
    %781 = vector.multi_reduction <add>, %780, %cst_395 [1] : vector<2x128xf32> to vector<2xf32>
    %782 = vector.shape_cast %781 : vector<2xf32> to vector<2x1xf32>
    %783 = math.log %782 : vector<2x1xf32>
    %784 = vector.broadcast %783 : vector<2x1xf32> to vector<2x128xf32>
    %785 = arith.subf %779, %784 : vector<2x128xf32>
    %c0_396 = arith.constant 0 : index
    %c0_397 = arith.constant 0 : index
    %786 = vector.load %arg10[%c0_396, %c0_397] : memref<2x128xf32, #tpu.memory_space<vmem>>, vector<2x128xf32>
    tpu.vector_store %arg10[%c0_396, %c0_397], %785 {strides = array<i32>} : memref<2x128xf32, #tpu.memory_space<vmem>>, vector<2x128xf32>,
    return
  }
}

</mosaic_0001>

<bundles_post_ra>
// kernel: tpu_custom_call.1
= control target key start
LH: loop header
LB: loop body
LE: loop exit
PB: predicated region body
PF: predicated region fallthrough
CT: control target
= control target key end

     0   :  { %s5894_s0 = inlined_call_operand.hbm [shape: s32[16], index: 0, kind: input, shape index: {}]   ;;  %s5895_s1 = inlined_call_operand.hbm [shape: f32[16,512], index: 1, kind: input, shape index: {}]   ;;  %s5896_s2 = inlined_call_operand.vmem [shape: f32[2,2,128], index: 2, kind: input, shape index: {}]   ;;  %s5897_s3 = inlined_call_operand.vmem [shape: f32[2,2,128], index: 3, kind: input, shape index: {}]   ;;  %s5898_s4 = inlined_call_operand.hbm [shape: f32[32,512], index: 4, kind: input, shape index: {}]   ;;  %s5899_s5 = inlined_call_operand.hbm [shape: f32[32,512], index: 5, kind: input, shape index: {}]   ;;  %s5900_s6 = inlined_call_operand.hbm [shape: f32[32,512], index: 6, kind: input, shape index: {}]   ;;  %s5901_s7 = inlined_call_operand.vmem [shape: f32[1,512], index: 7, kind: input, shape index: {}]   ;;  %s5902_s8 = inlined_call_operand.hbm [shape: f32[32,128], index: 8, kind: input, shape index: {}]   ;;  %s5903_s9 = inlined_call_operand.vmem [shape: f32[1,128], index: 9, kind: input, shape index: {}]   ;;  %s5904_s10 = inlined_call_operand.hbm [shape: f32[2,128], index: 10, kind: output, shape index: {0}]   ;;  %s5905_s11 = inlined_call_operand.hbm [shape: f32[2,2,128], index: 11, kind: output, shape index: {1}]   ;;  %s5906_s12 = inlined_call_operand.hbm [shape: f32[2,2,128], index: 12, kind: output, shape index: {2}]  }
   0x1   :  { %5910 = sst [smem:[#allocation57_spill]] %s5904_s10 }
   0x2   :  { %18 = vsyncpa [#allocation8], 0 }
   0x3   :  { %19 = vsyncpa [#allocation6], 0 }
   0x4   :  { %20 = vsyncpa [#allocation11], 0 }
   0x5   :  { %21 = vsyncpa [#allocation14], 0 }
   0x6   :  { %22 = vsyncpa [#allocation7], 0 }
   0x7   :  { %23 = vsyncpa [#allocation17], 0  ;;  %s5089_s21 = smov [#allocation10]   ;;  %s5090_s23 = smov [#allocation9]  }
   0x8   :  { %s53_s22 = sshll.u32 %s5089_s21, 4  ;;  %s41_s24 = sshll.u32 %s5090_s23, 4  ;;  %s54_s22 = int_to_ptr.vmem [resolvable:$true] %s53_s22  ;;  %s42_s24 = int_to_ptr.vmem [resolvable:$true] %s41_s24 }
   0x9   :  { %s4497_s27 = scalar_lea.hbm %s5899_s5, 2048 }
   0xa   :  { %p4498_p0 = scmp.ne.s32.totalorder %s5899_s5, %s4497_s27  ;;  %p4501_p1 = scmp.lt.u32.totalorder %s4497_s27, %s5899_s5 }
   0xc   :  { %p4503_p2 = pnand %p4501_p1, %p4498_p0 }
   0xe   :  { %4506 = shalt.err (!%p4503_p2)
}
   0xf   :  { %s4507_s14 = scalar_lea.vmem %s54_s22, 2048  ;;  %p4512_p4 = scmp.lt.s32.totalorder %s54_s22, %s54_s22 }
  0x10   :  { %p4508_p3 = scmp.ne.s32.totalorder %s54_s22, %s4507_s14  ;;  %p4513_p5 = scmp.lt.s32.totalorder %s4507_s14, %s4507_s14 }
  0x12   :  { %p4514_p6 = por %p4513_p5, %p4512_p4 }
  0x14   :  { %p4515_p7 = pnand %p4514_p6, %p4508_p3 }
  0x16   :  { %4518 = shalt.err (!%p4515_p7)
}
  0x17   :  { %s5091_s15 = smov 512   ;;  %s5907_s16 = smov 32  }
  0x18   :  { %59 = dma.hbm_to_vmem [thread:$0]  %s5899_s5, 2048, %s54_s22, [#allocation11], %s5091_s15, %s5091_s15, %s5907_s16  }
  0x19   :  { %s4519_s21 = scalar_lea.hbm %s5894_s0, 16 }
  0x1a   :  { %p4520_p8 = scmp.ne.s32.totalorder %s5894_s0, %s4519_s21  ;;  %p4523_p9 = scmp.lt.u32.totalorder %s4519_s21, %s5894_s0 }
  0x1c   :  { %p4525_p10 = pnand %p4523_p9, %p4520_p8 }
  0x1e   :  { %4528 = shalt.err (!%p4525_p10)
}
  0x1f   :  { %s5093_s28 = smov [#allocation5]   ;;  %s4529_s13 = scalar_lea.hbm %s5898_s4, 2048 }
  0x20   :  { %31 = dma.hbm_to_smem %s5894_s0, 16, %s5093_s28, [#allocation8]  }
  0x21   :  { %p4530_p11 = scmp.ne.s32.totalorder %s5898_s4, %s4529_s13  ;;  %p4533_p12 = scmp.lt.u32.totalorder %s4529_s13, %s5898_s4 }
  0x23   :  { %p4535_p13 = pnand %p4533_p12, %p4530_p11 }
  0x25   :  { %4538 = shalt.err (!%p4535_p13)
}
  0x26   :  { %s4539_s20 = scalar_lea.vmem %s42_s24, 2048  ;;  %p4544_p1 = scmp.lt.s32.totalorder %s42_s24, %s42_s24 }
  0x27   :  { %p4540_p0 = scmp.ne.s32.totalorder %s42_s24, %s4539_s20  ;;  %p4545_p2 = scmp.lt.s32.totalorder %s4539_s20, %s4539_s20 }
  0x29   :  { %p4546_p3 = por %p4545_p2, %p4544_p1 }
  0x2b   :  { %p4547_p4 = pnand %p4546_p3, %p4540_p0 }
  0x2d   :  { %4550 = shalt.err (!%p4547_p4)
}
  0x2e   :  { %47 = dma.hbm_to_vmem [thread:$0]  %s5898_s4, 2048, %s42_s24, [#allocation6], %s5091_s15, %s5091_s15, %s5907_s16  }
  0x2f   :  { %s5094_s23 = smov [#allocation12]   ;;  %s5095_s26 = smov [#allocation13]  }
  0x30   :  { %s65_s25 = sshll.u32 %s5094_s23, 4  ;;  %s79_s27 = sshll.u32 %s5095_s26, 4  ;;  %s66_s25 = int_to_ptr.vmem [resolvable:$true] %s65_s25  ;;  %s80_s27 = int_to_ptr.vmem [resolvable:$true] %s79_s27 }
  0x31   :  { %s4551_s30 = scalar_lea.hbm %s5900_s6, 2048 }
  0x32   :  { %p4552_p5 = scmp.ne.s32.totalorder %s5900_s6, %s4551_s30  ;;  %p4555_p6 = scmp.lt.u32.totalorder %s4551_s30, %s5900_s6 }
  0x34   :  { %p4557_p7 = pnand %p4555_p6, %p4552_p5 }
  0x36   :  { %4560 = shalt.err (!%p4557_p7)
}
  0x37   :  { %s4561_s4 = scalar_lea.vmem %s66_s25, 2048  ;;  %p4566_p9 = scmp.lt.s32.totalorder %s66_s25, %s66_s25 }
  0x38   :  { %p4562_p8 = scmp.ne.s32.totalorder %s66_s25, %s4561_s4  ;;  %p4567_p10 = scmp.lt.s32.totalorder %s4561_s4, %s4561_s4 }
  0x3a   :  { %p4568_p11 = por %p4567_p10, %p4566_p9 }
  0x3c   :  { %p4569_p12 = pnand %p4568_p11, %p4562_p8 }
  0x3e   :  { %4572 = shalt.err (!%p4569_p12)
}
  0x3f   :  { %71 = dma.hbm_to_vmem [thread:$0]  %s5900_s6, 2048, %s66_s25, [#allocation11], %s5091_s15, %s5091_s15, %s5907_s16  }
  0x40   :  { %s4573_s20 = scalar_lea.hbm %s5902_s8, 512 }
  0x41   :  { %p4574_p13 = scmp.ne.s32.totalorder %s5902_s8, %s4573_s20  ;;  %p4577_p0 = scmp.lt.u32.totalorder %s4573_s20, %s5902_s8 }
  0x43   :  { %p4579_p1 = pnand %p4577_p0, %p4574_p13 }
  0x45   :  { %4582 = shalt.err (!%p4579_p1)
}
  0x46   :  { %s4583_s28 = scalar_lea.vmem %s80_s27, 512  ;;  %p4588_p3 = scmp.lt.s32.totalorder %s80_s27, %s80_s27 }
  0x47   :  { %p4584_p2 = scmp.ne.s32.totalorder %s80_s27, %s4583_s28  ;;  %p4589_p4 = scmp.lt.s32.totalorder %s4583_s28, %s4583_s28 }
  0x49   :  { %p4590_p5 = por %p4589_p4, %p4588_p3 }
  0x4b   :  { %p4591_p6 = pnand %p4590_p5, %p4584_p2 }
  0x4d   :  { %4594 = shalt.err (!%p4591_p6)
}
  0x4e   :  { %s5096_s6 = smov 128   ;;  %s5097_s15 = smov 8  }
  0x4f   :  { %85 = dma.hbm_to_vmem [thread:$0]  %s5902_s8, 512, %s80_s27, [#allocation14], %s5096_s6, %s5096_s6, %s5097_s15  }
  0x50   :  { %5045 = dma.done.wait [#allocation8], 16  }
  0x51   :  { %5046 = vsyncadd [#allocation8], 4294967280 }
  0x52   :  { %5047 = dma.done.wait [#allocation6], 2048  }
  0x53   :  { %5048 = vsyncadd [#allocation6], 4294965248 }
  0x54   :  { %5049 = dma.done.wait [#allocation11], 4096  }
  0x55   :  { %5050 = vsyncadd [#allocation11], 4294963200 }
  0x56   :  { %5051 = dma.done.wait [#allocation14], 512  }
  0x57   :  { %5052 = vsyncadd [#allocation14], 4294966784 }
  0x58   :  { %103 = sfence }
  0x59   :  { %s104_s30 = sld [smem:[#allocation5]]  ;;  %s5098_s5 = smov [#allocation2]  }
  0x5a   :  { %s112_s22 = sshll.u32 %s5098_s5, 4  ;;  %s5260_s13 = sld [smem:[#allocation5 + $0x1]]  ;;  %s5258_s22 = int_to_ptr.vmem [resolvable:$true] %s112_s22 }
  0x5b   :  { %s5262_s14 = sld [smem:[#allocation5 + $0x2]]  ;;  %s5099_s8 = smov [#allocation2 + $0x1]  }
  0x5c   :  { %s126_s27 = sshll.u32 %s5099_s8, 4  ;;  %s5100_s4 = smov [#allocation2 + $0x2]   ;;  %s5264_s27 = int_to_ptr.vmem [resolvable:$true] %s126_s27 }
  0x5d   :  { %s140_s24 = sshll.u32 %s5100_s4, 4  ;;  %s5276_s4 = scalar_lea.hbm %s5895_s1, 1024  ;;  %s5266_s24 = int_to_ptr.vmem [resolvable:$true] %s140_s24 }
  0x5f   :  { %s105_s17 = sshrl.u32 %s104_s30, 3  ;;  %s106_s18 = sand.u32 7, %s104_s30  }
  0x60   :  { %s3903_s19 = sshll.u32 %s105_s17, 5  ;;  %s117_s0 = sshrl.u32 %s5260_s13, 3 }
  0x61   :  { %s108_s20 = sadd.s32 %s3903_s19, %s106_s18  ;;  %s118_s23 = sand.u32 7, %s5260_s13  }
  0x62   :  { %s3904_s21 = sshll.u32 %s108_s20, 4  ;;  %s3906_s25 = sshll.u32 %s117_s0, 5 }
  0x63   :  { %s110_s15 = scalar_lea.hbm %s5895_s1, %s3904_s21 }
  0x64   :  { %s4595_s29 = scalar_lea.hbm %s110_s15, 64  ;;  %p4598_p8 = scmp.lt.u32.totalorder %s110_s15, %s5895_s1 }
  0x65   :  { %p4596_p7 = scmp.ne.s32.totalorder %s110_s15, %s4595_s29  ;;  %p4599_p9 = scmp.lt.u32.totalorder %s5276_s4, %s4595_s29 }
  0x66   :  { %p4601_p11 = scmp.lt.u32.totalorder %s4595_s29, %s110_s15 }
  0x67   :  { %p4600_p10 = por %p4599_p9, %p4598_p8 }
  0x69   :  { %p4602_p12 = por %p4601_p11, %p4600_p10 }
  0x6b   :  { %p4603_p13 = pnand %p4602_p12, %p4596_p7 }
  0x6d   :  { %4606 = shalt.err (!%p4603_p13)  }
  0x6e   :  { %s4607_s13 = scalar_lea.vmem %s5258_s22, 64  ;;  %s5285_s18 = scalar_lea.vmem %s5258_s22, 1024 }
  0x6f   :  { %p4608_p0 = scmp.ne.s32.totalorder %s5258_s22, %s4607_s13  ;;  %p4612_p1 = scmp.lt.s32.totalorder %s5258_s22, %s5258_s22 }
  0x70   :  { %p4613_p2 = scmp.lt.s32.totalorder %s5285_s18, %s4607_s13 }
  0x72   :  { %p4614_p3 = por %p4613_p2, %p4612_p1 }
  0x74   :  { %p4615_p4 = pnand %p4614_p3, %p4608_p0 }
  0x76   :  { %4618 = shalt.err (!%p4615_p4)  }
  0x77   :  { %s5101_s19 = smov 1   ;;  %s120_s20 = sadd.s32 %s3906_s25, %s118_s23 }
  0x78   :  { %115 = dma.hbm_to_vmem [thread:$0]  %s110_s15, 64, %s5258_s22, [#allocation4], %s5096_s6, %s5096_s6, %s5101_s19 }
  0x79   :  { %s131_s0 = sshrl.u32 %s5262_s14, 3  ;;  %s3907_s21 = sshll.u32 %s120_s20, 4 }
  0x7a   :  { %s132_s26 = sand.u32 7, %s5262_s14   ;;  %s122_s5 = scalar_lea.hbm %s5895_s1, %s3907_s21 }
  0x7b   :  { %s3909_s8 = sshll.u32 %s131_s0, 5  ;;  %s4619_s30 = scalar_lea.hbm %s122_s5, 64 }
  0x7c   :  { %p4620_p5 = scmp.ne.s32.totalorder %s122_s5, %s4619_s30  ;;  %p4622_p6 = scmp.lt.u32.totalorder %s122_s5, %s5895_s1 }
  0x7d   :  { %p4623_p7 = scmp.lt.u32.totalorder %s5276_s4, %s4619_s30  ;;  %p4625_p9 = scmp.lt.u32.totalorder %s4619_s30, %s122_s5 }
  0x7f   :  { %p4624_p8 = por %p4623_p7, %p4622_p6 }
  0x81   :  { %p4626_p10 = por %p4625_p9, %p4624_p8 }
  0x83   :  { %p4627_p11 = pnand %p4626_p10, %p4620_p5 }
  0x85   :  { %4630 = shalt.err (!%p4627_p11)  }
  0x86   :  { %s4631_s14 = scalar_lea.vmem %s5264_s27, 64  ;;  %p4636_p13 = scmp.lt.s32.totalorder %s5264_s27, %s5258_s22 }
  0x87   :  { %p4632_p12 = scmp.ne.s32.totalorder %s5264_s27, %s4631_s14  ;;  %p4637_p0 = scmp.lt.s32.totalorder %s5285_s18, %s4631_s14 }
  0x89   :  { %p4638_p1 = por %p4637_p0, %p4636_p13 }
  0x8b   :  { %p4639_p2 = pnand %p4638_p1, %p4632_p12 }
  0x8d   :  { %4642 = shalt.err (!%p4639_p2)  }
  0x8e   :  { %129 = dma.hbm_to_vmem [thread:$0]  %s122_s5, 64, %s5264_s27, [#allocation4 + $0x1], %s5096_s6, %s5096_s6, %s5101_s19 }
  0x8f   :  { %s134_s23 = sadd.s32 %s3909_s8, %s132_s26  ;;  %s5312_s15 = sld [smem:[#allocation5 + $0x3]] }
  0x90   :  { %s3910_s25 = sshll.u32 %s134_s23, 4  ;;  %s5102_s28 = smov [#allocation2 + $0x3]  }
  0x91   :  { %s136_s21 = scalar_lea.hbm %s5895_s1, %s3910_s25  ;;  %s154_s29 = sshll.u32 %s5102_s28, 4  ;;  %s5330_s29 = int_to_ptr.vmem [resolvable:$true] %s154_s29 }
  0x92   :  { %s4643_s30 = scalar_lea.hbm %s136_s21, 64  ;;  %p4646_p4 = scmp.lt.u32.totalorder %s136_s21, %s5895_s1 }
  0x93   :  { %p4644_p3 = scmp.ne.s32.totalorder %s136_s21, %s4643_s30  ;;  %p4647_p5 = scmp.lt.u32.totalorder %s5276_s4, %s4643_s30 }
  0x94   :  { %p4649_p7 = scmp.lt.u32.totalorder %s4643_s30, %s136_s21 }
  0x95   :  { %p4648_p6 = por %p4647_p5, %p4646_p4 }
  0x97   :  { %p4650_p8 = por %p4649_p7, %p4648_p6 }
  0x99   :  { %p4651_p9 = pnand %p4650_p8, %p4644_p3 }
  0x9b   :  { %4654 = shalt.err (!%p4651_p9)  }
  0x9c   :  { %s4655_s27 = scalar_lea.vmem %s5266_s24, 64  ;;  %p4660_p11 = scmp.lt.s32.totalorder %s5266_s24, %s5258_s22 }
  0x9d   :  { %p4656_p10 = scmp.ne.s32.totalorder %s5266_s24, %s4655_s27  ;;  %p4661_p12 = scmp.lt.s32.totalorder %s5285_s18, %s4655_s27 }
  0x9f   :  { %p4662_p13 = por %p4661_p12, %p4660_p11 }
  0xa1   :  { %p4663_p0 = pnand %p4662_p13, %p4656_p10 }
  0xa3   :  { %4666 = shalt.err (!%p4663_p0)  }
  0xa4   :  { %143 = dma.hbm_to_vmem [thread:$0]  %s136_s21, 64, %s5266_s24, [#allocation4 + $0x2], %s5096_s6, %s5096_s6, %s5101_s19 }
  0xa5   :  { %s5332_s26 = sld [smem:[#allocation5 + $0x4]]  ;;  %s5334_s5 = sld [smem:[#allocation5 + $0x5]] }
  0xa6   :  { %s145_s8 = sshrl.u32 %s5312_s15, 3  ;;  %s146_s14 = sand.u32 7, %s5312_s15  }
  0xa7   :  { %s3912_s23 = sshll.u32 %s145_s8, 5  ;;  %s5103_s25 = smov [#allocation2 + $0x4]  }
  0xa8   :  { %s168_s20 = sshll.u32 %s5103_s25, 4  ;;  %s148_s0 = sadd.s32 %s3912_s23, %s146_s14  ;;  %s5338_s20 = int_to_ptr.vmem [resolvable:$true] %s168_s20 }
  0xa9   :  { %s3913_s28 = sshll.u32 %s148_s0, 4 }
  0xaa   :  { %s150_s24 = scalar_lea.hbm %s5895_s1, %s3913_s28 }
  0xab   :  { %s159_s21 = sshrl.u32 %s5332_s26, 3  ;;  %s4667_s13 = scalar_lea.hbm %s150_s24, 64 }
  0xac   :  { %p4668_p1 = scmp.ne.s32.totalorder %s150_s24, %s4667_s13  ;;  %p4670_p2 = scmp.lt.u32.totalorder %s150_s24, %s5895_s1 }
  0xad   :  { %p4671_p3 = scmp.lt.u32.totalorder %s5276_s4, %s4667_s13  ;;  %p4673_p5 = scmp.lt.u32.totalorder %s4667_s13, %s150_s24 }
  0xaf   :  { %p4672_p4 = por %p4671_p3, %p4670_p2 }
  0xb1   :  { %p4674_p6 = por %p4673_p5, %p4672_p4 }
  0xb3   :  { %p4675_p7 = pnand %p4674_p6, %p4668_p1 }
  0xb5   :  { %4678 = shalt.err (!%p4675_p7)  }
  0xb6   :  { %s4679_s15 = scalar_lea.vmem %s5330_s29, 64  ;;  %p4684_p9 = scmp.lt.s32.totalorder %s5330_s29, %s5258_s22 }
  0xb7   :  { %p4680_p8 = scmp.ne.s32.totalorder %s5330_s29, %s4679_s15  ;;  %p4685_p10 = scmp.lt.s32.totalorder %s5285_s18, %s4679_s15 }
  0xb9   :  { %p4686_p11 = por %p4685_p10, %p4684_p9 }
  0xbb   :  { %p4687_p12 = pnand %p4686_p11, %p4680_p8 }
  0xbd   :  { %4690 = shalt.err (!%p4687_p12)  }
  0xbe   :  { %157 = dma.hbm_to_vmem [thread:$0]  %s150_s24, 64, %s5330_s29, [#allocation4 + $0x3], %s5096_s6, %s5096_s6, %s5101_s19 }
  0xbf   :  { %s160_s16 = sand.u32 7, %s5332_s26   ;;  %s3915_s8 = sshll.u32 %s159_s21, 5 }
  0xc0   :  { %s162_s14 = sadd.s32 %s3915_s8, %s160_s16  ;;  %s173_s23 = sshrl.u32 %s5334_s5, 3 }
  0xc1   :  { %s3916_s25 = sshll.u32 %s162_s14, 4  ;;  %s174_s0 = sand.u32 7, %s5334_s5  }
  0xc2   :  { %s164_s17 = scalar_lea.hbm %s5895_s1, %s3916_s25  ;;  %s3918_s13 = sshll.u32 %s173_s23, 5 }
  0xc3   :  { %s4691_s27 = scalar_lea.hbm %s164_s17, 64  ;;  %p4694_p0 = scmp.lt.u32.totalorder %s164_s17, %s5895_s1 }
  0xc4   :  { %p4692_p13 = scmp.ne.s32.totalorder %s164_s17, %s4691_s27  ;;  %p4695_p1 = scmp.lt.u32.totalorder %s5276_s4, %s4691_s27 }
  0xc5   :  { %p4697_p3 = scmp.lt.u32.totalorder %s4691_s27, %s164_s17 }
  0xc6   :  { %p4696_p2 = por %p4695_p1, %p4694_p0 }
  0xc8   :  { %p4698_p4 = por %p4697_p3, %p4696_p2 }
  0xca   :  { %p4699_p5 = pnand %p4698_p4, %p4692_p13 }
  0xcc   :  { %4702 = shalt.err (!%p4699_p5)  }
  0xcd   :  { %s4703_s29 = scalar_lea.vmem %s5338_s20, 64  ;;  %p4708_p7 = scmp.lt.s32.totalorder %s5338_s20, %s5258_s22 }
  0xce   :  { %p4704_p6 = scmp.ne.s32.totalorder %s5338_s20, %s4703_s29  ;;  %p4709_p8 = scmp.lt.s32.totalorder %s5285_s18, %s4703_s29 }
  0xd0   :  { %p4710_p9 = por %p4709_p8, %p4708_p7 }
  0xd2   :  { %p4711_p10 = pnand %p4710_p9, %p4704_p6 }
  0xd4   :  { %4714 = shalt.err (!%p4711_p10)  }
  0xd5   :  { %171 = dma.hbm_to_vmem [thread:$0]  %s164_s17, 64, %s5338_s20, [#allocation4 + $0x4], %s5096_s6, %s5096_s6, %s5101_s19 }
  0xd6   :  { %s176_s10 = sadd.s32 %s3918_s13, %s174_s0  ;;  %s5104_s26 = smov [#allocation2 + $0x5]  }
  0xd7   :  { %s182_s5 = sshll.u32 %s5104_s26, 4  ;;  %s3919_s24 = sshll.u32 %s176_s10, 4  ;;  %s183_s5 = int_to_ptr.vmem [resolvable:$true] %s182_s5 }
  0xd8   :  { %s178_s8 = scalar_lea.hbm %s5895_s1, %s3919_s24  ;;  %s5379_s14 = sld [smem:[#allocation5 + $0x6]] }
  0xd9   :  { %s4715_s23 = scalar_lea.hbm %s178_s8, 64  ;;  %p4718_p12 = scmp.lt.u32.totalorder %s178_s8, %s5895_s1 }
  0xda   :  { %p4716_p11 = scmp.ne.s32.totalorder %s178_s8, %s4715_s23  ;;  %p4719_p13 = scmp.lt.u32.totalorder %s5276_s4, %s4715_s23 }
  0xdb   :  { %p4721_p1 = scmp.lt.u32.totalorder %s4715_s23, %s178_s8 }
  0xdc   :  { %p4720_p0 = por %p4719_p13, %p4718_p12 }
  0xde   :  { %p4722_p2 = por %p4721_p1, %p4720_p0 }
  0xe0   :  { %p4723_p3 = pnand %p4722_p2, %p4716_p11 }
  0xe2   :  { %4726 = shalt.err (!%p4723_p3)  }
  0xe3   :  { %s4727_s20 = scalar_lea.vmem %s183_s5, 64  ;;  %p4732_p5 = scmp.lt.s32.totalorder %s183_s5, %s5258_s22 }
  0xe4   :  { %p4728_p4 = scmp.ne.s32.totalorder %s183_s5, %s4727_s20  ;;  %p4733_p6 = scmp.lt.s32.totalorder %s5285_s18, %s4727_s20 }
  0xe6   :  { %p4734_p7 = por %p4733_p6, %p4732_p5 }
  0xe8   :  { %p4735_p8 = pnand %p4734_p7, %p4728_p4 }
  0xea   :  { %4738 = shalt.err (!%p4735_p8)  }
  0xeb   :  { %185 = dma.hbm_to_vmem [thread:$0]  %s178_s8, 64, %s183_s5, [#allocation4 + $0x5], %s5096_s6, %s5096_s6, %s5101_s19 }
  0xec   :  { %s5390_s0 = sld [smem:[#allocation5 + $0x7]]  ;;  %s5105_s30 = smov [#allocation2 + $0x6]  }
  0xed   :  { %s196_s17 = sshll.u32 %s5105_s30, 4  ;;  %s5106_s13 = smov [#allocation2 + $0x7]   ;;  %s5392_s17 = int_to_ptr.vmem [resolvable:$true] %s196_s17 }
  0xee   :  { %s210_s27 = sshll.u32 %s5106_s13, 4  ;;  %s5396_s15 = sld [smem:[#allocation5 + $0x8]]  ;;  %s5394_s27 = int_to_ptr.vmem [resolvable:$true] %s210_s27 }
  0xef   :  { %s187_s29 = sshrl.u32 %s5379_s14, 3  ;;  %s188_s10 = sand.u32 7, %s5379_s14  }
  0xf0   :  { %s3921_s26 = sshll.u32 %s187_s29, 5 }
  0xf1   :  { %s190_s24 = sadd.s32 %s3921_s26, %s188_s10 }
  0xf2   :  { %s201_s5 = sshrl.u32 %s5390_s0, 3  ;;  %s3922_s21 = sshll.u32 %s190_s24, 4 }
  0xf3   :  { %s202_s16 = sand.u32 7, %s5390_s0   ;;  %s192_s25 = scalar_lea.hbm %s5895_s1, %s3922_s21 }
  0xf4   :  { %s3924_s28 = sshll.u32 %s201_s5, 5  ;;  %s4739_s20 = scalar_lea.hbm %s192_s25, 64 }
  0xf5   :  { %p4740_p9 = scmp.ne.s32.totalorder %s192_s25, %s4739_s20  ;;  %p4742_p10 = scmp.lt.u32.totalorder %s192_s25, %s5895_s1 }
  0xf6   :  { %p4743_p11 = scmp.lt.u32.totalorder %s5276_s4, %s4739_s20  ;;  %p4745_p13 = scmp.lt.u32.totalorder %s4739_s20, %s192_s25 }
  0xf8   :  { %p4744_p12 = por %p4743_p11, %p4742_p10 }
  0xfa   :  { %p4746_p0 = por %p4745_p13, %p4744_p12 }
  0xfc   :  { %p4747_p1 = pnand %p4746_p0, %p4740_p9 }
  0xfe   :  { %4750 = shalt.err (!%p4747_p1)  }
  0xff   :  { %s4751_s14 = scalar_lea.vmem %s5392_s17, 64  ;;  %p4756_p3 = scmp.lt.s32.totalorder %s5392_s17, %s5258_s22 }
 0x100   :  { %p4752_p2 = scmp.ne.s32.totalorder %s5392_s17, %s4751_s14  ;;  %p4757_p4 = scmp.lt.s32.totalorder %s5285_s18, %s4751_s14 }
 0x102   :  { %p4758_p5 = por %p4757_p4, %p4756_p3 }
 0x104   :  { %p4759_p6 = pnand %p4758_p5, %p4752_p2 }
 0x106   :  { %4762 = shalt.err (!%p4759_p6)  }
 0x107   :  { %199 = dma.hbm_to_vmem [thread:$0]  %s192_s25, 64, %s5392_s17, [#allocation4 + $0x6], %s5096_s6, %s5096_s6, %s5101_s19 }
 0x108   :  { %s204_s0 = sadd.s32 %s3924_s28, %s202_s16  ;;  %s215_s29 = sshrl.u32 %s5396_s15, 3 }
 0x109   :  { %s3925_s10 = sshll.u32 %s204_s0, 4  ;;  %s216_s26 = sand.u32 7, %s5396_s15  }
 0x10a   :  { %s206_s21 = scalar_lea.hbm %s5895_s1, %s3925_s10  ;;  %s3927_s8 = sshll.u32 %s215_s29, 5 }
 0x10b   :  { %s4763_s23 = scalar_lea.hbm %s206_s21, 64  ;;  %p4766_p8 = scmp.lt.u32.totalorder %s206_s21, %s5895_s1 }
 0x10c   :  { %p4764_p7 = scmp.ne.s32.totalorder %s206_s21, %s4763_s23  ;;  %p4767_p9 = scmp.lt.u32.totalorder %s5276_s4, %s4763_s23 }
 0x10d   :  { %p4769_p11 = scmp.lt.u32.totalorder %s4763_s23, %s206_s21 }
 0x10e   :  { %p4768_p10 = por %p4767_p9, %p4766_p8 }
 0x110   :  { %p4770_p12 = por %p4769_p11, %p4768_p10 }
 0x112   :  { %p4771_p13 = pnand %p4770_p12, %p4764_p7 }
 0x114   :  { %4774 = shalt.err (!%p4771_p13)  }
 0x115   :  { %s4775_s17 = scalar_lea.vmem %s5394_s27, 64  ;;  %p4780_p1 = scmp.lt.s32.totalorder %s5394_s27, %s5258_s22 }
 0x116   :  { %p4776_p0 = scmp.ne.s32.totalorder %s5394_s27, %s4775_s17  ;;  %p4781_p2 = scmp.lt.s32.totalorder %s5285_s18, %s4775_s17 }
 0x118   :  { %p4782_p3 = por %p4781_p2, %p4780_p1 }
 0x11a   :  { %p4783_p4 = pnand %p4782_p3, %p4776_p0 }
 0x11c   :  { %4786 = shalt.err (!%p4783_p4)  }
 0x11d   :  { %213 = dma.hbm_to_vmem [thread:$0]  %s206_s21, 64, %s5394_s27, [#allocation4 + $0x7], %s5096_s6, %s5096_s6, %s5101_s19 }
 0x11e   :  { %s218_s15 = sadd.s32 %s3927_s8, %s216_s26  ;;  %s5107_s16 = smov [#allocation2 + $0x20]  }
 0x11f   :  { %s224_s25 = sshll.u32 %s5107_s16, 4  ;;  %s3928_s28 = sshll.u32 %s218_s15, 4  ;;  %s225_s25 = int_to_ptr.vmem [resolvable:$true] %s224_s25 }
 0x120   :  { %s220_s0 = scalar_lea.hbm %s5895_s1, %s3928_s28  ;;  %s5439_s29 = sld [smem:[#allocation5 + $0x9]] }
 0x121   :  { %s4787_s10 = scalar_lea.hbm %s220_s0, 64  ;;  %p4790_p6 = scmp.lt.u32.totalorder %s220_s0, %s5895_s1 }
 0x122   :  { %p4788_p5 = scmp.ne.s32.totalorder %s220_s0, %s4787_s10  ;;  %p4791_p7 = scmp.lt.u32.totalorder %s5276_s4, %s4787_s10 }
 0x123   :  { %p4793_p9 = scmp.lt.u32.totalorder %s4787_s10, %s220_s0 }
 0x124   :  { %p4792_p8 = por %p4791_p7, %p4790_p6 }
 0x126   :  { %p4794_p10 = por %p4793_p9, %p4792_p8 }
 0x128   :  { %p4795_p11 = pnand %p4794_p10, %p4788_p5 }
 0x12a   :  { %4798 = shalt.err (!%p4795_p11)  }
 0x12b   :  { %s4799_s27 = scalar_lea.vmem %s225_s25, 64  ;;  %p4804_p13 = scmp.lt.s32.totalorder %s225_s25, %s5258_s22 }
 0x12c   :  { %p4800_p12 = scmp.ne.s32.totalorder %s225_s25, %s4799_s27  ;;  %p4805_p0 = scmp.lt.s32.totalorder %s5285_s18, %s4799_s27 }
 0x12e   :  { %p4806_p1 = por %p4805_p0, %p4804_p13 }
 0x130   :  { %p4807_p2 = pnand %p4806_p1, %p4800_p12 }
 0x132   :  { %4810 = shalt.err (!%p4807_p2)  }
 0x133   :  { %227 = dma.hbm_to_vmem [thread:$0]  %s220_s0, 64, %s225_s25, [#allocation4 + $0x8], %s5096_s6, %s5096_s6, %s5101_s19 }
 0x134   :  { %s5450_s26 = sld [smem:[#allocation5 + $0xa]]  ;;  %s5108_s21 = smov [#allocation2 + $0x21]  }
 0x135   :  { %s238_s8 = sshll.u32 %s5108_s21, 4  ;;  %s5109_s23 = smov [#allocation2 + $0x22]   ;;  %s5452_s8 = int_to_ptr.vmem [resolvable:$true] %s238_s8 }
 0x136   :  { %s252_s20 = sshll.u32 %s5109_s23, 4  ;;  %s5456_s30 = sld [smem:[#allocation5 + $0xb]]  ;;  %s5454_s20 = int_to_ptr.vmem [resolvable:$true] %s252_s20 }
 0x137   :  { %s229_s17 = sshrl.u32 %s5439_s29, 3  ;;  %s230_s15 = sand.u32 7, %s5439_s29  }
 0x138   :  { %s3930_s16 = sshll.u32 %s229_s17, 5 }
 0x139   :  { %s232_s28 = sadd.s32 %s3930_s16, %s230_s15 }
 0x13a   :  { %s243_s25 = sshrl.u32 %s5450_s26, 3  ;;  %s3931_s13 = sshll.u32 %s232_s28, 4 }
 0x13b   :  { %s244_s14 = sand.u32 7, %s5450_s26   ;;  %s234_s24 = scalar_lea.hbm %s5895_s1, %s3931_s13 }
 0x13c   :  { %s3933_s5 = sshll.u32 %s243_s25, 5  ;;  %s4811_s27 = scalar_lea.hbm %s234_s24, 64 }
 0x13d   :  { %p4812_p3 = scmp.ne.s32.totalorder %s234_s24, %s4811_s27  ;;  %p4814_p4 = scmp.lt.u32.totalorder %s234_s24, %s5895_s1 }
 0x13e   :  { %p4815_p5 = scmp.lt.u32.totalorder %s5276_s4, %s4811_s27  ;;  %p4817_p7 = scmp.lt.u32.totalorder %s4811_s27, %s234_s24 }
 0x140   :  { %p4816_p6 = por %p4815_p5, %p4814_p4 }
 0x142   :  { %p4818_p8 = por %p4817_p7, %p4816_p6 }
 0x144   :  { %p4819_p9 = pnand %p4818_p8, %p4812_p3 }
 0x146   :  { %4822 = shalt.err (!%p4819_p9)  }
 0x147   :  { %s4823_s29 = scalar_lea.vmem %s5452_s8, 64  ;;  %p4828_p11 = scmp.lt.s32.totalorder %s5452_s8, %s5258_s22 }
 0x148   :  { %p4824_p10 = scmp.ne.s32.totalorder %s5452_s8, %s4823_s29  ;;  %p4829_p12 = scmp.lt.s32.totalorder %s5285_s18, %s4823_s29 }
 0x14a   :  { %p4830_p13 = por %p4829_p12, %p4828_p11 }
 0x14c   :  { %p4831_p0 = pnand %p4830_p13, %p4824_p10 }
 0x14e   :  { %4834 = shalt.err (!%p4831_p0)  }
 0x14f   :  { %241 = dma.hbm_to_vmem [thread:$0]  %s234_s24, 64, %s5452_s8, [#allocation4 + $0x9], %s5096_s6, %s5096_s6, %s5101_s19 }
 0x150   :  { %s246_s26 = sadd.s32 %s3933_s5, %s244_s14  ;;  %s257_s17 = sshrl.u32 %s5456_s30, 3 }
 0x151   :  { %s3934_s15 = sshll.u32 %s246_s26, 4  ;;  %s258_s16 = sand.u32 7, %s5456_s30  }
 0x152   :  { %s248_s13 = scalar_lea.hbm %s5895_s1, %s3934_s15  ;;  %s3936_s0 = sshll.u32 %s257_s17, 5 }
 0x153   :  { %s4835_s10 = scalar_lea.hbm %s248_s13, 64  ;;  %p4838_p2 = scmp.lt.u32.totalorder %s248_s13, %s5895_s1 }
 0x154   :  { %p4836_p1 = scmp.ne.s32.totalorder %s248_s13, %s4835_s10  ;;  %p4839_p3 = scmp.lt.u32.totalorder %s5276_s4, %s4835_s10 }
 0x155   :  { %p4841_p5 = scmp.lt.u32.totalorder %s4835_s10, %s248_s13 }
 0x156   :  { %p4840_p4 = por %p4839_p3, %p4838_p2 }
 0x158   :  { %p4842_p6 = por %p4841_p5, %p4840_p4 }
 0x15a   :  { %p4843_p7 = pnand %p4842_p6, %p4836_p1 }
 0x15c   :  { %4846 = shalt.err (!%p4843_p7)  }
 0x15d   :  { %s4847_s8 = scalar_lea.vmem %s5454_s20, 64  ;;  %p4852_p9 = scmp.lt.s32.totalorder %s5454_s20, %s5258_s22 }
 0x15e   :  { %p4848_p8 = scmp.ne.s32.totalorder %s5454_s20, %s4847_s8  ;;  %p4853_p10 = scmp.lt.s32.totalorder %s5285_s18, %s4847_s8 }
 0x160   :  { %p4854_p11 = por %p4853_p10, %p4852_p9 }
 0x162   :  { %p4855_p12 = pnand %p4854_p11, %p4848_p8 }
 0x164   :  { %4858 = shalt.err (!%p4855_p12)  }
 0x165   :  { %255 = dma.hbm_to_vmem [thread:$0]  %s248_s13, 64, %s5454_s20, [#allocation4 + $0xa], %s5096_s6, %s5096_s6, %s5101_s19 }
 0x166   :  { %s260_s30 = sadd.s32 %s3936_s0, %s258_s16  ;;  %s5110_s14 = smov [#allocation2 + $0x23]  }
 0x167   :  { %s266_s24 = sshll.u32 %s5110_s14, 4  ;;  %s3937_s5 = sshll.u32 %s260_s30, 4  ;;  %s267_s24 = int_to_ptr.vmem [resolvable:$true] %s266_s24 }
 0x168   :  { %s262_s26 = scalar_lea.hbm %s5895_s1, %s3937_s5  ;;  %s5499_s17 = sld [smem:[#allocation5 + $0xc]] }
 0x169   :  { %s4859_s15 = scalar_lea.hbm %s262_s26, 64  ;;  %p4862_p0 = scmp.lt.u32.totalorder %s262_s26, %s5895_s1 }
 0x16a   :  { %p4860_p13 = scmp.ne.s32.totalorder %s262_s26, %s4859_s15  ;;  %p4863_p1 = scmp.lt.u32.totalorder %s5276_s4, %s4859_s15 }
 0x16b   :  { %p4865_p3 = scmp.lt.u32.totalorder %s4859_s15, %s262_s26 }
 0x16c   :  { %p4864_p2 = por %p4863_p1, %p4862_p0 }
 0x16e   :  { %p4866_p4 = por %p4865_p3, %p4864_p2 }
 0x170   :  { %p4867_p5 = pnand %p4866_p4, %p4860_p13 }
 0x172   :  { %4870 = shalt.err (!%p4867_p5)  }
 0x173   :  { %s4871_s20 = scalar_lea.vmem %s267_s24, 64  ;;  %p4876_p7 = scmp.lt.s32.totalorder %s267_s24, %s5258_s22 }
 0x174   :  { %p4872_p6 = scmp.ne.s32.totalorder %s267_s24, %s4871_s20  ;;  %p4877_p8 = scmp.lt.s32.totalorder %s5285_s18, %s4871_s20 }
 0x176   :  { %p4878_p9 = por %p4877_p8, %p4876_p7 }
 0x178   :  { %p4879_p10 = pnand %p4878_p9, %p4872_p6 }
 0x17a   :  { %4882 = shalt.err (!%p4879_p10)  }
 0x17b   :  { %269 = dma.hbm_to_vmem [thread:$0]  %s262_s26, 64, %s267_s24, [#allocation4 + $0xb], %s5096_s6, %s5096_s6, %s5101_s19 }
 0x17c   :  { %s5510_s16 = sld [smem:[#allocation5 + $0xd]]  ;;  %s5111_s13 = smov [#allocation2 + $0x24]  }
 0x17d   :  { %s280_s0 = sshll.u32 %s5111_s13, 4  ;;  %s5112_s10 = smov [#allocation2 + $0x25]   ;;  %s5512_s0 = int_to_ptr.vmem [resolvable:$true] %s280_s0 }
 0x17e   :  { %s294_s27 = sshll.u32 %s5112_s10, 4  ;;  %s5516_s21 = sld [smem:[#allocation5 + $0xe]]  ;;  %s5514_s27 = int_to_ptr.vmem [resolvable:$true] %s294_s27 }
 0x17f   :  { %s271_s8 = sshrl.u32 %s5499_s17, 3  ;;  %s272_s30 = sand.u32 7, %s5499_s17  }
 0x180   :  { %s3939_s14 = sshll.u32 %s271_s8, 5 }
 0x181   :  { %s274_s5 = sadd.s32 %s3939_s14, %s272_s30 }
 0x182   :  { %s285_s24 = sshrl.u32 %s5510_s16, 3  ;;  %s3940_s23 = sshll.u32 %s274_s5, 4 }
 0x183   :  { %s286_s29 = sand.u32 7, %s5510_s16   ;;  %s276_s28 = scalar_lea.hbm %s5895_s1, %s3940_s23 }
 0x184   :  { %s3942_s25 = sshll.u32 %s285_s24, 5  ;;  %s4883_s20 = scalar_lea.hbm %s276_s28, 64 }
 0x185   :  { %p4884_p11 = scmp.ne.s32.totalorder %s276_s28, %s4883_s20  ;;  %p4886_p12 = scmp.lt.u32.totalorder %s276_s28, %s5895_s1 }
 0x186   :  { %p4887_p13 = scmp.lt.u32.totalorder %s5276_s4, %s4883_s20  ;;  %p4889_p1 = scmp.lt.u32.totalorder %s4883_s20, %s276_s28 }
 0x188   :  { %p4888_p0 = por %p4887_p13, %p4886_p12 }
 0x18a   :  { %p4890_p2 = por %p4889_p1, %p4888_p0 }
 0x18c   :  { %p4891_p3 = pnand %p4890_p2, %p4884_p11 }
 0x18e   :  { %4894 = shalt.err (!%p4891_p3)  }
 0x18f   :  { %s4895_s17 = scalar_lea.vmem %s5512_s0, 64  ;;  %p4900_p5 = scmp.lt.s32.totalorder %s5512_s0, %s5258_s22 }
 0x190   :  { %p4896_p4 = scmp.ne.s32.totalorder %s5512_s0, %s4895_s17  ;;  %p4901_p6 = scmp.lt.s32.totalorder %s5285_s18, %s4895_s17 }
 0x192   :  { %p4902_p7 = por %p4901_p6, %p4900_p5 }
 0x194   :  { %p4903_p8 = pnand %p4902_p7, %p4896_p4 }
 0x196   :  { %4906 = shalt.err (!%p4903_p8)  }
 0x197   :  { %283 = dma.hbm_to_vmem [thread:$0]  %s276_s28, 64, %s5512_s0, [#allocation4 + $0xc], %s5096_s6, %s5096_s6, %s5101_s19 }
 0x198   :  { %s288_s16 = sadd.s32 %s3942_s25, %s286_s29  ;;  %s299_s8 = sshrl.u32 %s5516_s21, 3 }
 0x199   :  { %s3943_s30 = sshll.u32 %s288_s16, 4  ;;  %s300_s14 = sand.u32 7, %s5516_s21  }
 0x19a   :  { %s290_s23 = scalar_lea.hbm %s5895_s1, %s3943_s30  ;;  %s3945_s26 = sshll.u32 %s299_s8, 5 }
 0x19b   :  { %s4907_s15 = scalar_lea.hbm %s290_s23, 64  ;;  %p4910_p10 = scmp.lt.u32.totalorder %s290_s23, %s5895_s1 }
 0x19c   :  { %p4908_p9 = scmp.ne.s32.totalorder %s290_s23, %s4907_s15  ;;  %p4911_p11 = scmp.lt.u32.totalorder %s5276_s4, %s4907_s15 }
 0x19d   :  { %p4913_p13 = scmp.lt.u32.totalorder %s4907_s15, %s290_s23 }
 0x19e   :  { %p4912_p12 = por %p4911_p11, %p4910_p10 }
 0x1a0   :  { %p4914_p0 = por %p4913_p13, %p4912_p12 }
 0x1a2   :  { %p4915_p1 = pnand %p4914_p0, %p4908_p9 }
 0x1a4   :  { %4918 = shalt.err (!%p4915_p1)  }
 0x1a5   :  { %s4919_s0 = scalar_lea.vmem %s5514_s27, 64  ;;  %p4924_p3 = scmp.lt.s32.totalorder %s5514_s27, %s5258_s22 }
 0x1a6   :  { %p4920_p2 = scmp.ne.s32.totalorder %s5514_s27, %s4919_s0  ;;  %p4925_p4 = scmp.lt.s32.totalorder %s5285_s18, %s4919_s0 }
 0x1a8   :  { %p4926_p5 = por %p4925_p4, %p4924_p3 }
 0x1aa   :  { %p4927_p6 = pnand %p4926_p5, %p4920_p2 }
 0x1ac   :  { %4930 = shalt.err (!%p4927_p6)  }
 0x1ad   :  { %297 = dma.hbm_to_vmem [thread:$0]  %s290_s23, 64, %s5514_s27, [#allocation4 + $0xd], %s5096_s6, %s5096_s6, %s5101_s19 }
 0x1ae   :  { %s302_s21 = sadd.s32 %s3945_s26, %s300_s14  ;;  %s5113_s29 = smov [#allocation2 + $0x26]  }
 0x1af   :  { %s308_s28 = sshll.u32 %s5113_s29, 4  ;;  %s3946_s25 = sshll.u32 %s302_s21, 4  ;;  %s309_s28 = int_to_ptr.vmem [resolvable:$true] %s308_s28 }
 0x1b0   :  { %s304_s16 = scalar_lea.hbm %s5895_s1, %s3946_s25  ;;  %s3947_s8 = sld [smem:[#allocation5 + $0xf]] }
 0x1b1   :  { %s4931_s30 = scalar_lea.hbm %s304_s16, 64  ;;  %p4934_p8 = scmp.lt.u32.totalorder %s304_s16, %s5895_s1 }
 0x1b2   :  { %p4932_p7 = scmp.ne.s32.totalorder %s304_s16, %s4931_s30  ;;  %p4935_p9 = scmp.lt.u32.totalorder %s5276_s4, %s4931_s30 }
 0x1b3   :  { %p4937_p11 = scmp.lt.u32.totalorder %s4931_s30, %s304_s16 }
 0x1b4   :  { %p4936_p10 = por %p4935_p9, %p4934_p8 }
 0x1b6   :  { %p4938_p12 = por %p4937_p11, %p4936_p10 }
 0x1b8   :  { %p4939_p13 = pnand %p4938_p12, %p4932_p7 }
 0x1ba   :  { %4942 = shalt.err (!%p4939_p13)  }
 0x1bb   :  { %s4943_s27 = scalar_lea.vmem %s309_s28, 64  ;;  %p4948_p1 = scmp.lt.s32.totalorder %s309_s28, %s5258_s22 }
 0x1bc   :  { %p4944_p0 = scmp.ne.s32.totalorder %s309_s28, %s4943_s27  ;;  %p4949_p2 = scmp.lt.s32.totalorder %s5285_s18, %s4943_s27 }
 0x1be   :  { %p4950_p3 = por %p4949_p2, %p4948_p1 }
 0x1c0   :  { %p4951_p4 = pnand %p4950_p3, %p4944_p0 }
 0x1c2   :  { %4954 = shalt.err (!%p4951_p4)  }
 0x1c3   :  { %311 = dma.hbm_to_vmem [thread:$0]  %s304_s16, 64, %s309_s28, [#allocation4 + $0xe], %s5096_s6, %s5096_s6, %s5101_s19 }
 0x1c4   :  { %s5114_s14 = smov [#allocation2 + $0x27]   ;;  %s313_s26 = sshrl.u32 %s3947_s8, 3 }
 0x1c5   :  { %s322_s23 = sshll.u32 %s5114_s14, 4  ;;  %s314_s15 = sand.u32 7, %s3947_s8   ;;  %s323_s23 = int_to_ptr.vmem [resolvable:$true] %s322_s23 }
 0x1c6   :  { %s3948_s20 = sshll.u32 %s313_s26, 5 }
 0x1c7   :  { %s316_s13 = sadd.s32 %s3948_s20, %s314_s15 }
 0x1c8   :  { %s3949_s0 = sshll.u32 %s316_s13, 4 }
 0x1c9   :  { %s318_s25 = scalar_lea.hbm %s5895_s1, %s3949_s0 }
 0x1ca   :  { %s4955_s10 = scalar_lea.hbm %s318_s25, 64  ;;  %p4958_p6 = scmp.lt.u32.totalorder %s318_s25, %s5895_s1 }
 0x1cb   :  { %p4956_p5 = scmp.ne.s32.totalorder %s318_s25, %s4955_s10  ;;  %p4959_p7 = scmp.lt.u32.totalorder %s5276_s4, %s4955_s10 }
 0x1cc   :  { %p4961_p9 = scmp.lt.u32.totalorder %s4955_s10, %s318_s25 }
 0x1cd   :  { %p4960_p8 = por %p4959_p7, %p4958_p6 }
 0x1cf   :  { %p4962_p10 = por %p4961_p9, %p4960_p8 }
 0x1d1   :  { %p4963_p11 = pnand %p4962_p10, %p4956_p5 }
 0x1d3   :  { %4966 = shalt.err (!%p4963_p11)  }
 0x1d4   :  { %s4967_s28 = scalar_lea.vmem %s323_s23, 64  ;;  %p4972_p13 = scmp.lt.s32.totalorder %s323_s23, %s5258_s22 }
 0x1d5   :  { %p4968_p12 = scmp.ne.s32.totalorder %s323_s23, %s4967_s28  ;;  %p4973_p0 = scmp.lt.s32.totalorder %s5285_s18, %s4967_s28 }
 0x1d7   :  { %p4974_p1 = por %p4973_p0, %p4972_p13 }
 0x1d9   :  { %p4975_p2 = pnand %p4974_p1, %p4968_p12 }
 0x1db   :  { %4978 = shalt.err (!%p4975_p2)  }
 0x1dc   :  { %325 = dma.hbm_to_vmem [thread:$0]  %s318_s25, 64, %s323_s23, [#allocation4 + $0xf], %s5096_s6, %s5096_s6, %s5101_s19 }
 0x1dd   :  { %5053 = dma.done.wait [#allocation4], 64 }
 0x1de   :  { %5054 = vsyncadd [#allocation4], 4294967232 }
 0x1df   :  { %5055 = dma.done.wait [#allocation4 + $0x1], 64 }
 0x1e0   :  { %5056 = vsyncadd [#allocation4 + $0x1], 4294967232 }
 0x1e1   :  { %5057 = dma.done.wait [#allocation4 + $0x2], 64 }
 0x1e2   :  { %5058 = vsyncadd [#allocation4 + $0x2], 4294967232 }
 0x1e3   :  { %5059 = dma.done.wait [#allocation4 + $0x3], 64 }
 0x1e4   :  { %5060 = vsyncadd [#allocation4 + $0x3], 4294967232 }
 0x1e5   :  { %5061 = dma.done.wait [#allocation4 + $0x4], 64 }
 0x1e6   :  { %5062 = vsyncadd [#allocation4 + $0x4], 4294967232 }
 0x1e7   :  { %5063 = dma.done.wait [#allocation4 + $0x5], 64 }
 0x1e8   :  { %5064 = vsyncadd [#allocation4 + $0x5], 4294967232 }
 0x1e9   :  { %5065 = dma.done.wait [#allocation4 + $0x6], 64 }
 0x1ea   :  { %5066 = vsyncadd [#allocation4 + $0x6], 4294967232 }
 0x1eb   :  { %5067 = dma.done.wait [#allocation4 + $0x7], 64 }
 0x1ec   :  { %5068 = vsyncadd [#allocation4 + $0x7], 4294967232 }
 0x1ed   :  { %5069 = dma.done.wait [#allocation4 + $0x8], 64 }
 0x1ee   :  { %5070 = vsyncadd [#allocation4 + $0x8], 4294967232 }
 0x1ef   :  { %5071 = dma.done.wait [#allocation4 + $0x9], 64 }
 0x1f0   :  { %5072 = vsyncadd [#allocation4 + $0x9], 4294967232 }
 0x1f1   :  { %5073 = dma.done.wait [#allocation4 + $0xa], 64 }
 0x1f2   :  { %5074 = vsyncadd [#allocation4 + $0xa], 4294967232 }
 0x1f3   :  { %5075 = dma.done.wait [#allocation4 + $0xb], 64 }
 0x1f4   :  { %5076 = vsyncadd [#allocation4 + $0xb], 4294967232 }
 0x1f5   :  { %5077 = dma.done.wait [#allocation4 + $0xc], 64 }
 0x1f6   :  { %5078 = vsyncadd [#allocation4 + $0xc], 4294967232 }
 0x1f7   :  { %5079 = dma.done.wait [#allocation4 + $0xd], 64 }
 0x1f8   :  { %5080 = vsyncadd [#allocation4 + $0xd], 4294967232 }
 0x1f9   :  { %5081 = dma.done.wait [#allocation4 + $0xe], 64 }
 0x1fa   :  { %5082 = vsyncadd [#allocation4 + $0xe], 4294967232 }
 0x1fb   :  { %5083 = dma.done.wait [#allocation4 + $0xf], 64 }
 0x1fc   :  { %5084 = vsyncadd [#allocation4 + $0xf], 4294967232  ;;  %v5115_v0 = vmov 0.0   ;;  %v376_v1 = vld [vmem:[#allocation9 + $0x8] sm:$0xff]  ;;  %v375_v3 = vld [vmem:[#allocation9] sm:$0xff]  ;;  %vm397_vm0 = vcmask 261120  }
 0x1fd   :  { %465 = vmatprep.mubr.f32.mxu0 %v5115_v0  ;;  %536 = vmatprep.mubr.f32.mxu1 %v5115_v0  ;;  %v380_v2 = vld [vmem:[#allocation9 + $0x28] sm:$0xff]  ;;  %v379_v5 = vld [vmem:[#allocation9 + $0x20] sm:$0xff]  ;;  %v378_v12 = vld [vmem:[#allocation9 + $0x18] sm:$0xff]  ;;  %vm5117_vm1 = vmmov 0   ;;  %vm3665_vm3 = vcmask 1041408   ;;  %s5118_s24 = smov [#allocation16]  }
 0x1fe   :  { %v5582_v4 = vpack.c.bf16 %v380_v2, %v376_v1  ;;  %v384_v6 = vld [vmem:[#allocation9 + $0x48] sm:$0xff]  ;;  %v5584_v8 = vpack.c.bf16 %v379_v5, %v375_v3  ;;  %v383_v10 = vld [vmem:[#allocation9 + $0x40] sm:$0xff]  ;;  %v382_v13 = vld [vmem:[#allocation9 + $0x38] sm:$0xff]  ;;  %s3694_s27 = sshll.u32 %s5118_s24, 4  ;;  %s3695_s27 = int_to_ptr.vmem [resolvable:$true] %s3694_s27 }
 0x1ff   :  { %v388_v7 = vld [vmem:[#allocation9 + $0x68] sm:$0xff]  ;;  %v387_v11 = vld [vmem:[#allocation9 + $0x60] sm:$0xff]  ;;  %v377_v14 = vld [vmem:[#allocation9 + $0x10] sm:$0xff]  ;;  %v5592_v17 = vpack.c.bf16 %v382_v13, %v378_v12  ;;  %s4979_s14 = scalar_lea.vmem %s3695_s27, 64  ;;  %p4984_p4 = scmp.lt.s32.totalorder %s3695_s27, %s3695_s27 }
 0x200   :  { %v5586_v9 = vpack.c.bf16 %v388_v7, %v384_v6  ;;  %4023 = vmatprep.subr.bf16.mxu0 %v5582_v4  ;;  %v381_v15 = vld [vmem:[#allocation9 + $0x30] sm:$0xff]  ;;  %v5590_v16 = vpack.c.bf16 %v387_v11, %v383_v10  ;;  %v386_v19 = vld [vmem:[#allocation9 + $0x58] sm:$0xff]  ;;  %v395_v31 = vld [vmem:[#allocation2 + $0x10] sm:$0x3]  ;;  %p4980_p3 = scmp.ne.s32.totalorder %s3695_s27, %s4979_s14  ;;  %p4985_p5 = scmp.lt.s32.totalorder %s4979_s14, %s4979_s14 }
 0x201   :  { %4025 = vmatpush1.bf16.msra.mxu0 %v5584_v8  ;;  %v5594_v18 = vpack.c.bf16 %v381_v15, %v377_v14  ;;  %v390_v20 = vld [vmem:[#allocation9 + $0x78] sm:$0xff]  ;;  %v385_v22 = vld [vmem:[#allocation9 + $0x50] sm:$0xff]  ;;  %4031 = vmatprep.subr.bf16.mxu1 %v5592_v17  ;;  %v396_v38 = vld [vmem:[#allocation2 + $0x18] sm:$0x3] }
 0x202   :  { %4027 = vmatprep.subr.bf16.mxu0 %v5586_v9  ;;  %v5597_v21 = vpack.c.bf16 %v390_v20, %v386_v19  ;;  %v389_v23 = vld [vmem:[#allocation9 + $0x70] sm:$0xff]  ;;  %v391_v25 = vld [vmem:[%s5896_s2] sm:$0x3]  ;;  %v567_v61 = vld [vmem:[#allocation2 + $0x8] sm:$0xc]  ;;  %p4986_p6 = por %p4985_p5, %p4984_p4 }
 0x203   :  { %4033 = vmatpush1.bf16.msra.mxu1 %v5594_v18  ;;  %v5601_v24 = vpack.c.bf16 %v389_v23, %v385_v22  ;;  %v393_v26 = vld [vmem:[#allocation2] sm:$0x3]  ;;  %v394_v27 = vld [vmem:[#allocation2 + $0x8] sm:$0x3]  ;;  %v566_v57 = vld [vmem:[#allocation2] sm:$0xc] }
 0x204   :  { %4035 = vmatprep.subr.bf16.mxu1 %v5597_v21  ;;  %v392_v47 = vld [vmem:[%s5897_s3] sm:$0x3]  ;;  %v568_v5 = vld [vmem:[#allocation2 + $0x10] sm:$0xc]  ;;  %v569_v13 = vld [vmem:[#allocation2 + $0x18] sm:$0xc]  ;;  %p4987_p7 = pnand %p4986_p6, %p4980_p3 }
 0x205   :  { %4029 = vmatpush1.bf16.msra.mxu0 %v5590_v16 }
 0x206   :  { %4039 = vmatprep.subr.bf16.mxu0 %v5582_v4 }
 0x207   :  { %4037 = vmatpush1.bf16.msra.mxu1 %v5601_v24 }
 0x208   :  { %3950 = vmatmul.mubr.msk.f32.vlgmr.msra.gmra.mrb[0].mxu0 %vm397_vm0, %v391_v25  ;;  %4047 = vmatprep.subr.bf16.mxu1 %v5592_v17 }
 0x209   :  { %4041 = vmatpush1.bf16.msra.mxu0 %v5584_v8  ;;  %637 = vmatprep.mubr.f32.mxu0 %v5115_v0 }
 0x20a   :  { %4043 = vmatprep.subr.bf16.mxu0 %v5586_v9  ;;  %3951 = vmatmul.mubr.msk.f32.vlgmr.msra.gmra.mrb[0].mxu1 %vm397_vm0, %v391_v25 }
 0x20b   :  { %4049 = vmatpush1.bf16.msra.mxu1 %v5594_v18  ;;  %708 = vmatprep.mubr.f32.mxu1 %v5115_v0 }
 0x20c   :  { %4051 = vmatprep.subr.bf16.mxu1 %v5597_v21 }
 0x20d   :  { %4045 = vmatpush1.bf16.msra.mxu0 %v5590_v16 }
 0x20e   :  { %4055 = vmatprep.subr.bf16.mxu0 %v5582_v4 }
 0x20f   :  { %4053 = vmatpush1.bf16.msra.mxu1 %v5601_v24 }
 0x210   :  { %4063 = vmatprep.subr.bf16.mxu1 %v5592_v17 }
 0x2db   :  { %v467_v28 = vpop.f32.mrb[0].mxu0 }
 0x2dc   :  { %v543_v29 = vadd.f32 %v467_v28, %v393_v26  ;;  %v469_v30 = vpop.f32.mrb[1].mxu0 }
 0x2dd   :  { %v544_v32 = vadd.f32 %v469_v30, %v394_v27  ;;  %v538_v34 = vpop.f32.mrb[0].mxu1 }
 0x2de   :  { %v547_v33 = vmul.f32 0.5, %v543_v29  ;;  %v545_v36 = vadd.f32 %v538_v34, %v395_v31  ;;  %v540_v37 = vpop.f32.mrb[1].mxu1 }
 0x2df   :  { %v551_v35 = vmul.f32 0.5, %v544_v32  ;;  %v546_v39 = vadd.f32 %v540_v37, %v396_v38  ;;  %v753_v38 = vld [vmem:[#allocation2] sm:$0x30] }
 0x2e0   :  { %4333 = vtanh.f32 %v547_v33 }
 0x2e1   :  { %4335 = vtanh.f32 %v551_v35  ;;  %v556_v40 = vmul.f32 0.5, %v546_v39 }
 0x2e2   :  { %4337 = vtanh.f32 %v545_v36 }
 0x2e3   :  { %4339 = vtanh.f32 %v556_v40 }
 0x2ea   :  { %v4334_v41 = vpop.eup %4333 }
 0x2eb   :  { %v4336_v42 = vpop.eup %4335  ;;  %v549_v43 = vmul.f32 0.5, %v4334_v41 }
 0x2ec   :  { %v4338_v44 = vpop.eup %4337  ;;  %v553_v45 = vmul.f32 0.5, %v4336_v42  ;;  %v754_v42 = vld [vmem:[#allocation2 + $0x8] sm:$0x30] }
 0x2ed   :  { %v550_v46 = vadd.f32 0.5, %v549_v43  ;;  %v4340_v52 = vpop.eup %4339 }
 0x2ee   :  { %v554_v48 = vadd.f32 0.5, %v553_v45  ;;  %v558_v53 = vmul.f32 0.5, %v4340_v52 }
 0x2ef   :  { %v561_v49 = vmul.f32 %v4338_v44, %v550_v46 }
 0x2f0   :  { %v560_v50 = vmul.f32 %v554_v48, %v392_v47  ;;  %v559_v54 = vadd.f32 0.5, %v558_v53  ;;  %v755_v48 = vld [vmem:[#allocation2 + $0x10] sm:$0x30] }
 0x2f2   :  { %v562_v51 = vadd.f32 %v561_v49, %v560_v50 }
 0x2f4   :  { %4341 = vtanh.f32 %v562_v51  ;;  %v745_v28 = vrot.slane %v562_v51, 6 }
 0x2fe   :  { %v4342_v55 = vpop.eup %4341 }
 0x2ff   :  { %v564_v56 = vmul.f32 %v4342_v55, %v559_v54  ;;  %v756_v54 = vld [vmem:[#allocation2 + $0x18] sm:$0x30] }
 0x301   :  { %565 = vst [vmem:[#allocation3] sm:$0x3] %v564_v56  ;;  %3952 = vmatmul.mubr.msk.f32.vlgmr.msra.gmra.mrb[2].mxu0 %vm397_vm0, %v564_v56  ;;  %3953 = vmatmul.mubr.msk.f32.vlgmr.msra.gmra.mrb[2].mxu1 %vm397_vm0, %v564_v56 }
 0x302   :  { %4057 = vmatpush1.bf16.msra.mxu0 %v5584_v8  ;;  %4065 = vmatpush1.bf16.msra.mxu1 %v5594_v18 }
 0x303   :  { %4059 = vmatprep.subr.bf16.mxu0 %v5586_v9  ;;  %4067 = vmatprep.subr.bf16.mxu1 %v5597_v21 }
 0x304   :  { %825 = vmatprep.mubr.f32.mxu0 %v5115_v0  ;;  %896 = vmatprep.mubr.f32.mxu1 %v5115_v0 }
 0x306   :  { %4061 = vmatpush1.bf16.msra.mxu0 %v5590_v16  ;;  %4069 = vmatpush1.bf16.msra.mxu1 %v5601_v24 }
 0x307   :  { %4071 = vmatprep.subr.bf16.mxu0 %v5582_v4  ;;  %4079 = vmatprep.subr.bf16.mxu1 %v5592_v17 }
 0x3d4   :  { %v639_v58 = vpop.f32.mrb[2].mxu0  ;;  %v710_v59 = vpop.f32.mrb[2].mxu1 }
 0x3d5   :  { %v719_v60 = vrot.slane %v639_v58, 6  ;;  %v641_v62 = vpop.f32.mrb[3].mxu0  ;;  %v712_v63 = vpop.f32.mrb[3].mxu1  ;;  %v721_v3 = vrot.slane %v710_v59, 6 }
 0x3d6   :  { %v720_v1 = vrot.slane %v641_v62, 6  ;;  %v722_v12 = vrot.slane %v712_v63, 6 }
 0x3d7   :  { %v727_v2 = vadd.f32 %v719_v60, %v566_v57  ;;  %v729_v11 = vadd.f32 %v721_v3, %v568_v5 }
 0x3d8   :  { %v728_v6 = vadd.f32 %v720_v1, %v567_v61  ;;  %v730_v14 = vadd.f32 %v722_v12, %v569_v13 }
 0x3d9   :  { %v731_v7 = vmul.f32 0.5, %v727_v2 }
 0x3da   :  { %v735_v10 = vmul.f32 0.5, %v728_v6  ;;  %v740_v15 = vmul.f32 0.5, %v730_v14  ;;  %v941_v14 = vld [vmem:[#allocation2] sm:$0xc0] }
 0x3db   :  { %4343 = vtanh.f32 %v731_v7 }
 0x3dc   :  { %4345 = vtanh.f32 %v735_v10 }
 0x3dd   :  { %4347 = vtanh.f32 %v729_v11 }
 0x3de   :  { %4349 = vtanh.f32 %v740_v15 }
 0x3e5   :  { %v4344_v19 = vpop.eup %4343 }
 0x3e6   :  { %v4346_v20 = vpop.eup %4345  ;;  %v733_v22 = vmul.f32 0.5, %v4344_v19 }
 0x3e7   :  { %v737_v23 = vmul.f32 0.5, %v4346_v20  ;;  %v4348_v26 = vpop.eup %4347 }
 0x3e8   :  { %v734_v25 = vadd.f32 0.5, %v733_v22  ;;  %v4350_v32 = vpop.eup %4349  ;;  %v942_v22 = vld [vmem:[#allocation2 + $0x8] sm:$0xc0] }
 0x3e9   :  { %v738_v27 = vadd.f32 0.5, %v737_v23  ;;  %v742_v33 = vmul.f32 0.5, %v4350_v32 }
 0x3ea   :  { %v748_v29 = vmul.f32 %v4348_v26, %v734_v25 }
 0x3eb   :  { %v747_v30 = vmul.f32 %v745_v28, %v738_v27  ;;  %v743_v34 = vadd.f32 0.5, %v742_v33 }
 0x3ed   :  { %v749_v31 = vadd.f32 %v748_v29, %v747_v30  ;;  %v943_v29 = vld [vmem:[#allocation2 + $0x10] sm:$0xc0] }
 0x3ef   :  { %4351 = vtanh.f32 %v749_v31  ;;  %v933_v1 = vrot.slane %v749_v31, 6 }
 0x3f9   :  { %v4352_v35 = vpop.eup %4351 }
 0x3fa   :  { %v751_v36 = vmul.f32 %v4352_v35, %v743_v34  ;;  %v944_v35 = vld [vmem:[#allocation2 + $0x18] sm:$0xc0] }
 0x3fc   :  { %752 = vst [vmem:[#allocation3] sm:$0xc] %v751_v36  ;;  %v758_v37 = vrot.slane %v751_v36, 2 }
 0x3fe   :  { %3954 = vmatmul.mubr.msk.f32.vlgmr.msra.gmra.mrb[4].mxu0 %vm397_vm0, %v758_v37  ;;  %3955 = vmatmul.mubr.msk.f32.vlgmr.msra.gmra.mrb[4].mxu1 %vm397_vm0, %v758_v37 }
 0x3ff   :  { %4073 = vmatpush1.bf16.msra.mxu0 %v5584_v8  ;;  %4081 = vmatpush1.bf16.msra.mxu1 %v5594_v18 }
 0x400   :  { %4075 = vmatprep.subr.bf16.mxu0 %v5586_v9  ;;  %4083 = vmatprep.subr.bf16.mxu1 %v5597_v21 }
 0x401   :  { %1013 = vmatprep.mubr.f32.mxu0 %v5115_v0  ;;  %1084 = vmatprep.mubr.f32.mxu1 %v5115_v0 }
 0x403   :  { %4077 = vmatpush1.bf16.msra.mxu0 %v5590_v16  ;;  %4085 = vmatpush1.bf16.msra.mxu1 %v5601_v24 }
 0x404   :  { %4087 = vmatprep.subr.bf16.mxu0 %v5582_v4  ;;  %4095 = vmatprep.subr.bf16.mxu1 %v5592_v17 }
 0x4d1   :  { %v827_v39 = vpop.f32.mrb[4].mxu0  ;;  %v898_v40 = vpop.f32.mrb[4].mxu1 }
 0x4d2   :  { %v907_v41 = vrot.slane %v827_v39, 4  ;;  %v829_v43 = vpop.f32.mrb[5].mxu0  ;;  %v900_v44 = vpop.f32.mrb[5].mxu1  ;;  %v909_v47 = vrot.slane %v898_v40, 4 }
 0x4d3   :  { %v908_v45 = vrot.slane %v829_v43, 4  ;;  %v910_v53 = vrot.slane %v900_v44, 4 }
 0x4d4   :  { %v915_v46 = vadd.f32 %v907_v41, %v753_v38  ;;  %v917_v52 = vadd.f32 %v909_v47, %v755_v48 }
 0x4d5   :  { %v916_v49 = vadd.f32 %v908_v45, %v754_v42  ;;  %v918_v55 = vadd.f32 %v910_v53, %v756_v54 }
 0x4d6   :  { %v919_v50 = vmul.f32 0.5, %v915_v46 }
 0x4d7   :  { %v923_v51 = vmul.f32 0.5, %v916_v49  ;;  %v928_v56 = vmul.f32 0.5, %v918_v55  ;;  %v1129_v55 = vld [vmem:[#allocation2 + $0x20] sm:$0x3] }
 0x4d8   :  { %4353 = vtanh.f32 %v919_v50 }
 0x4d9   :  { %4355 = vtanh.f32 %v923_v51 }
 0x4da   :  { %4357 = vtanh.f32 %v917_v52 }
 0x4db   :  { %4359 = vtanh.f32 %v928_v56  ;;  %v1130_v56 = vld [vmem:[#allocation2 + $0x28] sm:$0x3] }
 0x4e2   :  { %v4354_v57 = vpop.eup %4353 }
 0x4e3   :  { %v4356_v58 = vpop.eup %4355  ;;  %v921_v59 = vmul.f32 0.5, %v4354_v57 }
 0x4e4   :  { %v925_v60 = vmul.f32 0.5, %v4356_v58  ;;  %v4358_v62 = vpop.eup %4357 }
 0x4e5   :  { %v922_v61 = vadd.f32 0.5, %v921_v59  ;;  %v4360_v6 = vpop.eup %4359 }
 0x4e6   :  { %v926_v63 = vadd.f32 0.5, %v925_v60  ;;  %v930_v7 = vmul.f32 0.5, %v4360_v6 }
 0x4e7   :  { %v936_v2 = vmul.f32 %v4358_v62, %v922_v61  ;;  %v1131_v62 = vld [vmem:[#allocation2 + $0x30] sm:$0x3] }
 0x4e8   :  { %v935_v3 = vmul.f32 %v933_v1, %v926_v63  ;;  %v931_v10 = vadd.f32 0.5, %v930_v7 }
 0x4ea   :  { %v937_v5 = vadd.f32 %v936_v2, %v935_v3 }
 0x4ec   :  { %4361 = vtanh.f32 %v937_v5  ;;  %v1121_v45 = vrot.slane %v937_v5, 6  ;;  %v1132_v5 = vld [vmem:[#allocation2 + $0x38] sm:$0x3] }
 0x4f6   :  { %v4362_v11 = vpop.eup %4361 }
 0x4f7   :  { %v939_v12 = vmul.f32 %v4362_v11, %v931_v10 }
 0x4f9   :  { %940 = vst [vmem:[#allocation3] sm:$0x30] %v939_v12  ;;  %v946_v13 = vrot.slane %v939_v12, 4 }
 0x4fb   :  { %3956 = vmatmul.mubr.msk.f32.vlgmr.msra.gmra.mrb[6].mxu0 %vm397_vm0, %v946_v13  ;;  %3957 = vmatmul.mubr.msk.f32.vlgmr.msra.gmra.mrb[6].mxu1 %vm397_vm0, %v946_v13 }
 0x4fc   :  { %4089 = vmatpush1.bf16.msra.mxu0 %v5584_v8  ;;  %4097 = vmatpush1.bf16.msra.mxu1 %v5594_v18 }
 0x4fd   :  { %4091 = vmatprep.subr.bf16.mxu0 %v5586_v9  ;;  %4099 = vmatprep.subr.bf16.mxu1 %v5597_v21 }
 0x4fe   :  { %1201 = vmatprep.mubr.f32.mxu0 %v5115_v0  ;;  %1272 = vmatprep.mubr.f32.mxu1 %v5115_v0 }
 0x500   :  { %4093 = vmatpush1.bf16.msra.mxu0 %v5590_v16  ;;  %4101 = vmatpush1.bf16.msra.mxu1 %v5601_v24 }
 0x501   :  { %4103 = vmatprep.subr.bf16.mxu0 %v5582_v4  ;;  %4111 = vmatprep.subr.bf16.mxu1 %v5592_v17 }
 0x5ce   :  { %v1015_v15 = vpop.f32.mrb[6].mxu0  ;;  %v1086_v19 = vpop.f32.mrb[6].mxu1 }
 0x5cf   :  { %v1095_v20 = vrot.slane %v1015_v15, 2  ;;  %v1017_v23 = vpop.f32.mrb[7].mxu0  ;;  %v1088_v25 = vpop.f32.mrb[7].mxu1  ;;  %v1097_v28 = vrot.slane %v1086_v19, 2 }
 0x5d0   :  { %v1096_v26 = vrot.slane %v1017_v23, 2  ;;  %v1098_v34 = vrot.slane %v1088_v25, 2 }
 0x5d1   :  { %v1103_v27 = vadd.f32 %v1095_v20, %v941_v14  ;;  %v1105_v33 = vadd.f32 %v1097_v28, %v943_v29 }
 0x5d2   :  { %v1104_v30 = vadd.f32 %v1096_v26, %v942_v22  ;;  %v1106_v36 = vadd.f32 %v1098_v34, %v944_v35  ;;  %v1306_v35 = vld [vmem:[#allocation2 + $0x28] sm:$0xc] }
 0x5d3   :  { %v1107_v31 = vmul.f32 0.5, %v1103_v27 }
 0x5d4   :  { %v1111_v32 = vmul.f32 0.5, %v1104_v30  ;;  %v1116_v37 = vmul.f32 0.5, %v1106_v36 }
 0x5d5   :  { %4363 = vtanh.f32 %v1107_v31  ;;  %v1305_v31 = vld [vmem:[#allocation2 + $0x20] sm:$0xc] }
 0x5d6   :  { %4365 = vtanh.f32 %v1111_v32 }
 0x5d7   :  { %4367 = vtanh.f32 %v1105_v33 }
 0x5d8   :  { %4369 = vtanh.f32 %v1116_v37 }
 0x5df   :  { %v4364_v38 = vpop.eup %4363 }
 0x5e0   :  { %v4366_v39 = vpop.eup %4365  ;;  %v1109_v40 = vmul.f32 0.5, %v4364_v38 }
 0x5e1   :  { %v1113_v41 = vmul.f32 0.5, %v4366_v39  ;;  %v4368_v43 = vpop.eup %4367 }
 0x5e2   :  { %v1110_v42 = vadd.f32 0.5, %v1109_v40  ;;  %v4370_v49 = vpop.eup %4369 }
 0x5e3   :  { %v1114_v44 = vadd.f32 0.5, %v1113_v41  ;;  %v1118_v50 = vmul.f32 0.5, %v4370_v49  ;;  %v1307_v41 = vld [vmem:[#allocation2 + $0x30] sm:$0xc] }
 0x5e4   :  { %v1124_v46 = vmul.f32 %v4368_v43, %v1110_v42 }
 0x5e5   :  { %v1123_v47 = vmul.f32 %v1121_v45, %v1114_v44  ;;  %v1119_v51 = vadd.f32 0.5, %v1118_v50 }
 0x5e7   :  { %v1125_v48 = vadd.f32 %v1124_v46, %v1123_v47 }
 0x5e9   :  { %4371 = vtanh.f32 %v1125_v48  ;;  %v1297_v20 = vrot.slane %v1125_v48, 6 }
 0x5f3   :  { %v4372_v52 = vpop.eup %4371 }
 0x5f4   :  { %v1127_v53 = vmul.f32 %v4372_v52, %v1119_v51 }
 0x5f6   :  { %1128 = vst [vmem:[#allocation3] sm:$0xc0] %v1127_v53  ;;  %v1134_v54 = vrot.slane %v1127_v53, 6 }
 0x5f8   :  { %3958 = vmatmul.mubr.msk.f32.vlgmr.msra.gmra.mrb[8].mxu0 %vm397_vm0, %v1134_v54  ;;  %3959 = vmatmul.mubr.msk.f32.vlgmr.msra.gmra.mrb[8].mxu1 %vm397_vm0, %v1134_v54 }
 0x5f9   :  { %4105 = vmatpush1.bf16.msra.mxu0 %v5584_v8  ;;  %4113 = vmatpush1.bf16.msra.mxu1 %v5594_v18 }
 0x5fa   :  { %4107 = vmatprep.subr.bf16.mxu0 %v5586_v9  ;;  %4115 = vmatprep.subr.bf16.mxu1 %v5597_v21 }
 0x5fb   :  { %1376 = vmatprep.mubr.f32.mxu0 %v5115_v0  ;;  %1447 = vmatprep.mubr.f32.mxu1 %v5115_v0 }
 0x5fd   :  { %4109 = vmatpush1.bf16.msra.mxu0 %v5590_v16  ;;  %4117 = vmatpush1.bf16.msra.mxu1 %v5601_v24 }
 0x5fe   :  { %4119 = vmatprep.subr.bf16.mxu0 %v5582_v4  ;;  %4127 = vmatprep.subr.bf16.mxu1 %v5592_v17 }
 0x6cb   :  { %v1203_v57 = vpop.f32.mrb[8].mxu0  ;;  %v1274_v58 = vpop.f32.mrb[8].mxu1 }
 0x6cc   :  { %v1279_v59 = vadd.f32 %v1203_v57, %v1129_v55  ;;  %v1205_v60 = vpop.f32.mrb[9].mxu0  ;;  %v1276_v61 = vpop.f32.mrb[9].mxu1  ;;  %v1281_v3 = vadd.f32 %v1274_v58, %v1131_v62 }
 0x6cd   :  { %v1280_v63 = vadd.f32 %v1205_v60, %v1130_v56  ;;  %v1282_v6 = vadd.f32 %v1276_v61, %v1132_v5  ;;  %v1873_v5 = vld [vmem:[#allocation10 + $0x18] sm:$0xff] }
 0x6ce   :  { %v1283_v1 = vmul.f32 0.5, %v1279_v59 }
 0x6cf   :  { %v1287_v2 = vmul.f32 0.5, %v1280_v63  ;;  %v1292_v7 = vmul.f32 0.5, %v1282_v6 }
 0x6d0   :  { %4373 = vtanh.f32 %v1283_v1 }
 0x6d1   :  { %4375 = vtanh.f32 %v1287_v2  ;;  %v1871_v2 = vld [vmem:[#allocation10 + $0x8] sm:$0xff] }
 0x6d2   :  { %4377 = vtanh.f32 %v1281_v3  ;;  %v1875_v3 = vld [vmem:[#allocation10 + $0x28] sm:$0xff] }
 0x6d3   :  { %4379 = vtanh.f32 %v1292_v7  ;;  %v4150_v6 = vpack.c.bf16 %v1875_v3, %v1871_v2  ;;  %v1877_v7 = vld [vmem:[#allocation10 + $0x38] sm:$0xff]  ;;  %v1886_v2 = vld [vmem:[#allocation12] sm:$0xff] }
 0x6da   :  { %v4374_v10 = vpop.eup %4373 }
 0x6db   :  { %v4376_v11 = vpop.eup %4375  ;;  %v1285_v12 = vmul.f32 0.5, %v4374_v10 }
 0x6dc   :  { %v1289_v13 = vmul.f32 0.5, %v4376_v11  ;;  %v4378_v15 = vpop.eup %4377  ;;  %v1493_v11 = vld [vmem:[#allocation2 + $0x28] sm:$0x30] }
 0x6dd   :  { %v1286_v14 = vadd.f32 0.5, %v1285_v12  ;;  %v4380_v26 = vpop.eup %4379 }
 0x6de   :  { %v1290_v19 = vadd.f32 0.5, %v1289_v13  ;;  %v1294_v27 = vmul.f32 0.5, %v4380_v26  ;;  %v1495_v26 = vld [vmem:[#allocation2 + $0x38] sm:$0x30] }
 0x6df   :  { %v1300_v22 = vmul.f32 %v4378_v15, %v1286_v14 }
 0x6e0   :  { %v1299_v23 = vmul.f32 %v1297_v20, %v1290_v19  ;;  %v1295_v28 = vadd.f32 0.5, %v1294_v27  ;;  %v1494_v19 = vld [vmem:[#allocation2 + $0x30] sm:$0x30] }
 0x6e2   :  { %v1301_v25 = vadd.f32 %v1300_v22, %v1299_v23 }
 0x6e4   :  { %4381 = vtanh.f32 %v1301_v25  ;;  %v1484_v55 = vrot.slane %v1301_v25, 6 }
 0x6ee   :  { %v4382_v29 = vpop.eup %4381 }
 0x6ef   :  { %v1303_v30 = vmul.f32 %v4382_v29, %v1295_v28 }
 0x6f1   :  { %1304 = vst [vmem:[#allocation3 + $0x8] sm:$0x3] %v1303_v30  ;;  %3960 = vmatmul.mubr.msk.f32.vlgmr.msra.gmra.mrb[10].mxu0 %vm397_vm0, %v1303_v30  ;;  %3961 = vmatmul.mubr.msk.f32.vlgmr.msra.gmra.mrb[10].mxu1 %vm397_vm0, %v1303_v30 }
 0x6f2   :  { %4121 = vmatpush1.bf16.msra.mxu0 %v5584_v8  ;;  %4129 = vmatpush1.bf16.msra.mxu1 %v5594_v18 }
 0x6f3   :  { %4123 = vmatprep.subr.bf16.mxu0 %v5586_v9  ;;  %4131 = vmatprep.subr.bf16.mxu1 %v5597_v21 }
 0x6f4   :  { %1564 = vmatprep.mubr.f32.mxu0 %v5115_v0  ;;  %1635 = vmatprep.mubr.f32.mxu1 %v5115_v0 }
 0x6f6   :  { %4125 = vmatpush1.bf16.msra.mxu0 %v5590_v16  ;;  %4133 = vmatpush1.bf16.msra.mxu1 %v5601_v24 }
 0x6f7   :  { %4135 = vmatprep.subr.bf16.mxu0 %v5582_v4  ;;  %4143 = vmatprep.subr.bf16.mxu1 %v5592_v17  ;;  %v1308_v4 = vld [vmem:[#allocation2 + $0x38] sm:$0xc] }
 0x7c4   :  { %v1378_v32 = vpop.f32.mrb[10].mxu0  ;;  %v1449_v33 = vpop.f32.mrb[10].mxu1 }
 0x7c5   :  { %v1458_v34 = vrot.slane %v1378_v32, 6  ;;  %v1380_v36 = vpop.f32.mrb[11].mxu0  ;;  %v1451_v37 = vpop.f32.mrb[11].mxu1  ;;  %v1460_v40 = vrot.slane %v1449_v33, 6 }
 0x7c6   :  { %v1459_v38 = vrot.slane %v1380_v36, 6  ;;  %v1461_v46 = vrot.slane %v1451_v37, 6 }
 0x7c7   :  { %v1466_v39 = vadd.f32 %v1458_v34, %v1305_v31  ;;  %v1468_v45 = vadd.f32 %v1460_v40, %v1307_v41 }
 0x7c8   :  { %v1467_v42 = vadd.f32 %v1459_v38, %v1306_v35  ;;  %v1469_v17 = vadd.f32 %v1461_v46, %v1308_v4  ;;  %v1876_v46 = vld [vmem:[#allocation10 + $0x30] sm:$0xff]  ;;  %v1879_v4 = vld [vmem:[#allocation10 + $0x48] sm:$0xff] }
 0x7c9   :  { %v1470_v43 = vmul.f32 0.5, %v1466_v39 }
 0x7ca   :  { %v1474_v44 = vmul.f32 0.5, %v1467_v42  ;;  %v1479_v47 = vmul.f32 0.5, %v1469_v17  ;;  %v1870_v42 = vld [vmem:[#allocation10] sm:$0xff] }
 0x7cb   :  { %4383 = vtanh.f32 %v1470_v43  ;;  %v1874_v43 = vld [vmem:[#allocation10 + $0x20] sm:$0xff] }
 0x7cc   :  { %4385 = vtanh.f32 %v1474_v44 }
 0x7cd   :  { %4387 = vtanh.f32 %v1468_v45  ;;  %v1872_v45 = vld [vmem:[#allocation10 + $0x10] sm:$0xff] }
 0x7ce   :  { %4389 = vtanh.f32 %v1479_v47  ;;  %v1883_v47 = vld [vmem:[#allocation10 + $0x68] sm:$0xff] }
 0x7d5   :  { %v4384_v48 = vpop.eup %4383 }
 0x7d6   :  { %v4386_v49 = vpop.eup %4385  ;;  %v1472_v50 = vmul.f32 0.5, %v4384_v48  ;;  %v1881_v48 = vld [vmem:[#allocation10 + $0x58] sm:$0xff] }
 0x7d7   :  { %v1476_v51 = vmul.f32 0.5, %v4386_v49  ;;  %v4388_v53 = vpop.eup %4387  ;;  %v1885_v49 = vld [vmem:[#allocation10 + $0x78] sm:$0xff] }
 0x7d8   :  { %v1473_v52 = vadd.f32 0.5, %v1472_v50  ;;  %v4390_v59 = vpop.eup %4389 }
 0x7d9   :  { %v1477_v54 = vadd.f32 0.5, %v1476_v51  ;;  %v1481_v60 = vmul.f32 0.5, %v4390_v59  ;;  %v4152_v51 = vpack.c.bf16 %v1874_v43, %v1870_v42  ;;  %v1884_v59 = vld [vmem:[#allocation10 + $0x70] sm:$0xff] }
 0x7da   :  { %v1487_v56 = vmul.f32 %v4388_v53, %v1473_v52  ;;  %v4160_v52 = vpack.c.bf16 %v1876_v46, %v1872_v45  ;;  %v1878_v53 = vld [vmem:[#allocation10 + $0x40] sm:$0xff] }
 0x7db   :  { %v1486_v57 = vmul.f32 %v1484_v55, %v1477_v54  ;;  %v1482_v61 = vadd.f32 0.5, %v1481_v60  ;;  %v4154_v55 = vpack.c.bf16 %v1883_v47, %v1879_v4 }
 0x7dd   :  { %v1488_v58 = vadd.f32 %v1487_v56, %v1486_v57  ;;  %v4162_v56 = vpack.c.bf16 %v1885_v49, %v1881_v48  ;;  %v1882_v57 = vld [vmem:[#allocation10 + $0x60] sm:$0xff] }
 0x7de   :  { %v4156_v60 = vpack.c.bf16 %v1882_v57, %v1878_v53 }
 0x7df   :  { %4391 = vtanh.f32 %v1488_v58  ;;  %v1672_v36 = vrot.slane %v1488_v58, 6  ;;  %v1880_v58 = vld [vmem:[#allocation10 + $0x50] sm:$0xff] }
 0x7e9   :  { %v4392_v62 = vpop.eup %4391 }
 0x7ea   :  { %v1490_v63 = vmul.f32 %v4392_v62, %v1482_v61  ;;  %v4164_v61 = vpack.c.bf16 %v1884_v59, %v1880_v58  ;;  %v1903_v62 = vld [vmem:[#allocation3] sm:$0xff] }
 0x7ec   :  { %1491 = vst [vmem:[#allocation3 + $0x8] sm:$0xc] %v1490_v63  ;;  %v1497_v1 = vrot.slane %v1490_v63, 2  ;;  %v1887_v63 = vld [vmem:[#allocation12 + $0x8] sm:$0xff] }
 0x7ee   :  { %3962 = vmatmul.mubr.msk.f32.vlgmr.msra.gmra.mrb[12].mxu0 %vm397_vm0, %v1497_v1  ;;  %3963 = vmatmul.mubr.msk.f32.vlgmr.msra.gmra.mrb[12].mxu1 %vm397_vm0, %v1497_v1  ;;  %v1891_v1 = vld [vmem:[#allocation12 + $0x28] sm:$0xff] }
 0x7ef   :  { %4137 = vmatpush1.bf16.msra.mxu0 %v5584_v8  ;;  %4145 = vmatpush1.bf16.msra.mxu1 %v5594_v18  ;;  %v4158_v8 = vpack.c.bf16 %v1877_v7, %v1873_v5  ;;  %v1492_v18 = vld [vmem:[#allocation2 + $0x20] sm:$0x30]  ;;  %v5707_v3 = vpack.c.bf16 %v1891_v1, %v1887_v63  ;;  %v1890_v5 = vld [vmem:[#allocation12 + $0x20] sm:$0xff]  ;;  %v1893_v7 = vld [vmem:[#allocation12 + $0x38] sm:$0xff] }
 0x7f0   :  { %4139 = vmatprep.subr.bf16.mxu0 %v5586_v9  ;;  %4147 = vmatprep.subr.bf16.mxu1 %v5597_v21 }
 0x7f1   :  { %1752 = vmatprep.mubr.f32.mxu0 %v5115_v0  ;;  %1823 = vmatprep.mubr.f32.mxu1 %v5115_v0 }
 0x7f3   :  { %4141 = vmatpush1.bf16.msra.mxu0 %v5590_v16  ;;  %4149 = vmatpush1.bf16.msra.mxu1 %v5601_v24 }
 0x7f4   :  { %4151 = vmatprep.subr.bf16.mxu0 %v4150_v6  ;;  %4159 = vmatprep.subr.bf16.mxu1 %v4158_v8  ;;  %v1889_v6 = vld [vmem:[#allocation12 + $0x18] sm:$0xff]  ;;  %v5709_v8 = vpack.c.bf16 %v1890_v5, %v1886_v2 }
 0x8c1   :  { %v1566_v9 = vpop.f32.mrb[12].mxu0  ;;  %v1637_v10 = vpop.f32.mrb[12].mxu1 }
 0x8c2   :  { %v1646_v21 = vrot.slane %v1566_v9, 4  ;;  %v1568_v12 = vpop.f32.mrb[13].mxu0  ;;  %v1639_v13 = vpop.f32.mrb[13].mxu1  ;;  %v1648_v16 = vrot.slane %v1637_v10, 4  ;;  %v1888_v9 = vld [vmem:[#allocation12 + $0x10] sm:$0xff] }
 0x8c3   :  { %v1647_v14 = vrot.slane %v1568_v12, 4  ;;  %v1649_v25 = vrot.slane %v1639_v13, 4  ;;  %v1892_v10 = vld [vmem:[#allocation12 + $0x30] sm:$0xff]  ;;  %v1899_v12 = vld [vmem:[#allocation12 + $0x68] sm:$0xff] }
 0x8c4   :  { %v1654_v15 = vadd.f32 %v1646_v21, %v1492_v18  ;;  %v1656_v23 = vadd.f32 %v1648_v16, %v1494_v19  ;;  %v5711_v18 = vpack.c.bf16 %v1893_v7, %v1889_v6  ;;  %v1895_v21 = vld [vmem:[#allocation12 + $0x48] sm:$0xff]  ;;  %v1894_v16 = vld [vmem:[#allocation12 + $0x40] sm:$0xff] }
 0x8c5   :  { %v1655_v24 = vadd.f32 %v1647_v14, %v1493_v11  ;;  %v1657_v27 = vadd.f32 %v1649_v25, %v1495_v26  ;;  %v5714_v11 = vpack.c.bf16 %v1892_v10, %v1888_v9  ;;  %v5718_v13 = vpack.c.bf16 %v1899_v12, %v1895_v21  ;;  %v1897_v14 = vld [vmem:[#allocation12 + $0x58] sm:$0xff]  ;;  %v1898_v19 = vld [vmem:[#allocation12 + $0x60] sm:$0xff] }
 0x8c6   :  { %v1658_v20 = vmul.f32 0.5, %v1654_v15  ;;  %v1901_v15 = vld [vmem:[#allocation12 + $0x78] sm:$0xff]  ;;  %v1906_v26 = vlaneseq }
 0x8c7   :  { %v1662_v22 = vmul.f32 0.5, %v1655_v24  ;;  %v1667_v28 = vmul.f32 0.5, %v1657_v27  ;;  %v5722_v24 = vpack.c.bf16 %v1901_v15, %v1897_v14 }
 0x8c8   :  { %4393 = vtanh.f32 %v1658_v20  ;;  %v1896_v20 = vld [vmem:[#allocation12 + $0x50] sm:$0xff]  ;;  %v1907_v27 = vshrl.u32 %v1906_v26, 7 }
 0x8c9   :  { %4395 = vtanh.f32 %v1662_v22  ;;  %v5724_v22 = vpack.c.bf16 %v1898_v19, %v1894_v16 }
 0x8ca   :  { %4397 = vtanh.f32 %v1656_v23  ;;  %v1900_v23 = vld [vmem:[#allocation12 + $0x70] sm:$0xff] }
 0x8cb   :  { %4399 = vtanh.f32 %v1667_v28  ;;  %v5727_v25 = vpack.c.bf16 %v1900_v23, %v1896_v20  ;;  %v1680_v28 = vld [vmem:[#allocation2 + $0x20] sm:$0xc0] }
 0x8d2   :  { %v4394_v29 = vpop.eup %4393 }
 0x8d3   :  { %v4396_v30 = vpop.eup %4395  ;;  %v1660_v31 = vmul.f32 0.5, %v4394_v29 }
 0x8d4   :  { %v1664_v32 = vmul.f32 0.5, %v4396_v30  ;;  %v4398_v34 = vpop.eup %4397 }
 0x8d5   :  { %v1661_v33 = vadd.f32 0.5, %v1660_v31  ;;  %v4400_v40 = vpop.eup %4399  ;;  %v1681_v31 = vld [vmem:[#allocation2 + $0x28] sm:$0xc0] }
 0x8d6   :  { %v1665_v35 = vadd.f32 0.5, %v1664_v32  ;;  %v1669_v41 = vmul.f32 0.5, %v4400_v40  ;;  %v1912_v40 = vsub.s32 1, %v1907_v27 }
 0x8d7   :  { %v1675_v37 = vmul.f32 %v4398_v34, %v1661_v33 }
 0x8d8   :  { %v1674_v38 = vmul.f32 %v1672_v36, %v1665_v35  ;;  %v1670_v44 = vadd.f32 0.5, %v1669_v41  ;;  %v1908_v35 = vsub.s32 0, %v1907_v27  ;;  %v1916_v36 = vsub.s32 2, %v1907_v27 }
 0x8d9   :  { %v1920_v41 = vsub.s32 3, %v1907_v27 }
 0x8da   :  { %v5696_v39 = vadd.f32 %v1675_v37, %v1674_v38  ;;  %v1902_v38 = vld [vmem:[%s5901_s7] sm:$0xf] }
 0x8db   :  { %v5737_v4 = vrot.slane %v1902_v38, %v1908_v35  ;;  %v5741_v48 = vrot.slane %v1902_v38, %v1912_v40  ;;  %v5743_v49 = vrot.slane %v1902_v38, %v1920_v41 }
 0x8dc   :  { %4401 = vtanh.f32 %v5696_v39  ;;  %v1860_v10 = vrot.slane %v5696_v39, 6  ;;  %v3970_v39 = vld [vmem:[%s5896_s2 + $0x2] sm:$0x3] }
 0x8e6   :  { %v4402_v17 = vpop.eup %4401 }
 0x8e7   :  { %v1678_v50 = vmul.f32 %v4402_v17, %v1670_v44  ;;  %v1682_v44 = vld [vmem:[#allocation2 + $0x30] sm:$0xc0]  ;;  %v5739_v17 = vrot.slane %v1902_v38, %v1916_v36 }
 0x8e9   :  { %1679 = vst [vmem:[#allocation3 + $0x8] sm:$0x30] %v1678_v50  ;;  %v1685_v54 = vrot.slane %v1678_v50, 4 }
 0x8eb   :  { %3964 = vmatmul.mubr.msk.f32.vlgmr.msra.gmra.mrb[14].mxu0 %vm397_vm0, %v1685_v54  ;;  %3965 = vmatmul.mubr.msk.f32.vlgmr.msra.gmra.mrb[14].mxu1 %vm397_vm0, %v1685_v54 }
 0x8ec   :  { %4153 = vmatpush1.bf16.msra.mxu0 %v4152_v51  ;;  %4161 = vmatpush1.bf16.msra.mxu1 %v4160_v52  ;;  %v1683_v52 = vld [vmem:[#allocation2 + $0x38] sm:$0xc0] }
 0x8ed   :  { %4155 = vmatprep.subr.bf16.mxu0 %v4154_v55  ;;  %4163 = vmatprep.subr.bf16.mxu1 %v4162_v56 }
 0x8ee   :  { %1996 = vmatprep.mubr.f32.mxu0 %v5115_v0  ;;  %2073 = vmatprep.mubr.f32.mxu1 %v5115_v0 }
 0x8f0   :  { %4157 = vmatpush1.bf16.msra.mxu0 %v4156_v60  ;;  %4165 = vmatpush1.bf16.msra.mxu1 %v4164_v61 }
 0x8f1   :  { %4167 = vmatprep.subr.bf16.mxu0 %v5707_v3  ;;  %4175 = vmatprep.subr.bf16.mxu1 %v5711_v18 }
 0x8f3   :  { %3966 = vmatmul.mubr.msk.f32.vlgmr.msra.gmra.mrb[16].mxu0 %vm397_vm0, %v1903_v62  ;;  %3968 = vmatmul.mubr.msk.f32.vlgmr.msra.gmra.mrb[16].mxu1 %vm397_vm0, %v1903_v62 }
 0x8f4   :  { %2002 = vmatprep.mubr.f32.mxu0 %v5115_v0  ;;  %2079 = vmatprep.mubr.f32.mxu1 %v5115_v0 }
 0x8f5   :  { %4169 = vmatpush1.bf16.msra.mxu0 %v5709_v8  ;;  %4177 = vmatpush1.bf16.msra.mxu1 %v5714_v11 }
 0x8f6   :  { %4171 = vmatprep.subr.bf16.mxu0 %v5718_v13  ;;  %4179 = vmatprep.subr.bf16.mxu1 %v5722_v24 }
 0x8f9   :  { %4173 = vmatpush1.bf16.msra.mxu0 %v5724_v22  ;;  %4181 = vmatpush1.bf16.msra.mxu1 %v5727_v25 }
 0x8fa   :  { %4183 = vmatprep.subr.bf16.mxu0 %v5707_v3  ;;  %4191 = vmatprep.subr.bf16.mxu1 %v5711_v18 }
 0x9be   :  { %v1754_v29 = vpop.f32.mrb[14].mxu0  ;;  %v1825_v30 = vpop.f32.mrb[14].mxu1 }
 0x9bf   :  { %v1834_v32 = vrot.slane %v1754_v29, 2  ;;  %v1756_v33 = vpop.f32.mrb[15].mxu0  ;;  %v1827_v34 = vpop.f32.mrb[15].mxu1  ;;  %v1836_v43 = vrot.slane %v1825_v30, 2 }
 0x9c0   :  { %v1835_v37 = vrot.slane %v1756_v33, 2  ;;  %v1837_v51 = vrot.slane %v1827_v34, 2 }
 0x9c1   :  { %v1842_v42 = vadd.f32 %v1834_v32, %v1680_v28  ;;  %v1844_v50 = vadd.f32 %v1836_v43, %v1682_v44 }
 0x9c2   :  { %v1843_v45 = vadd.f32 %v1835_v37, %v1681_v31  ;;  %v1845_v61 = vadd.f32 %v1837_v51, %v1683_v52 }
 0x9c3   :  { %v1846_v46 = vmul.f32 0.5, %v1842_v42 }
 0x9c4   :  { %v1850_v47 = vmul.f32 0.5, %v1843_v45  ;;  %v1855_v62 = vmul.f32 0.5, %v1845_v61 }
 0x9c5   :  { %4403 = vtanh.f32 %v1846_v46 }
 0x9c6   :  { %4405 = vtanh.f32 %v1850_v47  ;;  %v1998_v53 = vpop.f32.mrb[16].mxu0  ;;  %v2075_v54 = vpop.f32.mrb[16].mxu1 }
 0x9c7   :  { %v1999_v55 = vadd.f32 %v1998_v53, %v5737_v4  ;;  %v2076_v56 = vadd.f32 %v2075_v54, %v5739_v17  ;;  %v2000_v57 = vpop.f32.mrb[17].mxu0  ;;  %v2077_v58 = vpop.f32.mrb[17].mxu1  ;;  %4407 = vtanh.f32 %v1844_v50 }
 0x9c8   :  { %v2001_v59 = vadd.f32 %v2000_v57, %v5741_v48  ;;  %v2078_v60 = vadd.f32 %v2077_v58, %v5743_v49  ;;  %4409 = vtanh.f32 %v1855_v62 }
 0x9c9   :  { %2086 = vst [vmem:[#allocation2] sm:$0xff] %v1999_v55  ;;  %2088 = vst [vmem:[#allocation2 + $0x10] sm:$0xff] %v2076_v56  ;;  %v3971_v55 = vld [vmem:[%s5897_s3 + $0x2] sm:$0x3] }
 0x9ca   :  { %2087 = vst [vmem:[#allocation2 + $0x8] sm:$0xff] %v2001_v59  ;;  %2089 = vst [vmem:[#allocation2 + $0x18] sm:$0xff] %v2078_v60 }
 0x9cf   :  { %v4404_v63 = vpop.eup %4403 }
 0x9d0   :  { %v4406_v1 = vpop.eup %4405  ;;  %v1848_v2 = vmul.f32 0.5, %v4404_v63  ;;  %v2098_v36 = vld [vmem:[#allocation2] sm:$0x3]  ;;  %v2100_v46 = vld [vmem:[#allocation2 + $0x10] sm:$0x3] }
 0x9d1   :  { %v1852_v5 = vmul.f32 0.5, %v4406_v1  ;;  %v4408_v7 = vpop.eup %4407  ;;  %v2099_v41 = vld [vmem:[#allocation2 + $0x8] sm:$0x3]  ;;  %v2101_v47 = vld [vmem:[#allocation2 + $0x18] sm:$0x3] }
 0x9d2   :  { %v1849_v6 = vadd.f32 0.5, %v1848_v2  ;;  %v4410_v15 = vpop.eup %4409 }
 0x9d3   :  { %v1853_v9 = vadd.f32 0.5, %v1852_v5  ;;  %v1857_v16 = vmul.f32 0.5, %v4410_v15 }
 0x9d4   :  { %v1863_v21 = vmul.f32 %v4408_v7, %v1849_v6 }
 0x9d5   :  { %v1862_v12 = vmul.f32 %v1860_v10, %v1853_v9  ;;  %v1858_v19 = vadd.f32 0.5, %v1857_v16  ;;  %v2271_v16 = vld [vmem:[#allocation2 + $0x8] sm:$0xc] }
 0x9d7   :  { %v1864_v14 = vadd.f32 %v1863_v21, %v1862_v12  ;;  %v2270_v21 = vld [vmem:[#allocation2] sm:$0xc] }
 0x9d9   :  { %4411 = vtanh.f32 %v1864_v14  ;;  %1869 = vst [vmem:[#allocation18 - $0x6] sm:$0xc0] %v1864_v14 }
 0x9e3   :  { %v4412_v20 = vpop.eup %4411 }
 0x9e4   :  { %v1866_v23 = vmul.f32 %v4412_v20, %v1858_v19 }
 0x9e6   :  { %1867 = vst [vmem:[#allocation3 + $0x8] sm:$0xc0] %v1866_v23  ;;  %1868 = vst [vmem:[#allocation16 - $0x6] sm:$0xc0] %v1866_v23  ;;  %v2272_v23 = vld [vmem:[#allocation2 + $0x10] sm:$0xc] }
 0x9ed   :  { %v1904_v27 = vld [vmem:[#allocation3 + $0x8] sm:$0xff] }
 0x9ee   :  { %3967 = vmatmul.mubr.msk.f32.gmra.mrb[18].mxu0 %vm397_vm0, %v1904_v27  ;;  %3969 = vmatmul.mubr.msk.f32.gmra.mrb[18].mxu1 %vm397_vm0, %v1904_v27 }
 0x9ef   :  { %2169 = vmatprep.mubr.f32.mxu0 %v5115_v0  ;;  %2240 = vmatprep.mubr.f32.mxu1 %v5115_v0 }
 0x9f2   :  { %3972 = vmatmul.mubr.msk.f32.vlgmr.msra.gmra.mrb[20].mxu0 %vm397_vm0, %v3970_v39  ;;  %3973 = vmatmul.mubr.msk.f32.vlgmr.msra.gmra.mrb[20].mxu1 %vm397_vm0, %v3970_v39 }
 0x9f3   :  { %4185 = vmatpush1.bf16.msra.mxu0 %v5709_v8  ;;  %4193 = vmatpush1.bf16.msra.mxu1 %v5714_v11 }
 0x9f4   :  { %4187 = vmatprep.subr.bf16.mxu0 %v5718_v13  ;;  %4195 = vmatprep.subr.bf16.mxu1 %v5722_v24 }
 0x9f5   :  { %2341 = vmatprep.mubr.f32.mxu0 %v5115_v0  ;;  %2412 = vmatprep.mubr.f32.mxu1 %v5115_v0 }
 0x9f7   :  { %4189 = vmatpush1.bf16.msra.mxu0 %v5724_v22  ;;  %4197 = vmatpush1.bf16.msra.mxu1 %v5727_v25 }
 0x9f8   :  { %4199 = vmatprep.subr.bf16.mxu0 %v5707_v3  ;;  %4207 = vmatprep.subr.bf16.mxu1 %v5711_v18 }
 0xac1   :  { %v2004_v28 = vpop.f32.mrb[18].mxu0  ;;  %v2081_v29 = vpop.f32.mrb[18].mxu1 }
 0xac2   :  { %v2005_v30 = vadd.f32 %v2004_v28, %v5737_v4  ;;  %v2082_v31 = vadd.f32 %v2081_v29, %v5739_v17  ;;  %v2006_v32 = vpop.f32.mrb[19].mxu0  ;;  %v2083_v33 = vpop.f32.mrb[19].mxu1  ;;  %v2273_v29 = vld [vmem:[#allocation2 + $0x18] sm:$0xc] }
 0xac3   :  { %v2007_v34 = vadd.f32 %v2006_v32, %v5741_v48  ;;  %v2084_v35 = vadd.f32 %v2083_v33, %v5743_v49 }
 0xac4   :  { %2090 = vst [vmem:[#allocation2 + $0x20] sm:$0xff] %v2005_v30  ;;  %2092 = vst [vmem:[#allocation2 + $0x30] sm:$0xff] %v2082_v31 }
 0xac5   :  { %2091 = vst [vmem:[#allocation2 + $0x28] sm:$0xff] %v2007_v34  ;;  %2093 = vst [vmem:[#allocation2 + $0x38] sm:$0xff] %v2084_v35  ;;  %v2171_v37 = vpop.f32.mrb[20].mxu0  ;;  %v2242_v38 = vpop.f32.mrb[20].mxu1 }
 0xac6   :  { %v2247_v40 = vadd.f32 %v2171_v37, %v2098_v36  ;;  %v2173_v42 = vpop.f32.mrb[21].mxu0  ;;  %v2244_v43 = vpop.f32.mrb[21].mxu1  ;;  %v2249_v17 = vadd.f32 %v2242_v38, %v2100_v46 }
 0xac7   :  { %v2248_v44 = vadd.f32 %v2173_v42, %v2099_v41  ;;  %v2250_v48 = vadd.f32 %v2244_v43, %v2101_v47 }
 0xac8   :  { %v2251_v45 = vmul.f32 0.5, %v2247_v40 }
 0xac9   :  { %v2255_v4 = vmul.f32 0.5, %v2248_v44  ;;  %v2260_v49 = vmul.f32 0.5, %v2250_v48 }
 0xaca   :  { %4413 = vtanh.f32 %v2251_v45 }
 0xacb   :  { %4415 = vtanh.f32 %v2255_v4 }
 0xacc   :  { %4417 = vtanh.f32 %v2249_v17 }
 0xacd   :  { %4419 = vtanh.f32 %v2260_v49 }
 0xad4   :  { %v4414_v50 = vpop.eup %4413 }
 0xad5   :  { %v4416_v51 = vpop.eup %4415  ;;  %v2253_v52 = vmul.f32 0.5, %v4414_v50 }
 0xad6   :  { %v2257_v53 = vmul.f32 0.5, %v4416_v51  ;;  %v4418_v56 = vpop.eup %4417 }
 0xad7   :  { %v2254_v54 = vadd.f32 0.5, %v2253_v52  ;;  %v4420_v61 = vpop.eup %4419 }
 0xad8   :  { %v2258_v57 = vadd.f32 0.5, %v2257_v53  ;;  %v2262_v62 = vmul.f32 0.5, %v4420_v61  ;;  %v2457_v53 = vld [vmem:[#allocation2] sm:$0x30] }
 0xad9   :  { %v2265_v58 = vmul.f32 %v4418_v56, %v2254_v54 }
 0xada   :  { %v2264_v59 = vmul.f32 %v3971_v55, %v2258_v57  ;;  %v2263_v63 = vadd.f32 0.5, %v2262_v62  ;;  %v2458_v57 = vld [vmem:[#allocation2 + $0x8] sm:$0x30] }
 0xadc   :  { %v2266_v60 = vadd.f32 %v2265_v58, %v2264_v59 }
 0xade   :  { %4421 = vtanh.f32 %v2266_v60  ;;  %v2449_v40 = vrot.slane %v2266_v60, 6  ;;  %v2459_v60 = vld [vmem:[#allocation2 + $0x10] sm:$0x30] }
 0xae8   :  { %v4422_v1 = vpop.eup %4421 }
 0xae9   :  { %v2268_v2 = vmul.f32 %v4422_v1, %v2263_v63  ;;  %v2460_v1 = vld [vmem:[#allocation2 + $0x18] sm:$0x30] }
 0xaeb   :  { %2269 = vst [vmem:[#allocation3] sm:$0x3] %v2268_v2  ;;  %3974 = vmatmul.mubr.msk.f32.vlgmr.msra.gmra.mrb[22].mxu0 %vm397_vm0, %v2268_v2  ;;  %3975 = vmatmul.mubr.msk.f32.vlgmr.msra.gmra.mrb[22].mxu1 %vm397_vm0, %v2268_v2 }
 0xaec   :  { %4201 = vmatpush1.bf16.msra.mxu0 %v5709_v8  ;;  %4209 = vmatpush1.bf16.msra.mxu1 %v5714_v11 }
 0xaed   :  { %4203 = vmatprep.subr.bf16.mxu0 %v5718_v13  ;;  %4211 = vmatprep.subr.bf16.mxu1 %v5722_v24 }
 0xaee   :  { %2529 = vmatprep.mubr.f32.mxu0 %v5115_v0  ;;  %2600 = vmatprep.mubr.f32.mxu1 %v5115_v0 }
 0xaf0   :  { %4205 = vmatpush1.bf16.msra.mxu0 %v5724_v22  ;;  %4213 = vmatpush1.bf16.msra.mxu1 %v5727_v25 }
 0xaf1   :  { %4215 = vmatprep.subr.bf16.mxu0 %v5707_v3  ;;  %4223 = vmatprep.subr.bf16.mxu1 %v5711_v18 }
 0xbbe   :  { %v2343_v5 = vpop.f32.mrb[22].mxu0  ;;  %v2414_v6 = vpop.f32.mrb[22].mxu1 }
 0xbbf   :  { %v2423_v7 = vrot.slane %v2343_v5, 6  ;;  %v2345_v9 = vpop.f32.mrb[23].mxu0  ;;  %v2416_v10 = vpop.f32.mrb[23].mxu1  ;;  %v2425_v15 = vrot.slane %v2414_v6, 6 }
 0xbc0   :  { %v2424_v12 = vrot.slane %v2345_v9, 6  ;;  %v2426_v28 = vrot.slane %v2416_v10, 6 }
 0xbc1   :  { %v2431_v14 = vadd.f32 %v2423_v7, %v2270_v21  ;;  %v2433_v39 = vadd.f32 %v2425_v15, %v2272_v23 }
 0xbc2   :  { %v2432_v19 = vadd.f32 %v2424_v12, %v2271_v16  ;;  %v2434_v30 = vadd.f32 %v2426_v28, %v2273_v29 }
 0xbc3   :  { %v2435_v20 = vmul.f32 0.5, %v2431_v14 }
 0xbc4   :  { %v2439_v27 = vmul.f32 0.5, %v2432_v19  ;;  %v2444_v31 = vmul.f32 0.5, %v2434_v30 }
 0xbc5   :  { %4423 = vtanh.f32 %v2435_v20 }
 0xbc6   :  { %4425 = vtanh.f32 %v2439_v27 }
 0xbc7   :  { %4427 = vtanh.f32 %v2433_v39 }
 0xbc8   :  { %4429 = vtanh.f32 %v2444_v31 }
 0xbcf   :  { %v4424_v32 = vpop.eup %4423 }
 0xbd0   :  { %v4426_v33 = vpop.eup %4425  ;;  %v2437_v34 = vmul.f32 0.5, %v4424_v32 }
 0xbd1   :  { %v2441_v35 = vmul.f32 0.5, %v4426_v33  ;;  %v4428_v37 = vpop.eup %4427 }
 0xbd2   :  { %v2438_v36 = vadd.f32 0.5, %v2437_v34  ;;  %v4430_v44 = vpop.eup %4429 }
 0xbd3   :  { %v2442_v38 = vadd.f32 0.5, %v2441_v35  ;;  %v2446_v45 = vmul.f32 0.5, %v4430_v44  ;;  %v2647_v44 = vld [vmem:[#allocation2 + $0x10] sm:$0xc0] }
 0xbd4   :  { %v2452_v41 = vmul.f32 %v4428_v37, %v2438_v36  ;;  %v2645_v36 = vld [vmem:[#allocation2] sm:$0xc0] }
 0xbd5   :  { %v2451_v42 = vmul.f32 %v2449_v40, %v2442_v38  ;;  %v2447_v46 = vadd.f32 0.5, %v2446_v45 }
 0xbd7   :  { %v2453_v43 = vadd.f32 %v2452_v41, %v2451_v42  ;;  %v2646_v41 = vld [vmem:[#allocation2 + $0x8] sm:$0xc0] }
 0xbd9   :  { %4431 = vtanh.f32 %v2453_v43  ;;  %v2637_v15 = vrot.slane %v2453_v43, 6 }
 0xbe3   :  { %v4432_v4 = vpop.eup %4431 }
 0xbe4   :  { %v2455_v17 = vmul.f32 %v4432_v4, %v2447_v46 }
 0xbe6   :  { %2456 = vst [vmem:[#allocation3] sm:$0xc] %v2455_v17  ;;  %v2462_v47 = vrot.slane %v2455_v17, 2  ;;  %v2648_v17 = vld [vmem:[#allocation2 + $0x18] sm:$0xc0] }
 0xbe8   :  { %3976 = vmatmul.mubr.msk.f32.vlgmr.msra.gmra.mrb[24].mxu0 %vm397_vm0, %v2462_v47  ;;  %3977 = vmatmul.mubr.msk.f32.vlgmr.msra.gmra.mrb[24].mxu1 %vm397_vm0, %v2462_v47 }
 0xbe9   :  { %4217 = vmatpush1.bf16.msra.mxu0 %v5709_v8  ;;  %4225 = vmatpush1.bf16.msra.mxu1 %v5714_v11 }
 0xbea   :  { %4219 = vmatprep.subr.bf16.mxu0 %v5718_v13  ;;  %4227 = vmatprep.subr.bf16.mxu1 %v5722_v24 }
 0xbeb   :  { %2717 = vmatprep.mubr.f32.mxu0 %v5115_v0  ;;  %2788 = vmatprep.mubr.f32.mxu1 %v5115_v0 }
 0xbed   :  { %4221 = vmatpush1.bf16.msra.mxu0 %v5724_v22  ;;  %4229 = vmatpush1.bf16.msra.mxu1 %v5727_v25 }
 0xbee   :  { %4231 = vmatprep.subr.bf16.mxu0 %v5707_v3  ;;  %4239 = vmatprep.subr.bf16.mxu1 %v5711_v18 }
 0xcbb   :  { %v2531_v48 = vpop.f32.mrb[24].mxu0  ;;  %v2602_v49 = vpop.f32.mrb[24].mxu1 }
 0xcbc   :  { %v2611_v50 = vrot.slane %v2531_v48, 4  ;;  %v2533_v51 = vpop.f32.mrb[25].mxu0  ;;  %v2604_v52 = vpop.f32.mrb[25].mxu1  ;;  %v2613_v56 = vrot.slane %v2602_v49, 4 }
 0xcbd   :  { %v2612_v54 = vrot.slane %v2533_v51, 4  ;;  %v2614_v63 = vrot.slane %v2604_v52, 4 }
 0xcbe   :  { %v2619_v55 = vadd.f32 %v2611_v50, %v2457_v53  ;;  %v2621_v62 = vadd.f32 %v2613_v56, %v2459_v60 }
 0xcbf   :  { %v2620_v58 = vadd.f32 %v2612_v54, %v2458_v57  ;;  %v2622_v2 = vadd.f32 %v2614_v63, %v2460_v1 }
 0xcc0   :  { %v2623_v59 = vmul.f32 0.5, %v2619_v55 }
 0xcc1   :  { %v2627_v61 = vmul.f32 0.5, %v2620_v58  ;;  %v2632_v5 = vmul.f32 0.5, %v2622_v2 }
 0xcc2   :  { %4433 = vtanh.f32 %v2623_v59 }
 0xcc3   :  { %4435 = vtanh.f32 %v2627_v61 }
 0xcc4   :  { %4437 = vtanh.f32 %v2621_v62 }
 0xcc5   :  { %4439 = vtanh.f32 %v2632_v5  ;;  %v2833_v5 = vld [vmem:[#allocation2 + $0x20] sm:$0x3] }
 0xccc   :  { %v4434_v6 = vpop.eup %4433 }
 0xccd   :  { %v4436_v7 = vpop.eup %4435  ;;  %v2625_v9 = vmul.f32 0.5, %v4434_v6 }
 0xcce   :  { %v2629_v10 = vmul.f32 0.5, %v4436_v7  ;;  %v4438_v12 = vpop.eup %4437 }
 0xccf   :  { %v2626_v21 = vadd.f32 0.5, %v2625_v9  ;;  %v4440_v23 = vpop.eup %4439 }
 0xcd0   :  { %v2630_v14 = vadd.f32 0.5, %v2629_v10  ;;  %v2634_v27 = vmul.f32 0.5, %v4440_v23  ;;  %v2834_v10 = vld [vmem:[#allocation2 + $0x28] sm:$0x3]  ;;  %v2836_v23 = vld [vmem:[#allocation2 + $0x38] sm:$0x3] }
 0xcd1   :  { %v2640_v16 = vmul.f32 %v4438_v12, %v2626_v21 }
 0xcd2   :  { %v2639_v19 = vmul.f32 %v2637_v15, %v2630_v14  ;;  %v2635_v39 = vadd.f32 0.5, %v2634_v27 }
 0xcd4   :  { %v2641_v20 = vadd.f32 %v2640_v16, %v2639_v19  ;;  %v2835_v16 = vld [vmem:[#allocation2 + $0x30] sm:$0x3] }
 0xcd6   :  { %4441 = vtanh.f32 %v2641_v20  ;;  %v2825_v56 = vrot.slane %v2641_v20, 6 }
 0xce0   :  { %v4442_v28 = vpop.eup %4441 }
 0xce1   :  { %v2643_v29 = vmul.f32 %v4442_v28, %v2635_v39 }
 0xce3   :  { %2644 = vst [vmem:[#allocation3] sm:$0x30] %v2643_v29  ;;  %v2650_v30 = vrot.slane %v2643_v29, 4 }
 0xce5   :  { %3978 = vmatmul.mubr.msk.f32.vlgmr.msra.gmra.mrb[26].mxu0 %vm397_vm0, %v2650_v30  ;;  %3979 = vmatmul.mubr.msk.f32.vlgmr.msra.gmra.mrb[26].mxu1 %vm397_vm0, %v2650_v30 }
 0xce6   :  { %4233 = vmatpush1.bf16.msra.mxu0 %v5709_v8  ;;  %4241 = vmatpush1.bf16.msra.mxu1 %v5714_v11 }
 0xce7   :  { %4235 = vmatprep.subr.bf16.mxu0 %v5718_v13  ;;  %4243 = vmatprep.subr.bf16.mxu1 %v5722_v24 }
 0xce8   :  { %2905 = vmatprep.mubr.f32.mxu0 %v5115_v0  ;;  %2976 = vmatprep.mubr.f32.mxu1 %v5115_v0 }
 0xcea   :  { %4237 = vmatpush1.bf16.msra.mxu0 %v5724_v22  ;;  %4245 = vmatpush1.bf16.msra.mxu1 %v5727_v25 }
 0xceb   :  { %4247 = vmatprep.subr.bf16.mxu0 %v5707_v3  ;;  %4255 = vmatprep.subr.bf16.mxu1 %v5711_v18 }
 0xdb8   :  { %v2719_v31 = vpop.f32.mrb[26].mxu0  ;;  %v2790_v32 = vpop.f32.mrb[26].mxu1 }
 0xdb9   :  { %v2799_v33 = vrot.slane %v2719_v31, 2  ;;  %v2721_v34 = vpop.f32.mrb[27].mxu0  ;;  %v2792_v35 = vpop.f32.mrb[27].mxu1  ;;  %v2801_v40 = vrot.slane %v2790_v32, 2 }
 0xdba   :  { %v2800_v37 = vrot.slane %v2721_v34, 2  ;;  %v2802_v4 = vrot.slane %v2792_v35, 2 }
 0xdbb   :  { %v2807_v38 = vadd.f32 %v2799_v33, %v2645_v36  ;;  %v2809_v46 = vadd.f32 %v2801_v40, %v2647_v44 }
 0xdbc   :  { %v2808_v42 = vadd.f32 %v2800_v37, %v2646_v41  ;;  %v2810_v47 = vadd.f32 %v2802_v4, %v2648_v17 }
 0xdbd   :  { %v2811_v43 = vmul.f32 0.5, %v2807_v38 }
 0xdbe   :  { %v2815_v45 = vmul.f32 0.5, %v2808_v42  ;;  %v2820_v48 = vmul.f32 0.5, %v2810_v47 }
 0xdbf   :  { %4443 = vtanh.f32 %v2811_v43 }
 0xdc0   :  { %4445 = vtanh.f32 %v2815_v45 }
 0xdc1   :  { %4447 = vtanh.f32 %v2809_v46 }
 0xdc2   :  { %4449 = vtanh.f32 %v2820_v48  ;;  %v3009_v48 = vld [vmem:[#allocation2 + $0x20] sm:$0xc] }
 0xdc9   :  { %v4444_v49 = vpop.eup %4443 }
 0xdca   :  { %v4446_v50 = vpop.eup %4445  ;;  %v2813_v51 = vmul.f32 0.5, %v4444_v49 }
 0xdcb   :  { %v2817_v52 = vmul.f32 0.5, %v4446_v50  ;;  %v4448_v54 = vpop.eup %4447 }
 0xdcc   :  { %v2814_v53 = vadd.f32 0.5, %v2813_v51  ;;  %v4450_v60 = vpop.eup %4449 }
 0xdcd   :  { %v2818_v55 = vadd.f32 0.5, %v2817_v52  ;;  %v2822_v61 = vmul.f32 0.5, %v4450_v60  ;;  %v3010_v52 = vld [vmem:[#allocation2 + $0x28] sm:$0xc] }
 0xdce   :  { %v2828_v57 = vmul.f32 %v4448_v54, %v2814_v53 }
 0xdcf   :  { %v2827_v58 = vmul.f32 %v2825_v56, %v2818_v55  ;;  %v2823_v62 = vadd.f32 0.5, %v2822_v61  ;;  %v3011_v55 = vld [vmem:[#allocation2 + $0x30] sm:$0xc] }
 0xdd1   :  { %v2829_v59 = vadd.f32 %v2828_v57, %v2827_v58 }
 0xdd3   :  { %4451 = vtanh.f32 %v2829_v59  ;;  %v3001_v35 = vrot.slane %v2829_v59, 6 }
 0xddd   :  { %v4452_v63 = vpop.eup %4451 }
 0xdde   :  { %v2831_v1 = vmul.f32 %v4452_v63, %v2823_v62 }
 0xde0   :  { %2832 = vst [vmem:[#allocation3] sm:$0xc0] %v2831_v1  ;;  %v2838_v2 = vrot.slane %v2831_v1, 6 }
 0xde2   :  { %3980 = vmatmul.mubr.msk.f32.vlgmr.msra.gmra.mrb[28].mxu0 %vm397_vm0, %v2838_v2  ;;  %3981 = vmatmul.mubr.msk.f32.vlgmr.msra.gmra.mrb[28].mxu1 %vm397_vm0, %v2838_v2 }
 0xde3   :  { %4249 = vmatpush1.bf16.msra.mxu0 %v5709_v8  ;;  %4257 = vmatpush1.bf16.msra.mxu1 %v5714_v11 }
 0xde4   :  { %4251 = vmatprep.subr.bf16.mxu0 %v5718_v13  ;;  %4259 = vmatprep.subr.bf16.mxu1 %v5722_v24 }
 0xde5   :  { %3080 = vmatprep.mubr.f32.mxu0 %v5115_v0  ;;  %3151 = vmatprep.mubr.f32.mxu1 %v5115_v0 }
 0xde7   :  { %4253 = vmatpush1.bf16.msra.mxu0 %v5724_v22  ;;  %4261 = vmatpush1.bf16.msra.mxu1 %v5727_v25 }
 0xde8   :  { %4263 = vmatprep.subr.bf16.mxu0 %v5707_v3  ;;  %4271 = vmatprep.subr.bf16.mxu1 %v5711_v18 }
 0xeb5   :  { %v2907_v6 = vpop.f32.mrb[28].mxu0  ;;  %v2978_v7 = vpop.f32.mrb[28].mxu1 }
 0xeb6   :  { %v2983_v9 = vadd.f32 %v2907_v6, %v2833_v5  ;;  %v2909_v21 = vpop.f32.mrb[29].mxu0  ;;  %v2980_v12 = vpop.f32.mrb[29].mxu1  ;;  %v2985_v20 = vadd.f32 %v2978_v7, %v2835_v16 }
 0xeb7   :  { %v2984_v14 = vadd.f32 %v2909_v21, %v2834_v10  ;;  %v2986_v27 = vadd.f32 %v2980_v12, %v2836_v23 }
 0xeb8   :  { %v2987_v15 = vmul.f32 0.5, %v2983_v9 }
 0xeb9   :  { %v2991_v19 = vmul.f32 0.5, %v2984_v14  ;;  %v2996_v39 = vmul.f32 0.5, %v2986_v27 }
 0xeba   :  { %4453 = vtanh.f32 %v2987_v15 }
 0xebb   :  { %4455 = vtanh.f32 %v2991_v19 }
 0xebc   :  { %4457 = vtanh.f32 %v2985_v20 }
 0xebd   :  { %4459 = vtanh.f32 %v2996_v39 }
 0xec4   :  { %v4454_v28 = vpop.eup %4453 }
 0xec5   :  { %v4456_v29 = vpop.eup %4455  ;;  %v2989_v30 = vmul.f32 0.5, %v4454_v28 }
 0xec6   :  { %v2993_v31 = vmul.f32 0.5, %v4456_v29  ;;  %v4458_v33 = vpop.eup %4457 }
 0xec7   :  { %v2990_v32 = vadd.f32 0.5, %v2989_v30  ;;  %v4460_v40 = vpop.eup %4459 }
 0xec8   :  { %v2994_v34 = vadd.f32 0.5, %v2993_v31  ;;  %v2998_v41 = vmul.f32 0.5, %v4460_v40 }
 0xec9   :  { %v3004_v36 = vmul.f32 %v4458_v33, %v2990_v32  ;;  %v3198_v32 = vld [vmem:[#allocation2 + $0x30] sm:$0x30] }
 0xeca   :  { %v3003_v37 = vmul.f32 %v3001_v35, %v2994_v34  ;;  %v2999_v42 = vadd.f32 0.5, %v2998_v41 }
 0xecc   :  { %v3005_v38 = vadd.f32 %v3004_v36, %v3003_v37 }
 0xece   :  { %4461 = vtanh.f32 %v3005_v38  ;;  %v3188_v6 = vrot.slane %v3005_v38, 6 }
 0xed8   :  { %v4462_v43 = vpop.eup %4461 }
 0xed9   :  { %v3007_v44 = vmul.f32 %v4462_v43, %v2999_v42 }
 0xedb   :  { %3008 = vst [vmem:[#allocation3 + $0x8] sm:$0x3] %v3007_v44  ;;  %3982 = vmatmul.mubr.msk.f32.vlgmr.msra.gmra.mrb[30].mxu0 %vm397_vm0, %v3007_v44  ;;  %3983 = vmatmul.mubr.msk.f32.vlgmr.msra.gmra.mrb[30].mxu1 %vm397_vm0, %v3007_v44 }
 0xedc   :  { %4265 = vmatpush1.bf16.msra.mxu0 %v5709_v8  ;;  %4273 = vmatpush1.bf16.msra.mxu1 %v5714_v11 }
 0xedd   :  { %4267 = vmatprep.subr.bf16.mxu0 %v5718_v13  ;;  %4275 = vmatprep.subr.bf16.mxu1 %v5722_v24 }
 0xede   :  { %3268 = vmatprep.mubr.f32.mxu0 %v5115_v0  ;;  %3339 = vmatprep.mubr.f32.mxu1 %v5115_v0 }
 0xee0   :  { %4269 = vmatpush1.bf16.msra.mxu0 %v5724_v22  ;;  %4277 = vmatpush1.bf16.msra.mxu1 %v5727_v25 }
 0xee1   :  { %4279 = vmatprep.subr.bf16.mxu0 %v5707_v3  ;;  %4287 = vmatprep.subr.bf16.mxu1 %v5711_v18  ;;  %v3012_v3 = vld [vmem:[#allocation2 + $0x38] sm:$0xc] }
 0xfae   :  { %v3082_v45 = vpop.f32.mrb[30].mxu0  ;;  %v3153_v46 = vpop.f32.mrb[30].mxu1 }
 0xfaf   :  { %v3162_v4 = vrot.slane %v3082_v45, 6  ;;  %v3084_v17 = vpop.f32.mrb[31].mxu0  ;;  %v3155_v47 = vpop.f32.mrb[31].mxu1  ;;  %v3164_v51 = vrot.slane %v3153_v46, 6 }
 0xfb0   :  { %v3163_v49 = vrot.slane %v3084_v17, 6  ;;  %v3165_v58 = vrot.slane %v3155_v47, 6 }
 0xfb1   :  { %v3170_v50 = vadd.f32 %v3162_v4, %v3009_v48  ;;  %v3172_v57 = vadd.f32 %v3164_v51, %v3011_v55 }
 0xfb2   :  { %v3171_v53 = vadd.f32 %v3163_v49, %v3010_v52  ;;  %v3173_v18 = vadd.f32 %v3165_v58, %v3012_v3  ;;  %v5116_v58 = vmov 0.0|0.0  }
 0xfb3   :  { %v3174_v54 = vmul.f32 0.5, %v3170_v50 }
 0xfb4   :  { %v3178_v56 = vmul.f32 0.5, %v3171_v53  ;;  %v3183_v59 = vmul.f32 0.5, %v3173_v18  ;;  %v3576_v53 = vld [vmem:[#allocation13] sm:$0xff] }
 0xfb5   :  { %4463 = vtanh.f32 %v3174_v54  ;;  %v3577_v54 = vld [vmem:[#allocation13 + $0x8] sm:$0xff] }
 0xfb6   :  { %4465 = vtanh.f32 %v3178_v56  ;;  %v4295_v55 = vpack.c.bf16 %v3577_v54, %v3576_v53  ;;  %v3578_v56 = vld [vmem:[#allocation13 + $0x10] sm:$0xff] }
 0xfb7   :  { %4467 = vtanh.f32 %v3172_v57  ;;  %v3579_v57 = vld [vmem:[#allocation13 + $0x18] sm:$0xff] }
 0xfb8   :  { %4469 = vtanh.f32 %v3183_v59  ;;  %v4298_v3 = vpack.c.bf16 %v3579_v57, %v3578_v56 }
 0xfbf   :  { %v4464_v60 = vpop.eup %4463 }
 0xfc0   :  { %v4466_v61 = vpop.eup %4465  ;;  %v3176_v62 = vmul.f32 0.5, %v4464_v60 }
 0xfc1   :  { %v3180_v63 = vmul.f32 0.5, %v4466_v61  ;;  %v4468_v2 = vpop.eup %4467 }
 0xfc2   :  { %v3177_v1 = vadd.f32 0.5, %v3176_v62  ;;  %v4470_v21 = vpop.eup %4469 }
 0xfc3   :  { %v3181_v5 = vadd.f32 0.5, %v3180_v63  ;;  %v3185_v12 = vmul.f32 0.5, %v4470_v21  ;;  %v3384_v63 = vld [vmem:[#allocation2 + $0x20] sm:$0xc0] }
 0xfc4   :  { %v3191_v7 = vmul.f32 %v4468_v2, %v3177_v1 }
 0xfc5   :  { %v3190_v9 = vmul.f32 %v3188_v6, %v3181_v5  ;;  %v3186_v14 = vadd.f32 0.5, %v3185_v12  ;;  %v3385_v6 = vld [vmem:[#allocation2 + $0x28] sm:$0xc0] }
 0xfc7   :  { %v3192_v10 = vadd.f32 %v3191_v7, %v3190_v9 }
 0xfc9   :  { %4471 = vtanh.f32 %v3192_v10  ;;  %v3376_v45 = vrot.slane %v3192_v10, 6  ;;  %v3386_v10 = vld [vmem:[#allocation2 + $0x30] sm:$0xc0] }
 0xfd3   :  { %v4472_v15 = vpop.eup %4471 }
 0xfd4   :  { %v3194_v16 = vmul.f32 %v4472_v15, %v3186_v14  ;;  %v3387_v14 = vld [vmem:[#allocation2 + $0x38] sm:$0xc0] }
 0xfd6   :  { %3195 = vst [vmem:[#allocation3 + $0x8] sm:$0xc] %v3194_v16  ;;  %v3201_v19 = vrot.slane %v3194_v16, 2 }
 0xfd8   :  { %3984 = vmatmul.mubr.msk.f32.vlgmr.msra.gmra.mrb[32].mxu0 %vm397_vm0, %v3201_v19  ;;  %3985 = vmatmul.mubr.msk.f32.vlgmr.msra.gmra.mrb[32].mxu1 %vm397_vm0, %v3201_v19 }
 0xfd9   :  { %4281 = vmatpush1.bf16.msra.mxu0 %v5709_v8  ;;  %4289 = vmatpush1.bf16.msra.mxu1 %v5714_v11  ;;  %v3196_v8 = vld [vmem:[#allocation2 + $0x20] sm:$0x30] }
 0xfda   :  { %4283 = vmatprep.subr.bf16.mxu0 %v5718_v13  ;;  %4291 = vmatprep.subr.bf16.mxu1 %v5722_v24  ;;  %v3197_v13 = vld [vmem:[#allocation2 + $0x28] sm:$0x30] }
 0xfdb   :  { %3456 = vmatprep.mubr.f32.mxu0 %v5115_v0  ;;  %3527 = vmatprep.mubr.f32.mxu1 %v5115_v0 }
 0xfdd   :  { %4285 = vmatpush1.bf16.msra.mxu0 %v5724_v22  ;;  %4293 = vmatpush1.bf16.msra.mxu1 %v5727_v25  ;;  %v3199_v22 = vld [vmem:[#allocation2 + $0x38] sm:$0x30] }
 0xfde   :  { %4294 = vmatprep.subr.bf16.mxu0 %v5116_v58 }
0x10ab   :  { %v3270_v20 = vpop.f32.mrb[32].mxu0  ;;  %v3341_v23 = vpop.f32.mrb[32].mxu1 }
0x10ac   :  { %v3350_v27 = vrot.slane %v3270_v20, 4  ;;  %v3272_v39 = vpop.f32.mrb[33].mxu0  ;;  %v3343_v28 = vpop.f32.mrb[33].mxu1  ;;  %v3352_v30 = vrot.slane %v3341_v23, 4 }
0x10ad   :  { %v3351_v29 = vrot.slane %v3272_v39, 4  ;;  %v3353_v35 = vrot.slane %v3343_v28, 4 }
0x10ae   :  { %v3358_v11 = vadd.f32 %v3350_v27, %v3196_v8  ;;  %v3360_v34 = vadd.f32 %v3352_v30, %v3198_v32 }
0x10af   :  { %v3359_v31 = vadd.f32 %v3351_v29, %v3197_v13  ;;  %v3361_v25 = vadd.f32 %v3353_v35, %v3199_v22  ;;  %v3662_v22 = vand.u32 127, %v1906_v26 }
0x10b0   :  { %v3362_v24 = vmul.f32 0.5, %v3358_v11 }
0x10b1   :  { %v3366_v33 = vmul.f32 0.5, %v3359_v31  ;;  %v3371_v36 = vmul.f32 0.5, %v3361_v25  ;;  %v3988_v25 = vld [vmem:[%s5903_s9] ss:$0 sm:$0xff]  ;;  %vm3663_vm2 = vcmp.lt.s32.totalorder %v3662_v22, 16 }
0x10b2   :  { %4473 = vtanh.f32 %v3362_v24 }
0x10b3   :  { %4475 = vtanh.f32 %v3366_v33 }
0x10b4   :  { %4477 = vtanh.f32 %v3360_v34 }
0x10b5   :  { %4479 = vtanh.f32 %v3371_v36 }
0x10bc   :  { %v4474_v37 = vpop.eup %4473 }
0x10bd   :  { %v4476_v38 = vpop.eup %4475  ;;  %v3364_v40 = vmul.f32 0.5, %v4474_v37 }
0x10be   :  { %v3368_v41 = vmul.f32 0.5, %v4476_v38  ;;  %v4478_v43 = vpop.eup %4477 }
0x10bf   :  { %v3365_v42 = vadd.f32 0.5, %v3364_v40  ;;  %v4480_v47 = vpop.eup %4479 }
0x10c0   :  { %v3369_v44 = vadd.f32 0.5, %v3368_v41  ;;  %v3373_v48 = vmul.f32 0.5, %v4480_v47 }
0x10c1   :  { %v3379_v46 = vmul.f32 %v4478_v43, %v3365_v42 }
0x10c2   :  { %v3378_v4 = vmul.f32 %v3376_v45, %v3369_v44  ;;  %v3374_v49 = vadd.f32 0.5, %v3373_v48 }
0x10c4   :  { %v3380_v17 = vadd.f32 %v3379_v46, %v3378_v4 }
0x10c6   :  { %4481 = vtanh.f32 %v3380_v17  ;;  %v3564_v29 = vrot.slane %v3380_v17, 6 }
0x10d0   :  { %v4482_v50 = vpop.eup %4481 }
0x10d1   :  { %v3382_v51 = vmul.f32 %v4482_v50, %v3374_v49 }
0x10d3   :  { %3383 = vst [vmem:[#allocation3 + $0x8] sm:$0x30] %v3382_v51  ;;  %v3389_v52 = vrot.slane %v3382_v51, 4 }
0x10d5   :  { %3986 = vmatmul.mubr.msk.f32.vlgmr.msra.gmra.mrb[34].mxu0 %vm397_vm0, %v3389_v52  ;;  %3987 = vmatmul.mubr.msk.f32.vlgmr.msra.gmra.mrb[34].mxu1 %vm397_vm0, %v3389_v52 }
0x10d6   :  { %4019 = vmatprep.mubr.msk.f32.mxu0 %vm5117_vm1, %v5115_v0  ;;  %4296 = vmatpush3.bf16.msra.mxu0 %v4295_v55 }
0x10d7   :  { %4297 = vmatprep.subr.bf16.mxu0 %v5116_v58 }
0x10da   :  { %4299 = vmatpush3.bf16.msra.mxu0 %v4298_v3 }
0x11a8   :  { %v3458_v18 = vpop.f32.mrb[34].mxu0  ;;  %v3529_v59 = vpop.f32.mrb[34].mxu1 }
0x11a9   :  { %v3538_v60 = vrot.slane %v3458_v18, 2  ;;  %v3460_v61 = vpop.f32.mrb[35].mxu0  ;;  %v3531_v62 = vpop.f32.mrb[35].mxu1  ;;  %v3540_v5 = vrot.slane %v3529_v59, 2 }
0x11aa   :  { %v3539_v1 = vrot.slane %v3460_v61, 2  ;;  %v3541_v12 = vrot.slane %v3531_v62, 2 }
0x11ab   :  { %v3546_v2 = vadd.f32 %v3538_v60, %v3384_v63  ;;  %v3548_v0 = vadd.f32 %v3540_v5, %v3386_v10 }
0x11ac   :  { %v3547_v7 = vadd.f32 %v3539_v1, %v3385_v6  ;;  %v3549_v15 = vadd.f32 %v3541_v12, %v3387_v14 }
0x11ad   :  { %v3550_v9 = vmul.f32 0.5, %v3546_v2 }
0x11ae   :  { %v3554_v21 = vmul.f32 0.5, %v3547_v7  ;;  %v3559_v16 = vmul.f32 0.5, %v3549_v15 }
0x11af   :  { %4483 = vtanh.f32 %v3550_v9 }
0x11b0   :  { %4485 = vtanh.f32 %v3554_v21 }
0x11b1   :  { %4487 = vtanh.f32 %v3548_v0 }
0x11b2   :  { %4489 = vtanh.f32 %v3559_v16 }
0x11b9   :  { %v4484_v19 = vpop.eup %4483 }
0x11ba   :  { %v4486_v20 = vpop.eup %4485  ;;  %v3552_v23 = vmul.f32 0.5, %v4484_v19 }
0x11bb   :  { %v3556_v27 = vmul.f32 0.5, %v4486_v20  ;;  %v4488_v28 = vpop.eup %4487 }
0x11bc   :  { %v3553_v39 = vadd.f32 0.5, %v3552_v23  ;;  %v4490_v31 = vpop.eup %4489 }
0x11bd   :  { %v3557_v8 = vadd.f32 0.5, %v3556_v27  ;;  %v3561_v24 = vmul.f32 0.5, %v4490_v31 }
0x11be   :  { %v3567_v11 = vmul.f32 %v4488_v28, %v3553_v39 }
0x11bf   :  { %v3566_v30 = vmul.f32 %v3564_v29, %v3557_v8  ;;  %v3562_v32 = vadd.f32 0.5, %v3561_v24 }
0x11c1   :  { %v3568_v13 = vadd.f32 %v3567_v11, %v3566_v30 }
0x11c3   :  { %4491 = vtanh.f32 %v3568_v13  ;;  %3575 = vst [vmem:[#allocation18 - $0x4] sm:$0xc0] %v3568_v13 }
0x11cd   :  { %v4492_v33 = vpop.eup %4491 }
0x11ce   :  { %v3570_v34 = vmul.f32 %v4492_v33, %v3562_v32 }
0x11d0   :  { %3571 = vst [vmem:[#allocation3 + $0x8] sm:$0xc0] %v3570_v34  ;;  %3573 = vst [vmem:[#allocation16 - $0x4] sm:$0xc0] %v3570_v34  ;;  %v3588_v35 = vrot.slane %v3570_v34, 6 }
0x11d2   :  { %4020 = vmatmul.mubr.msk.f32.vlgmr.msra.gmra.mrb[36].mxu0 %vm397_vm0, %v3588_v35 }
0x12a5   :  { %v3657_v36 = vpop.f32.mrb[36].mxu0 }
0x12a6   :  { %v3658_v37 = vadd.f32 %v3988_v25, %v3657_v36  ;;  %v4021_v38 = vpop.f32.mrb[37].mxu0 }
0x12a8   :  { %v3664_v40 = vsel %vm3663_vm2, %v3658_v37, -1e+30 }
0x12a9   :  { %v3666_v41 = vsel %vm3665_vm3, %v3664_v40, -inf }
0x12aa   :  { %3667 = vmax.xlane.f32.xlu0 %v3666_v41 }
0x1337   :  { %v3668_v42 = vpop.xlane.xlu0 %3667 }
0x1338   :  { %v3669_v43 = vsub.f32 %v3664_v40, %v3668_v42 }
0x133a   :  { %v3670_v44 = vmul.f32 1.442695, %v3669_v43 }
0x133c   :  { %4493 = vpow2.f32 %v3670_v44 }
0x1346   :  { %v4494_v45 = vpop.eup %4493 }
0x1347   :  { %v3672_v46 = vsel %vm3665_vm3, %v4494_v45, 0.0 }
0x1348   :  { %3673 = vadd.xlane.f32.xlu0 %v3672_v46 }
0x1349   :  { %4990 = shalt.err (!%p4987_p7)
}
0x134a   :  { %s4991_s26 = scalar_lea.hbm %s5905_s11, 64 }
0x134b   :  { %p4992_p8 = scmp.ne.s32.totalorder %s5905_s11, %s4991_s26  ;;  %p4995_p9 = scmp.lt.u32.totalorder %s4991_s26, %s5905_s11 }
0x134d   :  { %p4997_p10 = pnand %p4995_p9, %p4992_p8 }
0x134f   :  { %5000 = shalt.err (!%p4997_p10)
}
0x1350   :  { %s5119_s21 = smov 2   ;;  %s5911_s29 = smov 32  }
0x1351   :  { %3700 = dma.vmem_to_hbm [thread:$0]  %s3695_s27, 64, %s5905_s11, [#allocation17], %s5911_s29, %s5911_s29, %s5119_s21  }
0x1352   :  { %s5120_s17 = smov [#allocation18]  }
0x1353   :  { %s3706_s30 = sshll.u32 %s5120_s17, 4  ;;  %s3707_s30 = int_to_ptr.vmem [resolvable:$true] %s3706_s30 }
0x1354   :  { %s5001_s28 = scalar_lea.vmem %s3707_s30, 64  ;;  %p5006_p12 = scmp.lt.s32.totalorder %s3707_s30, %s3707_s30 }
0x1355   :  { %p5002_p11 = scmp.ne.s32.totalorder %s3707_s30, %s5001_s28  ;;  %p5007_p13 = scmp.lt.s32.totalorder %s5001_s28, %s5001_s28 }
0x1357   :  { %p5008_p0 = por %p5007_p13, %p5006_p12 }
0x1359   :  { %p5009_p1 = pnand %p5008_p0, %p5002_p11 }
0x135b   :  { %5012 = shalt.err (!%p5009_p1)
}
0x135c   :  { %s5013_s22 = scalar_lea.hbm %s5906_s12, 64 }
0x135d   :  { %p5014_p2 = scmp.ne.s32.totalorder %s5906_s12, %s5013_s22  ;;  %p5017_p3 = scmp.lt.u32.totalorder %s5013_s22, %s5906_s12 }
0x135f   :  { %p5019_p4 = pnand %p5017_p3, %p5014_p2 }
0x1361   :  { %5022 = shalt.err (!%p5019_p4)
}
0x1362   :  { %3712 = dma.vmem_to_hbm [thread:$0]  %s3707_s30, 64, %s5906_s12, [#allocation17], %s5911_s29, %s5911_s29, %s5119_s21  }
0x1363   :  { %s5121_s2 = smov [#allocation15]  }
0x1364   :  { %s3685_s8 = sshll.u32 %s5121_s2, 4  ;;  %s3686_s8 = int_to_ptr.vmem [resolvable:$true] %s3685_s8 }
0x1365   :  { %s5023_s3 = scalar_lea.vmem %s3686_s8, 32  ;;  %p5028_p6 = scmp.lt.s32.totalorder %s3686_s8, %s3686_s8 }
0x1366   :  { %p5024_p5 = scmp.ne.s32.totalorder %s3686_s8, %s5023_s3  ;;  %p5029_p7 = scmp.lt.s32.totalorder %s5023_s3, %s5023_s3 }
0x1368   :  { %p5030_p8 = por %p5029_p7, %p5028_p6 }
0x136a   :  { %p5031_p9 = pnand %p5030_p8, %p5024_p5 }
0x13d5   :  { %v3674_v26 = vpop.xlane.xlu0 %3673 }
0x13d6   :  { %4495 = vlog2.f32 %v3674_v26 }
0x13e0   :  { %v4496_v4 = vpop.eup %4495 }
0x13e1   :  { %v3676_v17 = vmul.f32 0.6931472, %v4496_v4 }
0x13e3   :  { %v3677_v47 = vsub.f32 %v3669_v43, %v3676_v17 }
0x13e5   :  { %3678 = vst [vmem:[#allocation15] sm:$0x3] %v3677_v47 }
0x13e6   :  { %5034 = shalt.err (!%p5031_p9)
}
0x13e7   :  { %s5912_s27 = sld [smem:[#allocation57_spill]] }
0x13ed   :  { %s5035_s12 = scalar_lea.hbm %s5912_s27, 32 }
0x13ee   :  { %p5036_p10 = scmp.ne.s32.totalorder %s5912_s27, %s5035_s12  ;;  %p5039_p11 = scmp.lt.u32.totalorder %s5035_s12, %s5912_s27 }
0x13f0   :  { %p5041_p12 = pnand %p5039_p11, %p5036_p10 }
0x13f2   :  { %5044 = shalt.err (!%p5041_p12)
}
0x13f3   :  { %3688 = dma.vmem_to_hbm [thread:$0]  %s3686_s8, 32, %s5912_s27, [#allocation7]  }
0x13f4   :  { %5085 = dma.done.wait [#allocation7], 32  }
0x13f5   :  { %5086 = vsyncadd [#allocation7], 4294967264 }
0x13f6   :  { %5087 = dma.done.wait [#allocation17], 128  }
0x13f7   :  { %5088 = vsyncadd [#allocation17], 4294967168 }
0x13f8   :  { %3722 = vsyncpa [#allocation6], 1 }
0x13f9   :  { %3723 = vsyncpa [#allocation11], 1 }
0x13fa   :  { %3724 = vsyncpa [#allocation14], 1 }
0x13fb   :  { %3725 = vsyncpa [#allocation7], 1 }
0x13fc   :  { %3726 = vsyncpa [#allocation17], 1 }
0x13fd   :  { %3727 = vsyncpa [#allocation8], 1 }
0x13fe   :  { %3728 = vsyncmov [#allocation4] }
0x1401   :  { %s3729_s13 = vpop.sfrf %3728 }
0x1402   :  { %p3990_p13 = scmp.ne.s32.totalorder %s3729_s13, 0 }
0x1404   :  { %3733 = shalt.err (%p3990_p13)  }
0x1405   :  { %3735 = vsyncmov [#allocation4 + $0x1] }
0x1408   :  { %s3736_s0 = vpop.sfrf %3735 }
0x1409   :  { %p3991_p0 = scmp.ne.s32.totalorder %s3736_s0, 0 }
0x140b   :  { %3740 = shalt.err (%p3991_p0)  }
0x140c   :  { %3742 = vsyncmov [#allocation4 + $0x2] }
0x140f   :  { %s3743_s21 = vpop.sfrf %3742 }
0x1410   :  { %p3992_p1 = scmp.ne.s32.totalorder %s3743_s21, 0 }
0x1412   :  { %3747 = shalt.err (%p3992_p1)  }
0x1413   :  { %3749 = vsyncmov [#allocation4 + $0x3] }
0x1416   :  { %s3750_s29 = vpop.sfrf %3749 }
0x1417   :  { %p3993_p2 = scmp.ne.s32.totalorder %s3750_s29, 0 }
0x1419   :  { %3754 = shalt.err (%p3993_p2)  }
0x141a   :  { %3756 = vsyncmov [#allocation4 + $0x4] }
0x141d   :  { %s3757_s25 = vpop.sfrf %3756 }
0x141e   :  { %p3994_p3 = scmp.ne.s32.totalorder %s3757_s25, 0 }
0x1420   :  { %3761 = shalt.err (%p3994_p3)  }
0x1421   :  { %3763 = vsyncmov [#allocation4 + $0x5] }
0x1424   :  { %s3764_s10 = vpop.sfrf %3763 }
0x1425   :  { %p3995_p4 = scmp.ne.s32.totalorder %s3764_s10, 0 }
0x1427   :  { %3768 = shalt.err (%p3995_p4)  }
0x1428   :  { %3770 = vsyncmov [#allocation4 + $0x6] }
0x142b   :  { %s3771_s17 = vpop.sfrf %3770 }
0x142c   :  { %p3996_p5 = scmp.ne.s32.totalorder %s3771_s17, 0 }
0x142e   :  { %3775 = shalt.err (%p3996_p5)  }
0x142f   :  { %3777 = vsyncmov [#allocation4 + $0x7] }
0x1432   :  { %s3778_s30 = vpop.sfrf %3777 }
0x1433   :  { %p3997_p6 = scmp.ne.s32.totalorder %s3778_s30, 0 }
0x1435   :  { %3782 = shalt.err (%p3997_p6)  }
0x1436   :  { %3784 = vsyncmov [#allocation4 + $0x8] }
0x1439   :  { %s3785_s28 = vpop.sfrf %3784 }
0x143a   :  { %p3998_p7 = scmp.ne.s32.totalorder %s3785_s28, 0 }
0x143c   :  { %3789 = shalt.err (%p3998_p7)  }
0x143d   :  { %3791 = vsyncmov [#allocation4 + $0x9] }
0x1440   :  { %s3792_s1 = vpop.sfrf %3791 }
0x1441   :  { %p3999_p8 = scmp.ne.s32.totalorder %s3792_s1, 0 }
0x1443   :  { %3796 = shalt.err (%p3999_p8)  }
0x1444   :  { %3798 = vsyncmov [#allocation4 + $0xa] }
0x1447   :  { %s3799_s6 = vpop.sfrf %3798 }
0x1448   :  { %p4000_p9 = scmp.ne.s32.totalorder %s3799_s6, 0 }
0x144a   :  { %3803 = shalt.err (%p4000_p9)  }
0x144b   :  { %3805 = vsyncmov [#allocation4 + $0xb] }
0x144e   :  { %s3806_s22 = vpop.sfrf %3805 }
0x144f   :  { %p4001_p10 = scmp.ne.s32.totalorder %s3806_s22, 0 }
0x1451   :  { %3810 = shalt.err (%p4001_p10)  }
0x1452   :  { %3812 = vsyncmov [#allocation4 + $0xc] }
0x1455   :  { %s3813_s4 = vpop.sfrf %3812 }
0x1456   :  { %p4002_p11 = scmp.ne.s32.totalorder %s3813_s4, 0 }
0x1458   :  { %3817 = shalt.err (%p4002_p11)  }
0x1459   :  { %3819 = vsyncmov [#allocation4 + $0xd] }
0x145c   :  { %s3820_s18 = vpop.sfrf %3819 }
0x145d   :  { %p4003_p12 = scmp.ne.s32.totalorder %s3820_s18, 0 }
0x145f   :  { %3824 = shalt.err (%p4003_p12)  }
0x1460   :  { %3826 = vsyncmov [#allocation4 + $0xe] }
0x1463   :  { %s3827_s19 = vpop.sfrf %3826 }
0x1464   :  { %p4004_p13 = scmp.ne.s32.totalorder %s3827_s19, 0 }
0x1466   :  { %3831 = shalt.err (%p4004_p13)  }
0x1467   :  { %3833 = vsyncmov [#allocation4 + $0xf] }
0x146a   :  { %s3834_s11 = vpop.sfrf %3833 }
0x146b   :  { %p4005_p0 = scmp.ne.s32.totalorder %s3834_s11, 0 }
0x146d   :  { %3838 = shalt.err (%p4005_p0)  }

</bundles_post_ra>
